<compile_context>
chip_gen: v7x
topology: tpu7x:2x2x1
jax: 0.10.0
libtpu: 0.0.40
codegen_flags: <defaults>
</compile_context>

<pallas_src>
import jax
import jax.numpy as jnp
from jax.experimental import pallas as pl
from jax.experimental.pallas import tpu as pltpu


def _round_up(x: int, m: int) -> int:
    return -(-x // m) * m


def _vmem_limit_bytes(default=48 << 20) -> int:
    """Generation-aware scoped-VMEM budget (~3/4 of physical VMEM)."""
    try:
        info = pltpu.get_tpu_info()
        cap = getattr(info, "vmem_capacity_bytes", None)
        if cap:
            return int(cap) * 3 // 4          # ~96 MiB on v5e/v6e, ~48 MiB on v7x
    except Exception:
        pass
    return default


# ----------------------------------------------------------------------------
# Kernels: dilated 3x3 conv (9 accumulating tap matmuls) + bias + ReLU
#          + fused running residual sum.
# ----------------------------------------------------------------------------
def _accumulate_taps(x0_ref, x1_ref, x2_ref, w_ref, out_w):
    """9 dilated taps as 9 accumulating (W, Cp) @ (Cp, Cp) MXU matmuls."""
    cp = w_ref.shape[-1]
    wp = x0_ref.shape[2]          # padded row width W + 2*d
    d = (wp - out_w) // 2
    rows = (x0_ref[0, 0, :, :], x1_ref[0, 0, :, :], x2_ref[0, 0, :, :])
    acc = jnp.zeros((out_w, cp), jnp.float32)
    for ky in range(3):
        row = rows[ky]                                   # (W+2d, Cp) bf16
        for kx in range(3):
            tap = row[kx * d: kx * d + out_w, :]         # static W-shift (XLU)
            acc = acc + jnp.dot(tap, w_ref[ky, kx],
                                preferred_element_type=jnp.float32)
    return acc


def _dconv_relu_acc_kernel(x0_ref, x1_ref, x2_ref, w_ref, b_ref, tin_ref,
                           h_ref, tout_ref):
    out_w = tout_ref.shape[2]
    y = _accumulate_taps(x0_ref, x1_ref, x2_ref, w_ref, out_w)
    y = jnp.maximum(y + b_ref[...], 0.0)                 # f32 bias + ReLU
    h_ref[0, 0, :, :] = y.astype(h_ref.dtype)            # next layer's input
    tout_ref[0, 0, :, :] = tin_ref[0, 0, :, :] + y       # running residual (f32)


def _dconv_relu_acc_kernel_last(x0_ref, x1_ref, x2_ref, w_ref, b_ref, tin_ref,
                                tout_ref):
    # Final layer: the conv output itself is never read again, skip its store.
    out_w = tout_ref.shape[2]
    y = _accumulate_taps(x0_ref, x1_ref, x2_ref, w_ref, out_w)
    y = jnp.maximum(y + b_ref[...], 0.0)
    tout_ref[0, 0, :, :] = tin_ref[0, 0, :, :] + y


def dilated_conv3x3_relu_acc(h_nhwc, w_hwio, bias_row, dilation, total_nhwc,
                             *, last, vmem_limit):
    """One dilated conv layer fused with bias, ReLU and the residual sum.

    h_nhwc:     (N, H, W, Cp)   bf16 activations (channel-padded to 128k)
    w_hwio:     (3, 3, Cp, Cp)  bf16 weights
    bias_row:   (1, Cp)         f32 bias
    total_nhwc: (N, H, W, Cp)   f32 running residual sum (aliased in place)
    Returns (h_new, total_new) or total_new if last=True.
    """
    N, H, W, Cp = h_nhwc.shape
    d = int(dilation)
    Wp = W + 2 * d

    # Only XLA glue left: one spatial zero-pad (no im2col slab).
    xp = jnp.pad(h_nhwc, ((0, 0), (d, d), (d, d), (0, 0)))

    def x_map(shift):
        def imap(n, y):
            return (n, y + shift, 0, 0)      # block size 1 along H -> row index
        return imap

    def row_in_spec(shift):
        return pl.BlockSpec((1, 1, Wp, Cp), x_map(shift))

    io_spec = pl.BlockSpec((1, 1, W, Cp), lambda n, y: (n, y, 0, 0))

    in_specs = [
        row_in_spec(0),            # padded row y        (ky = 0)
        row_in_spec(d),            # padded row y + d    (ky = 1)
        row_in_spec(2 * d),        # padded row y + 2d   (ky = 2)
        pl.BlockSpec((3, 3, Cp, Cp), lambda n, y: (0, 0, 0, 0)),   # weights
        pl.BlockSpec((1, Cp), lambda n, y: (0, 0)),                # bias
        io_spec,                                                   # residual in
    ]

    if last:
        kernel = _dconv_relu_acc_kernel_last
        out_shape = jax.ShapeDtypeStruct((N, H, W, Cp), total_nhwc.dtype)
        out_specs = io_spec
        aliases = {5: 0}
    else:
        kernel = _dconv_relu_acc_kernel
        out_shape = (jax.ShapeDtypeStruct((N, H, W, Cp), h_nhwc.dtype),
                     jax.ShapeDtypeStruct((N, H, W, Cp), total_nhwc.dtype))
        out_specs = (io_spec, io_spec)
        aliases = {5: 1}

    return pl.pallas_call(
        kernel,
        out_shape=out_shape,
        grid_spec=pltpu.PrefetchScalarGridSpec(
            num_scalar_prefetch=0,
            grid=(N, H),
            in_specs=in_specs,
            out_specs=out_specs,
        ),
        compiler_params=pltpu.CompilerParams(
            dimension_semantics=("parallel", "parallel"),
            vmem_limit_bytes=int(vmem_limit),
        ),
        input_output_aliases=aliases,     # residual stream updated in place
    )(xp, xp, xp, w_hwio, bias_row, total_nhwc)


# ----------------------------------------------------------------------------
# Module wrapper (parameters initialized deterministically in-script)
# ----------------------------------------------------------------------------
class DblockMoreDilatePallas:
    DILATIONS = (1, 2, 4, 8, 16)
    LANE = 128

    def __init__(self, channel, key, compute_dtype=jnp.bfloat16):
        self.channel = channel
        self.compute_dtype = compute_dtype
        cp = _round_up(channel, self.LANE)
        self.cp = cp

        keys = jax.random.split(key, 5)
        # Master parameters in f32 (HWIO); biases zeroed like the PyTorch init.
        self.weights = [
            0.1 * jax.random.normal(k, (3, 3, channel, channel), jnp.float32)
            for k in keys
        ]
        self.biases = [jnp.zeros((channel,), jnp.float32) for _ in range(5)]

        # Padded, lane-dense, compute-dtype copies built ONCE (hoisted out of
        # __call__ per review).
        pad_c = cp - channel
        self.weights_p = [
            jnp.pad(w, ((0, 0), (0, 0), (0, pad_c), (0, pad_c))).astype(compute_dtype)
            for w in self.weights
        ]
        self.biases_p = [
            jnp.pad(b, ((0, pad_c),)).astype(jnp.float32).reshape(1, cp)
            for b in self.biases
        ]

    def __call__(self, x_nchw):
        N, C, H, W = x_nchw.shape
        assert C == self.channel
        cp = self.cp
        vmem_limit = _vmem_limit_bytes()

        # NCHW -> NHWC, channel-pad to a lane-dense multiple of 128.
        # TODO(synk): for C << 128 pack (W, C) into the lane dimension instead
        # of zero-padding channels (small-C configs waste HBM bandwidth here).
        x = jnp.transpose(x_nchw, (0, 2, 3, 1))
        x = jnp.pad(x, ((0, 0), (0, 0), (0, 0), (0, cp - C)))

        total = x.astype(jnp.float32)          # residual stream stays f32
        h = x.astype(self.compute_dtype)       # activation stream in bf16

        n_layers = len(self.DILATIONS)
        for i, (w_p, b_p, d) in enumerate(
                zip(self.weights_p, self.biases_p, self.DILATIONS)):
            last = (i == n_layers - 1)
            if last:
                total = dilated_conv3x3_relu_acc(
                    h, w_p, b_p, d, total, last=True, vmem_limit=vmem_limit)
            else:
                h, total = dilated_conv3x3_relu_acc(
                    h, w_p, b_p, d, total, last=False, vmem_limit=vmem_limit)

        out = total[..., :C]
        return jnp.transpose(out, (0, 3, 1, 2)).astype(x_nchw.dtype)


# ----------------------------------------------------------------------------
# Pure-JAX reference (same bf16-operand / f32-accumulate numerics)
# ----------------------------------------------------------------------------
def reference_forward(x_nchw, weights, biases, dilations,
                      compute_dtype=jnp.bfloat16):
    x = jnp.transpose(x_nchw, (0, 2, 3, 1)).astype(jnp.float32)
    total = x
    h = x.astype(compute_dtype)
    for w, b, d in zip(weights, biases, dilations):
        y = jax.lax.conv_general_dilated(
            h, w.astype(compute_dtype),
            window_strides=(1, 1), padding=[(d, d), (d, d)],
            rhs_dilation=(d, d),
            dimension_numbers=("NHWC", "HWIO", "NHWC"),
            preferred_element_type=jnp.float32,
        ) + b
        y = jnp.maximum(y, 0.0)
        total = total + y
        h = y.astype(compute_dtype)
    return jnp.transpose(total, (0, 3, 1, 2)).astype(x_nchw.dtype)


if __name__ == "__main__":
    key = jax.random.PRNGKey(0)
    k_x, k_w = jax.random.split(key)

    N, C, H, W = 2, 4, 16, 16
    x = jax.random.normal(k_x, (N, C, H, W), jnp.float32)

    block = DblockMoreDilatePallas(C, k_w)

    out = jax.jit(block.__call__)(x)
    out = jax.block_until_ready(out)

    ref = reference_forward(x, block.weights, block.biases,
                            DblockMoreDilatePallas.DILATIONS)
    ref = jax.block_until_ready(ref)

    assert out.shape == (N, C, H, W)
    err = float(jnp.max(jnp.abs(out - ref)))
    assert jnp.allclose(out, ref, atol=1e-2, rtol=1e-2), (
        "mismatch vs reference, max abs err %.3e" % err)

    print("KERNEL_OK")
</pallas_src>

<mosaic_0001>
module attributes {stable_mosaic.version = 11 : i64} {
  func.func @_dconv_relu_acc_kernel(%arg0: i32, %arg1: i32, %arg2: memref<1x1x18x128xbf16, #tpu.memory_space<vmem>>, %arg3: memref<1x1x18x128xbf16, #tpu.memory_space<vmem>>, %arg4: memref<1x1x18x128xbf16, #tpu.memory_space<vmem>>, %arg5: memref<3x3x128x128xbf16, #tpu.memory_space<vmem>>, %arg6: memref<1x128xf32, #tpu.memory_space<vmem>>, %arg7: memref<1x1x16x128xf32, #tpu.memory_space<vmem>>, %arg8: memref<1x1x16x128xbf16, #tpu.memory_space<vmem>>, %arg9: memref<1x1x16x128xf32, #tpu.memory_space<vmem>>) attributes {dimension_semantics = [#tpu.dimension_semantics<parallel>, #tpu.dimension_semantics<parallel>], iteration_bounds = array<i64: 2, 16>, scalar_prefetch = 0 : i64, scratch_operands = 0 : i64, tpu.core_type = #tpu.core_type<tc>, window_params = [{transform_indices = @transform_0, window_bounds = array<i64: 1, 1, 18, 128>}, {transform_indices = @transform_1, window_bounds = array<i64: 1, 1, 18, 128>}, {transform_indices = @transform_2, window_bounds = array<i64: 1, 1, 18, 128>}, {pipeline_mode = #tpu.pipeline_mode<synchronous>, transform_indices = @transform_3, window_bounds = array<i64: 3, 3, 128, 128>}, {pipeline_mode = #tpu.pipeline_mode<synchronous>, transform_indices = @transform_4, window_bounds = array<i64: 1, 128>}, {transform_indices = @transform_5, window_bounds = array<i64: 1, 1, 16, 128>}, {transform_indices = @transform_6, window_bounds = array<i64: 1, 1, 16, 128>}, {transform_indices = @transform_7, window_bounds = array<i64: 1, 1, 16, 128>}]} {
    %c0 = arith.constant 0 : index
    %c0_0 = arith.constant 0 : index
    %c0_1 = arith.constant 0 : index
    %c0_2 = arith.constant 0 : index
    %0 = vector.load %arg2[%c0, %c0_0, %c0_1, %c0_2] : memref<1x1x18x128xbf16, #tpu.memory_space<vmem>>, vector<1x1x18x128xbf16>
    %1 = vector.shape_cast %0 : vector<1x1x18x128xbf16> to vector<18x128xbf16>
    %c0_3 = arith.constant 0 : index
    %c0_4 = arith.constant 0 : index
    %c0_5 = arith.constant 0 : index
    %c0_6 = arith.constant 0 : index
    %2 = vector.load %arg3[%c0_3, %c0_4, %c0_5, %c0_6] : memref<1x1x18x128xbf16, #tpu.memory_space<vmem>>, vector<1x1x18x128xbf16>
    %3 = vector.shape_cast %2 : vector<1x1x18x128xbf16> to vector<18x128xbf16>
    %c0_7 = arith.constant 0 : index
    %c0_8 = arith.constant 0 : index
    %c0_9 = arith.constant 0 : index
    %c0_10 = arith.constant 0 : index
    %4 = vector.load %arg4[%c0_7, %c0_8, %c0_9, %c0_10] : memref<1x1x18x128xbf16, #tpu.memory_space<vmem>>, vector<1x1x18x128xbf16>
    %5 = vector.shape_cast %4 : vector<1x1x18x128xbf16> to vector<18x128xbf16>
    %cst = arith.constant 0.000000e+00 : f32
    %6 = vector.broadcast %cst : f32 to vector<16x128xf32>
    %7 = vector.extract_strided_slice %1 {offsets = [0, 0], sizes = [16, 128], strides = [1, 1]} : vector<18x128xbf16> to vector<16x128xbf16>
    %c0_11 = arith.constant 0 : index
    %c0_12 = arith.constant 0 : index
    %c0_13 = arith.constant 0 : index
    %c0_14 = arith.constant 0 : index
    %8 = vector.load %arg5[%c0_11, %c0_12, %c0_13, %c0_14] : memref<3x3x128x128xbf16, #tpu.memory_space<vmem>>, vector<1x1x128x128xbf16>
    %9 = vector.shape_cast %8 : vector<1x1x128x128xbf16> to vector<128x128xbf16>
    %cst_15 = arith.constant dense<0.000000e+00> : vector<16x128xf32>
    %10 = tpu.matmul %7, %9, %cst_15 {dimension_numbers = #tpu.dot_dimension_numbers<[1], [0], [0], [1], [0, 0, 1, 1], [], []>} : vector<16x128xbf16>, vector<128x128xbf16>, vector<16x128xf32> -> vector<16x128xf32>
    %11 = arith.addf %6, %10 : vector<16x128xf32>
    %12 = vector.extract_strided_slice %1 {offsets = [1, 0], sizes = [16, 128], strides = [1, 1]} : vector<18x128xbf16> to vector<16x128xbf16>
    %c0_16 = arith.constant 0 : index
    %c1 = arith.constant 1 : index
    %c0_17 = arith.constant 0 : index
    %c0_18 = arith.constant 0 : index
    %13 = vector.load %arg5[%c0_16, %c1, %c0_17, %c0_18] : memref<3x3x128x128xbf16, #tpu.memory_space<vmem>>, vector<1x1x128x128xbf16>
    %14 = vector.shape_cast %13 : vector<1x1x128x128xbf16> to vector<128x128xbf16>
    %cst_19 = arith.constant dense<0.000000e+00> : vector<16x128xf32>
    %15 = tpu.matmul %12, %14, %cst_19 {dimension_numbers = #tpu.dot_dimension_numbers<[1], [0], [0], [1], [0, 0, 1, 1], [], []>} : vector<16x128xbf16>, vector<128x128xbf16>, vector<16x128xf32> -> vector<16x128xf32>
    %16 = arith.addf %11, %15 : vector<16x128xf32>
    %17 = vector.extract_strided_slice %1 {offsets = [2, 0], sizes = [16, 128], strides = [1, 1]} : vector<18x128xbf16> to vector<16x128xbf16>
    %c0_20 = arith.constant 0 : index
    %c2 = arith.constant 2 : index
    %c0_21 = arith.constant 0 : index
    %c0_22 = arith.constant 0 : index
    %18 = vector.load %arg5[%c0_20, %c2, %c0_21, %c0_22] : memref<3x3x128x128xbf16, #tpu.memory_space<vmem>>, vector<1x1x128x128xbf16>
    %19 = vector.shape_cast %18 : vector<1x1x128x128xbf16> to vector<128x128xbf16>
    %cst_23 = arith.constant dense<0.000000e+00> : vector<16x128xf32>
    %20 = tpu.matmul %17, %19, %cst_23 {dimension_numbers = #tpu.dot_dimension_numbers<[1], [0], [0], [1], [0, 0, 1, 1], [], []>} : vector<16x128xbf16>, vector<128x128xbf16>, vector<16x128xf32> -> vector<16x128xf32>
    %21 = arith.addf %16, %20 : vector<16x128xf32>
    %22 = vector.extract_strided_slice %3 {offsets = [0, 0], sizes = [16, 128], strides = [1, 1]} : vector<18x128xbf16> to vector<16x128xbf16>
    %c1_24 = arith.constant 1 : index
    %c0_25 = arith.constant 0 : index
    %c0_26 = arith.constant 0 : index
    %c0_27 = arith.constant 0 : index
    %23 = vector.load %arg5[%c1_24, %c0_25, %c0_26, %c0_27] : memref<3x3x128x128xbf16, #tpu.memory_space<vmem>>, vector<1x1x128x128xbf16>
    %24 = vector.shape_cast %23 : vector<1x1x128x128xbf16> to vector<128x128xbf16>
    %cst_28 = arith.constant dense<0.000000e+00> : vector<16x128xf32>
    %25 = tpu.matmul %22, %24, %cst_28 {dimension_numbers = #tpu.dot_dimension_numbers<[1], [0], [0], [1], [0, 0, 1, 1], [], []>} : vector<16x128xbf16>, vector<128x128xbf16>, vector<16x128xf32> -> vector<16x128xf32>
    %26 = arith.addf %21, %25 : vector<16x128xf32>
    %27 = vector.extract_strided_slice %3 {offsets = [1, 0], sizes = [16, 128], strides = [1, 1]} : vector<18x128xbf16> to vector<16x128xbf16>
    %c1_29 = arith.constant 1 : index
    %c1_30 = arith.constant 1 : index
    %c0_31 = arith.constant 0 : index
    %c0_32 = arith.constant 0 : index
    %28 = vector.load %arg5[%c1_29, %c1_30, %c0_31, %c0_32] : memref<3x3x128x128xbf16, #tpu.memory_space<vmem>>, vector<1x1x128x128xbf16>
    %29 = vector.shape_cast %28 : vector<1x1x128x128xbf16> to vector<128x128xbf16>
    %cst_33 = arith.constant dense<0.000000e+00> : vector<16x128xf32>
    %30 = tpu.matmul %27, %29, %cst_33 {dimension_numbers = #tpu.dot_dimension_numbers<[1], [0], [0], [1], [0, 0, 1, 1], [], []>} : vector<16x128xbf16>, vector<128x128xbf16>, vector<16x128xf32> -> vector<16x128xf32>
    %31 = arith.addf %26, %30 : vector<16x128xf32>
    %32 = vector.extract_strided_slice %3 {offsets = [2, 0], sizes = [16, 128], strides = [1, 1]} : vector<18x128xbf16> to vector<16x128xbf16>
    %c1_34 = arith.constant 1 : index
    %c2_35 = arith.constant 2 : index
    %c0_36 = arith.constant 0 : index
    %c0_37 = arith.constant 0 : index
    %33 = vector.load %arg5[%c1_34, %c2_35, %c0_36, %c0_37] : memref<3x3x128x128xbf16, #tpu.memory_space<vmem>>, vector<1x1x128x128xbf16>
    %34 = vector.shape_cast %33 : vector<1x1x128x128xbf16> to vector<128x128xbf16>
    %cst_38 = arith.constant dense<0.000000e+00> : vector<16x128xf32>
    %35 = tpu.matmul %32, %34, %cst_38 {dimension_numbers = #tpu.dot_dimension_numbers<[1], [0], [0], [1], [0, 0, 1, 1], [], []>} : vector<16x128xbf16>, vector<128x128xbf16>, vector<16x128xf32> -> vector<16x128xf32>
    %36 = arith.addf %31, %35 : vector<16x128xf32>
    %37 = vector.extract_strided_slice %5 {offsets = [0, 0], sizes = [16, 128], strides = [1, 1]} : vector<18x128xbf16> to vector<16x128xbf16>
    %c2_39 = arith.constant 2 : index
    %c0_40 = arith.constant 0 : index
    %c0_41 = arith.constant 0 : index
    %c0_42 = arith.constant 0 : index
    %38 = vector.load %arg5[%c2_39, %c0_40, %c0_41, %c0_42] : memref<3x3x128x128xbf16, #tpu.memory_space<vmem>>, vector<1x1x128x128xbf16>
    %39 = vector.shape_cast %38 : vector<1x1x128x128xbf16> to vector<128x128xbf16>
    %cst_43 = arith.constant dense<0.000000e+00> : vector<16x128xf32>
    %40 = tpu.matmul %37, %39, %cst_43 {dimension_numbers = #tpu.dot_dimension_numbers<[1], [0], [0], [1], [0, 0, 1, 1], [], []>} : vector<16x128xbf16>, vector<128x128xbf16>, vector<16x128xf32> -> vector<16x128xf32>
    %41 = arith.addf %36, %40 : vector<16x128xf32>
    %42 = vector.extract_strided_slice %5 {offsets = [1, 0], sizes = [16, 128], strides = [1, 1]} : vector<18x128xbf16> to vector<16x128xbf16>
    %c2_44 = arith.constant 2 : index
    %c1_45 = arith.constant 1 : index
    %c0_46 = arith.constant 0 : index
    %c0_47 = arith.constant 0 : index
    %43 = vector.load %arg5[%c2_44, %c1_45, %c0_46, %c0_47] : memref<3x3x128x128xbf16, #tpu.memory_space<vmem>>, vector<1x1x128x128xbf16>
    %44 = vector.shape_cast %43 : vector<1x1x128x128xbf16> to vector<128x128xbf16>
    %cst_48 = arith.constant dense<0.000000e+00> : vector<16x128xf32>
    %45 = tpu.matmul %42, %44, %cst_48 {dimension_numbers = #tpu.dot_dimension_numbers<[1], [0], [0], [1], [0, 0, 1, 1], [], []>} : vector<16x128xbf16>, vector<128x128xbf16>, vector<16x128xf32> -> vector<16x128xf32>
    %46 = arith.addf %41, %45 : vector<16x128xf32>
    %47 = vector.extract_strided_slice %5 {offsets = [2, 0], sizes = [16, 128], strides = [1, 1]} : vector<18x128xbf16> to vector<16x128xbf16>
    %c2_49 = arith.constant 2 : index
    %c2_50 = arith.constant 2 : index
    %c0_51 = arith.constant 0 : index
    %c0_52 = arith.constant 0 : index
    %48 = vector.load %arg5[%c2_49, %c2_50, %c0_51, %c0_52] : memref<3x3x128x128xbf16, #tpu.memory_space<vmem>>, vector<1x1x128x128xbf16>
    %49 = vector.shape_cast %48 : vector<1x1x128x128xbf16> to vector<128x128xbf16>
    %cst_53 = arith.constant dense<0.000000e+00> : vector<16x128xf32>
    %50 = tpu.matmul %47, %49, %cst_53 {dimension_numbers = #tpu.dot_dimension_numbers<[1], [0], [0], [1], [0, 0, 1, 1], [], []>} : vector<16x128xbf16>, vector<128x128xbf16>, vector<16x128xf32> -> vector<16x128xf32>
    %51 = arith.addf %46, %50 : vector<16x128xf32>
    %c0_54 = arith.constant 0 : index
    %c0_55 = arith.constant 0 : index
    %52 = vector.load %arg6[%c0_54, %c0_55] : memref<1x128xf32, #tpu.memory_space<vmem>>, vector<1x128xf32>
    %53 = vector.broadcast %52 : vector<1x128xf32> to vector<16x128xf32>
    %54 = arith.addf %51, %53 : vector<16x128xf32>
    %cst_56 = arith.constant 0.000000e+00 : f32
    %55 = vector.broadcast %cst_56 : f32 to vector<16x128xf32>
    %56 = arith.maximumf %54, %55 : vector<16x128xf32>
    %57 = arith.truncf %56 : vector<16x128xf32> to vector<16x128xbf16>
    %c0_57 = arith.constant 0 : index
    %c0_58 = arith.constant 0 : index
    %c0_59 = arith.constant 0 : index
    %c0_60 = arith.constant 0 : index
    %58 = vector.load %arg8[%c0_57, %c0_58, %c0_59, %c0_60] : memref<1x1x16x128xbf16, #tpu.memory_space<vmem>>, vector<1x1x16x128xbf16>
    %59 = vector.shape_cast %58 : vector<1x1x16x128xbf16> to vector<16x128xbf16>
    %60 = vector.shape_cast %57 : vector<16x128xbf16> to vector<1x1x16x128xbf16>
    tpu.vector_store %arg8[%c0_57, %c0_58, %c0_59, %c0_60], %60 {strides = array<i32>} : memref<1x1x16x128xbf16, #tpu.memory_space<vmem>>, vector<1x1x16x128xbf16>,
    %c0_61 = arith.constant 0 : index
    %c0_62 = arith.constant 0 : index
    %c0_63 = arith.constant 0 : index
    %c0_64 = arith.constant 0 : index
    %61 = vector.load %arg7[%c0_61, %c0_62, %c0_63, %c0_64] : memref<1x1x16x128xf32, #tpu.memory_space<vmem>>, vector<1x1x16x128xf32>
    %62 = vector.shape_cast %61 : vector<1x1x16x128xf32> to vector<16x128xf32>
    %63 = arith.addf %62, %56 : vector<16x128xf32>
    %c0_65 = arith.constant 0 : index
    %c0_66 = arith.constant 0 : index
    %c0_67 = arith.constant 0 : index
    %c0_68 = arith.constant 0 : index
    %64 = vector.load %arg9[%c0_65, %c0_66, %c0_67, %c0_68] : memref<1x1x16x128xf32, #tpu.memory_space<vmem>>, vector<1x1x16x128xf32>
    %65 = vector.shape_cast %64 : vector<1x1x16x128xf32> to vector<16x128xf32>
    %66 = vector.shape_cast %63 : vector<16x128xf32> to vector<1x1x16x128xf32>
    tpu.vector_store %arg9[%c0_65, %c0_66, %c0_67, %c0_68], %66 {strides = array<i32>} : memref<1x1x16x128xf32, #tpu.memory_space<vmem>>, vector<1x1x16x128xf32>,
    return
  }
  func.func @transform_0(%arg0: i32, %arg1: i32) -> (i32, i32, i32, i32) {
    %c0_i32 = arith.constant 0 : i32
    %0 = arith.addi %arg1, %c0_i32 : i32
    %c0_i32_0 = arith.constant 0 : i32
    %c0_i32_1 = arith.constant 0 : i32
    %c0_i32_2 = arith.constant 0 : i32
    return %arg0, %0, %c0_i32_0, %c0_i32_1 : i32, i32, i32, i32
  }
  func.func @transform_1(%arg0: i32, %arg1: i32) -> (i32, i32, i32, i32) {
    %c1_i32 = arith.constant 1 : i32
    %0 = arith.addi %arg1, %c1_i32 : i32
    %c0_i32 = arith.constant 0 : i32
    %c0_i32_0 = arith.constant 0 : i32
    %c0_i32_1 = arith.constant 0 : i32
    return %arg0, %0, %c0_i32, %c0_i32_0 : i32, i32, i32, i32
  }
  func.func @transform_2(%arg0: i32, %arg1: i32) -> (i32, i32, i32, i32) {
    %c2_i32 = arith.constant 2 : i32
    %0 = arith.addi %arg1, %c2_i32 : i32
    %c0_i32 = arith.constant 0 : i32
    %c0_i32_0 = arith.constant 0 : i32
    %c0_i32_1 = arith.constant 0 : i32
    return %arg0, %0, %c0_i32, %c0_i32_0 : i32, i32, i32, i32
  }
  func.func @transform_3(%arg0: i32, %arg1: i32) -> (i32, i32, i32, i32) {
    %c0_i32 = arith.constant 0 : i32
    %c0_i32_0 = arith.constant 0 : i32
    %c0_i32_1 = arith.constant 0 : i32
    %c0_i32_2 = arith.constant 0 : i32
    %c0_i32_3 = arith.constant 0 : i32
    return %c0_i32, %c0_i32_0, %c0_i32_1, %c0_i32_2 : i32, i32, i32, i32
  }
  func.func @transform_4(%arg0: i32, %arg1: i32) -> (i32, i32) {
    %c0_i32 = arith.constant 0 : i32
    %c0_i32_0 = arith.constant 0 : i32
    %c0_i32_1 = arith.constant 0 : i32
    return %c0_i32, %c0_i32_0 : i32, i32
  }
  func.func @transform_5(%arg0: i32, %arg1: i32) -> (i32, i32, i32, i32) {
    %c0_i32 = arith.constant 0 : i32
    %c0_i32_0 = arith.constant 0 : i32
    %c0_i32_1 = arith.constant 0 : i32
    return %arg0, %arg1, %c0_i32, %c0_i32_0 : i32, i32, i32, i32
  }
  func.func @transform_6(%arg0: i32, %arg1: i32) -> (i32, i32, i32, i32) {
    %c0_i32 = arith.constant 0 : i32
    %c0_i32_0 = arith.constant 0 : i32
    %c0_i32_1 = arith.constant 0 : i32
    return %arg0, %arg1, %c0_i32, %c0_i32_0 : i32, i32, i32, i32
  }
  func.func @transform_7(%arg0: i32, %arg1: i32) -> (i32, i32, i32, i32) {
    %c0_i32 = arith.constant 0 : i32
    %c0_i32_0 = arith.constant 0 : i32
    %c0_i32_1 = arith.constant 0 : i32
    return %arg0, %arg1, %c0_i32, %c0_i32_0 : i32, i32, i32, i32
  }
}

module attributes {stable_mosaic.version = 11 : i64} {
  func.func @_dconv_relu_acc_kernel(%arg0: i32, %arg1: i32, %arg2: memref<1x1x24x128xbf16, #tpu.memory_space<vmem>>, %arg3: memref<1x1x24x128xbf16, #tpu.memory_space<vmem>>, %arg4: memref<1x1x24x128xbf16, #tpu.memory_space<vmem>>, %arg5: memref<3x3x128x128xbf16, #tpu.memory_space<vmem>>, %arg6: memref<1x128xf32, #tpu.memory_space<vmem>>, %arg7: memref<1x1x16x128xf32, #tpu.memory_space<vmem>>, %arg8: memref<1x1x16x128xbf16, #tpu.memory_space<vmem>>, %arg9: memref<1x1x16x128xf32, #tpu.memory_space<vmem>>) attributes {dimension_semantics = [#tpu.dimension_semantics<parallel>, #tpu.dimension_semantics<parallel>], iteration_bounds = array<i64: 2, 16>, scalar_prefetch = 0 : i64, scratch_operands = 0 : i64, tpu.core_type = #tpu.core_type<tc>, window_params = [{transform_indices = @transform_0, window_bounds = array<i64: 1, 1, 24, 128>}, {transform_indices = @transform_1, window_bounds = array<i64: 1, 1, 24, 128>}, {transform_indices = @transform_2, window_bounds = array<i64: 1, 1, 24, 128>}, {pipeline_mode = #tpu.pipeline_mode<synchronous>, transform_indices = @transform_3, window_bounds = array<i64: 3, 3, 128, 128>}, {pipeline_mode = #tpu.pipeline_mode<synchronous>, transform_indices = @transform_4, window_bounds = array<i64: 1, 128>}, {transform_indices = @transform_5, window_bounds = array<i64: 1, 1, 16, 128>}, {transform_indices = @transform_6, window_bounds = array<i64: 1, 1, 16, 128>}, {transform_indices = @transform_7, window_bounds = array<i64: 1, 1, 16, 128>}]} {
    %c0 = arith.constant 0 : index
    %c0_0 = arith.constant 0 : index
    %c0_1 = arith.constant 0 : index
    %c0_2 = arith.constant 0 : index
    %0 = vector.load %arg2[%c0, %c0_0, %c0_1, %c0_2] : memref<1x1x24x128xbf16, #tpu.memory_space<vmem>>, vector<1x1x24x128xbf16>
    %1 = vector.shape_cast %0 : vector<1x1x24x128xbf16> to vector<24x128xbf16>
    %c0_3 = arith.constant 0 : index
    %c0_4 = arith.constant 0 : index
    %c0_5 = arith.constant 0 : index
    %c0_6 = arith.constant 0 : index
    %2 = vector.load %arg3[%c0_3, %c0_4, %c0_5, %c0_6] : memref<1x1x24x128xbf16, #tpu.memory_space<vmem>>, vector<1x1x24x128xbf16>
    %3 = vector.shape_cast %2 : vector<1x1x24x128xbf16> to vector<24x128xbf16>
    %c0_7 = arith.constant 0 : index
    %c0_8 = arith.constant 0 : index
    %c0_9 = arith.constant 0 : index
    %c0_10 = arith.constant 0 : index
    %4 = vector.load %arg4[%c0_7, %c0_8, %c0_9, %c0_10] : memref<1x1x24x128xbf16, #tpu.memory_space<vmem>>, vector<1x1x24x128xbf16>
    %5 = vector.shape_cast %4 : vector<1x1x24x128xbf16> to vector<24x128xbf16>
    %cst = arith.constant 0.000000e+00 : f32
    %6 = vector.broadcast %cst : f32 to vector<16x128xf32>
    %7 = vector.extract_strided_slice %1 {offsets = [0, 0], sizes = [16, 128], strides = [1, 1]} : vector<24x128xbf16> to vector<16x128xbf16>
    %c0_11 = arith.constant 0 : index
    %c0_12 = arith.constant 0 : index
    %c0_13 = arith.constant 0 : index
    %c0_14 = arith.constant 0 : index
    %8 = vector.load %arg5[%c0_11, %c0_12, %c0_13, %c0_14] : memref<3x3x128x128xbf16, #tpu.memory_space<vmem>>, vector<1x1x128x128xbf16>
    %9 = vector.shape_cast %8 : vector<1x1x128x128xbf16> to vector<128x128xbf16>
    %cst_15 = arith.constant dense<0.000000e+00> : vector<16x128xf32>
    %10 = tpu.matmul %7, %9, %cst_15 {dimension_numbers = #tpu.dot_dimension_numbers<[1], [0], [0], [1], [0, 0, 1, 1], [], []>} : vector<16x128xbf16>, vector<128x128xbf16>, vector<16x128xf32> -> vector<16x128xf32>
    %11 = arith.addf %6, %10 : vector<16x128xf32>
    %12 = vector.extract_strided_slice %1 {offsets = [4, 0], sizes = [16, 128], strides = [1, 1]} : vector<24x128xbf16> to vector<16x128xbf16>
    %c0_16 = arith.constant 0 : index
    %c1 = arith.constant 1 : index
    %c0_17 = arith.constant 0 : index
    %c0_18 = arith.constant 0 : index
    %13 = vector.load %arg5[%c0_16, %c1, %c0_17, %c0_18] : memref<3x3x128x128xbf16, #tpu.memory_space<vmem>>, vector<1x1x128x128xbf16>
    %14 = vector.shape_cast %13 : vector<1x1x128x128xbf16> to vector<128x128xbf16>
    %cst_19 = arith.constant dense<0.000000e+00> : vector<16x128xf32>
    %15 = tpu.matmul %12, %14, %cst_19 {dimension_numbers = #tpu.dot_dimension_numbers<[1], [0], [0], [1], [0, 0, 1, 1], [], []>} : vector<16x128xbf16>, vector<128x128xbf16>, vector<16x128xf32> -> vector<16x128xf32>
    %16 = arith.addf %11, %15 : vector<16x128xf32>
    %17 = vector.extract_strided_slice %1 {offsets = [8, 0], sizes = [16, 128], strides = [1, 1]} : vector<24x128xbf16> to vector<16x128xbf16>
    %c0_20 = arith.constant 0 : index
    %c2 = arith.constant 2 : index
    %c0_21 = arith.constant 0 : index
    %c0_22 = arith.constant 0 : index
    %18 = vector.load %arg5[%c0_20, %c2, %c0_21, %c0_22] : memref<3x3x128x128xbf16, #tpu.memory_space<vmem>>, vector<1x1x128x128xbf16>
    %19 = vector.shape_cast %18 : vector<1x1x128x128xbf16> to vector<128x128xbf16>
    %cst_23 = arith.constant dense<0.000000e+00> : vector<16x128xf32>
    %20 = tpu.matmul %17, %19, %cst_23 {dimension_numbers = #tpu.dot_dimension_numbers<[1], [0], [0], [1], [0, 0, 1, 1], [], []>} : vector<16x128xbf16>, vector<128x128xbf16>, vector<16x128xf32> -> vector<16x128xf32>
    %21 = arith.addf %16, %20 : vector<16x128xf32>
    %22 = vector.extract_strided_slice %3 {offsets = [0, 0], sizes = [16, 128], strides = [1, 1]} : vector<24x128xbf16> to vector<16x128xbf16>
    %c1_24 = arith.constant 1 : index
    %c0_25 = arith.constant 0 : index
    %c0_26 = arith.constant 0 : index
    %c0_27 = arith.constant 0 : index
    %23 = vector.load %arg5[%c1_24, %c0_25, %c0_26, %c0_27] : memref<3x3x128x128xbf16, #tpu.memory_space<vmem>>, vector<1x1x128x128xbf16>
    %24 = vector.shape_cast %23 : vector<1x1x128x128xbf16> to vector<128x128xbf16>
    %cst_28 = arith.constant dense<0.000000e+00> : vector<16x128xf32>
    %25 = tpu.matmul %22, %24, %cst_28 {dimension_numbers = #tpu.dot_dimension_numbers<[1], [0], [0], [1], [0, 0, 1, 1], [], []>} : vector<16x128xbf16>, vector<128x128xbf16>, vector<16x128xf32> -> vector<16x128xf32>
    %26 = arith.addf %21, %25 : vector<16x128xf32>
    %27 = vector.extract_strided_slice %3 {offsets = [4, 0], sizes = [16, 128], strides = [1, 1]} : vector<24x128xbf16> to vector<16x128xbf16>
    %c1_29 = arith.constant 1 : index
    %c1_30 = arith.constant 1 : index
    %c0_31 = arith.constant 0 : index
    %c0_32 = arith.constant 0 : index
    %28 = vector.load %arg5[%c1_29, %c1_30, %c0_31, %c0_32] : memref<3x3x128x128xbf16, #tpu.memory_space<vmem>>, vector<1x1x128x128xbf16>
    %29 = vector.shape_cast %28 : vector<1x1x128x128xbf16> to vector<128x128xbf16>
    %cst_33 = arith.constant dense<0.000000e+00> : vector<16x128xf32>
    %30 = tpu.matmul %27, %29, %cst_33 {dimension_numbers = #tpu.dot_dimension_numbers<[1], [0], [0], [1], [0, 0, 1, 1], [], []>} : vector<16x128xbf16>, vector<128x128xbf16>, vector<16x128xf32> -> vector<16x128xf32>
    %31 = arith.addf %26, %30 : vector<16x128xf32>
    %32 = vector.extract_strided_slice %3 {offsets = [8, 0], sizes = [16, 128], strides = [1, 1]} : vector<24x128xbf16> to vector<16x128xbf16>
    %c1_34 = arith.constant 1 : index
    %c2_35 = arith.constant 2 : index
    %c0_36 = arith.constant 0 : index
    %c0_37 = arith.constant 0 : index
    %33 = vector.load %arg5[%c1_34, %c2_35, %c0_36, %c0_37] : memref<3x3x128x128xbf16, #tpu.memory_space<vmem>>, vector<1x1x128x128xbf16>
    %34 = vector.shape_cast %33 : vector<1x1x128x128xbf16> to vector<128x128xbf16>
    %cst_38 = arith.constant dense<0.000000e+00> : vector<16x128xf32>
    %35 = tpu.matmul %32, %34, %cst_38 {dimension_numbers = #tpu.dot_dimension_numbers<[1], [0], [0], [1], [0, 0, 1, 1], [], []>} : vector<16x128xbf16>, vector<128x128xbf16>, vector<16x128xf32> -> vector<16x128xf32>
    %36 = arith.addf %31, %35 : vector<16x128xf32>
    %37 = vector.extract_strided_slice %5 {offsets = [0, 0], sizes = [16, 128], strides = [1, 1]} : vector<24x128xbf16> to vector<16x128xbf16>
    %c2_39 = arith.constant 2 : index
    %c0_40 = arith.constant 0 : index
    %c0_41 = arith.constant 0 : index
    %c0_42 = arith.constant 0 : index
    %38 = vector.load %arg5[%c2_39, %c0_40, %c0_41, %c0_42] : memref<3x3x128x128xbf16, #tpu.memory_space<vmem>>, vector<1x1x128x128xbf16>
    %39 = vector.shape_cast %38 : vector<1x1x128x128xbf16> to vector<128x128xbf16>
    %cst_43 = arith.constant dense<0.000000e+00> : vector<16x128xf32>
    %40 = tpu.matmul %37, %39, %cst_43 {dimension_numbers = #tpu.dot_dimension_numbers<[1], [0], [0], [1], [0, 0, 1, 1], [], []>} : vector<16x128xbf16>, vector<128x128xbf16>, vector<16x128xf32> -> vector<16x128xf32>
    %41 = arith.addf %36, %40 : vector<16x128xf32>
    %42 = vector.extract_strided_slice %5 {offsets = [4, 0], sizes = [16, 128], strides = [1, 1]} : vector<24x128xbf16> to vector<16x128xbf16>
    %c2_44 = arith.constant 2 : index
    %c1_45 = arith.constant 1 : index
    %c0_46 = arith.constant 0 : index
    %c0_47 = arith.constant 0 : index
    %43 = vector.load %arg5[%c2_44, %c1_45, %c0_46, %c0_47] : memref<3x3x128x128xbf16, #tpu.memory_space<vmem>>, vector<1x1x128x128xbf16>
    %44 = vector.shape_cast %43 : vector<1x1x128x128xbf16> to vector<128x128xbf16>
    %cst_48 = arith.constant dense<0.000000e+00> : vector<16x128xf32>
    %45 = tpu.matmul %42, %44, %cst_48 {dimension_numbers = #tpu.dot_dimension_numbers<[1], [0], [0], [1], [0, 0, 1, 1], [], []>} : vector<16x128xbf16>, vector<128x128xbf16>, vector<16x128xf32> -> vector<16x128xf32>
    %46 = arith.addf %41, %45 : vector<16x128xf32>
    %47 = vector.extract_strided_slice %5 {offsets = [8, 0], sizes = [16, 128], strides = [1, 1]} : vector<24x128xbf16> to vector<16x128xbf16>
    %c2_49 = arith.constant 2 : index
    %c2_50 = arith.constant 2 : index
    %c0_51 = arith.constant 0 : index
    %c0_52 = arith.constant 0 : index
    %48 = vector.load %arg5[%c2_49, %c2_50, %c0_51, %c0_52] : memref<3x3x128x128xbf16, #tpu.memory_space<vmem>>, vector<1x1x128x128xbf16>
    %49 = vector.shape_cast %48 : vector<1x1x128x128xbf16> to vector<128x128xbf16>
    %cst_53 = arith.constant dense<0.000000e+00> : vector<16x128xf32>
    %50 = tpu.matmul %47, %49, %cst_53 {dimension_numbers = #tpu.dot_dimension_numbers<[1], [0], [0], [1], [0, 0, 1, 1], [], []>} : vector<16x128xbf16>, vector<128x128xbf16>, vector<16x128xf32> -> vector<16x128xf32>
    %51 = arith.addf %46, %50 : vector<16x128xf32>
    %c0_54 = arith.constant 0 : index
    %c0_55 = arith.constant 0 : index
    %52 = vector.load %arg6[%c0_54, %c0_55] : memref<1x128xf32, #tpu.memory_space<vmem>>, vector<1x128xf32>
    %53 = vector.broadcast %52 : vector<1x128xf32> to vector<16x128xf32>
    %54 = arith.addf %51, %53 : vector<16x128xf32>
    %cst_56 = arith.constant 0.000000e+00 : f32
    %55 = vector.broadcast %cst_56 : f32 to vector<16x128xf32>
    %56 = arith.maximumf %54, %55 : vector<16x128xf32>
    %57 = arith.truncf %56 : vector<16x128xf32> to vector<16x128xbf16>
    %c0_57 = arith.constant 0 : index
    %c0_58 = arith.constant 0 : index
    %c0_59 = arith.constant 0 : index
    %c0_60 = arith.constant 0 : index
    %58 = vector.load %arg8[%c0_57, %c0_58, %c0_59, %c0_60] : memref<1x1x16x128xbf16, #tpu.memory_space<vmem>>, vector<1x1x16x128xbf16>
    %59 = vector.shape_cast %58 : vector<1x1x16x128xbf16> to vector<16x128xbf16>
    %60 = vector.shape_cast %57 : vector<16x128xbf16> to vector<1x1x16x128xbf16>
    tpu.vector_store %arg8[%c0_57, %c0_58, %c0_59, %c0_60], %60 {strides = array<i32>} : memref<1x1x16x128xbf16, #tpu.memory_space<vmem>>, vector<1x1x16x128xbf16>,
    %c0_61 = arith.constant 0 : index
    %c0_62 = arith.constant 0 : index
    %c0_63 = arith.constant 0 : index
    %c0_64 = arith.constant 0 : index
    %61 = vector.load %arg7[%c0_61, %c0_62, %c0_63, %c0_64] : memref<1x1x16x128xf32, #tpu.memory_space<vmem>>, vector<1x1x16x128xf32>
    %62 = vector.shape_cast %61 : vector<1x1x16x128xf32> to vector<16x128xf32>
    %63 = arith.addf %62, %56 : vector<16x128xf32>
    %c0_65 = arith.constant 0 : index
    %c0_66 = arith.constant 0 : index
    %c0_67 = arith.constant 0 : index
    %c0_68 = arith.constant 0 : index
    %64 = vector.load %arg9[%c0_65, %c0_66, %c0_67, %c0_68] : memref<1x1x16x128xf32, #tpu.memory_space<vmem>>, vector<1x1x16x128xf32>
    %65 = vector.shape_cast %64 : vector<1x1x16x128xf32> to vector<16x128xf32>
    %66 = vector.shape_cast %63 : vector<16x128xf32> to vector<1x1x16x128xf32>
    tpu.vector_store %arg9[%c0_65, %c0_66, %c0_67, %c0_68], %66 {strides = array<i32>} : memref<1x1x16x128xf32, #tpu.memory_space<vmem>>, vector<1x1x16x128xf32>,
    return
  }
  func.func @transform_0(%arg0: i32, %arg1: i32) -> (i32, i32, i32, i32) {
    %c0_i32 = arith.constant 0 : i32
    %0 = arith.addi %arg1, %c0_i32 : i32
    %c0_i32_0 = arith.constant 0 : i32
    %c0_i32_1 = arith.constant 0 : i32
    %c0_i32_2 = arith.constant 0 : i32
    return %arg0, %0, %c0_i32_0, %c0_i32_1 : i32, i32, i32, i32
  }
  func.func @transform_1(%arg0: i32, %arg1: i32) -> (i32, i32, i32, i32) {
    %c4_i32 = arith.constant 4 : i32
    %0 = arith.addi %arg1, %c4_i32 : i32
    %c0_i32 = arith.constant 0 : i32
    %c0_i32_0 = arith.constant 0 : i32
    %c0_i32_1 = arith.constant 0 : i32
    return %arg0, %0, %c0_i32, %c0_i32_0 : i32, i32, i32, i32
  }
  func.func @transform_2(%arg0: i32, %arg1: i32) -> (i32, i32, i32, i32) {
    %c8_i32 = arith.constant 8 : i32
    %0 = arith.addi %arg1, %c8_i32 : i32
    %c0_i32 = arith.constant 0 : i32
    %c0_i32_0 = arith.constant 0 : i32
    %c0_i32_1 = arith.constant 0 : i32
    return %arg0, %0, %c0_i32, %c0_i32_0 : i32, i32, i32, i32
  }
  func.func @transform_3(%arg0: i32, %arg1: i32) -> (i32, i32, i32, i32) {
    %c0_i32 = arith.constant 0 : i32
    %c0_i32_0 = arith.constant 0 : i32
    %c0_i32_1 = arith.constant 0 : i32
    %c0_i32_2 = arith.constant 0 : i32
    %c0_i32_3 = arith.constant 0 : i32
    return %c0_i32, %c0_i32_0, %c0_i32_1, %c0_i32_2 : i32, i32, i32, i32
  }
  func.func @transform_4(%arg0: i32, %arg1: i32) -> (i32, i32) {
    %c0_i32 = arith.constant 0 : i32
    %c0_i32_0 = arith.constant 0 : i32
    %c0_i32_1 = arith.constant 0 : i32
    return %c0_i32, %c0_i32_0 : i32, i32
  }
  func.func @transform_5(%arg0: i32, %arg1: i32) -> (i32, i32, i32, i32) {
    %c0_i32 = arith.constant 0 : i32
    %c0_i32_0 = arith.constant 0 : i32
    %c0_i32_1 = arith.constant 0 : i32
    return %arg0, %arg1, %c0_i32, %c0_i32_0 : i32, i32, i32, i32
  }
  func.func @transform_6(%arg0: i32, %arg1: i32) -> (i32, i32, i32, i32) {
    %c0_i32 = arith.constant 0 : i32
    %c0_i32_0 = arith.constant 0 : i32
    %c0_i32_1 = arith.constant 0 : i32
    return %arg0, %arg1, %c0_i32, %c0_i32_0 : i32, i32, i32, i32
  }
  func.func @transform_7(%arg0: i32, %arg1: i32) -> (i32, i32, i32, i32) {
    %c0_i32 = arith.constant 0 : i32
    %c0_i32_0 = arith.constant 0 : i32
    %c0_i32_1 = arith.constant 0 : i32
    return %arg0, %arg1, %c0_i32, %c0_i32_0 : i32, i32, i32, i32
  }
}

module attributes {stable_mosaic.version = 11 : i64} {
  func.func @_dconv_relu_acc_kernel(%arg0: i32, %arg1: i32, %arg2: memref<1x1x20x128xbf16, #tpu.memory_space<vmem>>, %arg3: memref<1x1x20x128xbf16, #tpu.memory_space<vmem>>, %arg4: memref<1x1x20x128xbf16, #tpu.memory_space<vmem>>, %arg5: memref<3x3x128x128xbf16, #tpu.memory_space<vmem>>, %arg6: memref<1x128xf32, #tpu.memory_space<vmem>>, %arg7: memref<1x1x16x128xf32, #tpu.memory_space<vmem>>, %arg8: memref<1x1x16x128xbf16, #tpu.memory_space<vmem>>, %arg9: memref<1x1x16x128xf32, #tpu.memory_space<vmem>>) attributes {dimension_semantics = [#tpu.dimension_semantics<parallel>, #tpu.dimension_semantics<parallel>], iteration_bounds = array<i64: 2, 16>, scalar_prefetch = 0 : i64, scratch_operands = 0 : i64, tpu.core_type = #tpu.core_type<tc>, window_params = [{transform_indices = @transform_0, window_bounds = array<i64: 1, 1, 20, 128>}, {transform_indices = @transform_1, window_bounds = array<i64: 1, 1, 20, 128>}, {transform_indices = @transform_2, window_bounds = array<i64: 1, 1, 20, 128>}, {pipeline_mode = #tpu.pipeline_mode<synchronous>, transform_indices = @transform_3, window_bounds = array<i64: 3, 3, 128, 128>}, {pipeline_mode = #tpu.pipeline_mode<synchronous>, transform_indices = @transform_4, window_bounds = array<i64: 1, 128>}, {transform_indices = @transform_5, window_bounds = array<i64: 1, 1, 16, 128>}, {transform_indices = @transform_6, window_bounds = array<i64: 1, 1, 16, 128>}, {transform_indices = @transform_7, window_bounds = array<i64: 1, 1, 16, 128>}]} {
    %c0 = arith.constant 0 : index
    %c0_0 = arith.constant 0 : index
    %c0_1 = arith.constant 0 : index
    %c0_2 = arith.constant 0 : index
    %0 = vector.load %arg2[%c0, %c0_0, %c0_1, %c0_2] : memref<1x1x20x128xbf16, #tpu.memory_space<vmem>>, vector<1x1x20x128xbf16>
    %1 = vector.shape_cast %0 : vector<1x1x20x128xbf16> to vector<20x128xbf16>
    %c0_3 = arith.constant 0 : index
    %c0_4 = arith.constant 0 : index
    %c0_5 = arith.constant 0 : index
    %c0_6 = arith.constant 0 : index
    %2 = vector.load %arg3[%c0_3, %c0_4, %c0_5, %c0_6] : memref<1x1x20x128xbf16, #tpu.memory_space<vmem>>, vector<1x1x20x128xbf16>
    %3 = vector.shape_cast %2 : vector<1x1x20x128xbf16> to vector<20x128xbf16>
    %c0_7 = arith.constant 0 : index
    %c0_8 = arith.constant 0 : index
    %c0_9 = arith.constant 0 : index
    %c0_10 = arith.constant 0 : index
    %4 = vector.load %arg4[%c0_7, %c0_8, %c0_9, %c0_10] : memref<1x1x20x128xbf16, #tpu.memory_space<vmem>>, vector<1x1x20x128xbf16>
    %5 = vector.shape_cast %4 : vector<1x1x20x128xbf16> to vector<20x128xbf16>
    %cst = arith.constant 0.000000e+00 : f32
    %6 = vector.broadcast %cst : f32 to vector<16x128xf32>
    %7 = vector.extract_strided_slice %1 {offsets = [0, 0], sizes = [16, 128], strides = [1, 1]} : vector<20x128xbf16> to vector<16x128xbf16>
    %c0_11 = arith.constant 0 : index
    %c0_12 = arith.constant 0 : index
    %c0_13 = arith.constant 0 : index
    %c0_14 = arith.constant 0 : index
    %8 = vector.load %arg5[%c0_11, %c0_12, %c0_13, %c0_14] : memref<3x3x128x128xbf16, #tpu.memory_space<vmem>>, vector<1x1x128x128xbf16>
    %9 = vector.shape_cast %8 : vector<1x1x128x128xbf16> to vector<128x128xbf16>
    %cst_15 = arith.constant dense<0.000000e+00> : vector<16x128xf32>
    %10 = tpu.matmul %7, %9, %cst_15 {dimension_numbers = #tpu.dot_dimension_numbers<[1], [0], [0], [1], [0, 0, 1, 1], [], []>} : vector<16x128xbf16>, vector<128x128xbf16>, vector<16x128xf32> -> vector<16x128xf32>
    %11 = arith.addf %6, %10 : vector<16x128xf32>
    %12 = vector.extract_strided_slice %1 {offsets = [2, 0], sizes = [16, 128], strides = [1, 1]} : vector<20x128xbf16> to vector<16x128xbf16>
    %c0_16 = arith.constant 0 : index
    %c1 = arith.constant 1 : index
    %c0_17 = arith.constant 0 : index
    %c0_18 = arith.constant 0 : index
    %13 = vector.load %arg5[%c0_16, %c1, %c0_17, %c0_18] : memref<3x3x128x128xbf16, #tpu.memory_space<vmem>>, vector<1x1x128x128xbf16>
    %14 = vector.shape_cast %13 : vector<1x1x128x128xbf16> to vector<128x128xbf16>
    %cst_19 = arith.constant dense<0.000000e+00> : vector<16x128xf32>
    %15 = tpu.matmul %12, %14, %cst_19 {dimension_numbers = #tpu.dot_dimension_numbers<[1], [0], [0], [1], [0, 0, 1, 1], [], []>} : vector<16x128xbf16>, vector<128x128xbf16>, vector<16x128xf32> -> vector<16x128xf32>
    %16 = arith.addf %11, %15 : vector<16x128xf32>
    %17 = vector.extract_strided_slice %1 {offsets = [4, 0], sizes = [16, 128], strides = [1, 1]} : vector<20x128xbf16> to vector<16x128xbf16>
    %c0_20 = arith.constant 0 : index
    %c2 = arith.constant 2 : index
    %c0_21 = arith.constant 0 : index
    %c0_22 = arith.constant 0 : index
    %18 = vector.load %arg5[%c0_20, %c2, %c0_21, %c0_22] : memref<3x3x128x128xbf16, #tpu.memory_space<vmem>>, vector<1x1x128x128xbf16>
    %19 = vector.shape_cast %18 : vector<1x1x128x128xbf16> to vector<128x128xbf16>
    %cst_23 = arith.constant dense<0.000000e+00> : vector<16x128xf32>
    %20 = tpu.matmul %17, %19, %cst_23 {dimension_numbers = #tpu.dot_dimension_numbers<[1], [0], [0], [1], [0, 0, 1, 1], [], []>} : vector<16x128xbf16>, vector<128x128xbf16>, vector<16x128xf32> -> vector<16x128xf32>
    %21 = arith.addf %16, %20 : vector<16x128xf32>
    %22 = vector.extract_strided_slice %3 {offsets = [0, 0], sizes = [16, 128], strides = [1, 1]} : vector<20x128xbf16> to vector<16x128xbf16>
    %c1_24 = arith.constant 1 : index
    %c0_25 = arith.constant 0 : index
    %c0_26 = arith.constant 0 : index
    %c0_27 = arith.constant 0 : index
    %23 = vector.load %arg5[%c1_24, %c0_25, %c0_26, %c0_27] : memref<3x3x128x128xbf16, #tpu.memory_space<vmem>>, vector<1x1x128x128xbf16>
    %24 = vector.shape_cast %23 : vector<1x1x128x128xbf16> to vector<128x128xbf16>
    %cst_28 = arith.constant dense<0.000000e+00> : vector<16x128xf32>
    %25 = tpu.matmul %22, %24, %cst_28 {dimension_numbers = #tpu.dot_dimension_numbers<[1], [0], [0], [1], [0, 0, 1, 1], [], []>} : vector<16x128xbf16>, vector<128x128xbf16>, vector<16x128xf32> -> vector<16x128xf32>
    %26 = arith.addf %21, %25 : vector<16x128xf32>
    %27 = vector.extract_strided_slice %3 {offsets = [2, 0], sizes = [16, 128], strides = [1, 1]} : vector<20x128xbf16> to vector<16x128xbf16>
    %c1_29 = arith.constant 1 : index
    %c1_30 = arith.constant 1 : index
    %c0_31 = arith.constant 0 : index
    %c0_32 = arith.constant 0 : index
    %28 = vector.load %arg5[%c1_29, %c1_30, %c0_31, %c0_32] : memref<3x3x128x128xbf16, #tpu.memory_space<vmem>>, vector<1x1x128x128xbf16>
    %29 = vector.shape_cast %28 : vector<1x1x128x128xbf16> to vector<128x128xbf16>
    %cst_33 = arith.constant dense<0.000000e+00> : vector<16x128xf32>
    %30 = tpu.matmul %27, %29, %cst_33 {dimension_numbers = #tpu.dot_dimension_numbers<[1], [0], [0], [1], [0, 0, 1, 1], [], []>} : vector<16x128xbf16>, vector<128x128xbf16>, vector<16x128xf32> -> vector<16x128xf32>
    %31 = arith.addf %26, %30 : vector<16x128xf32>
    %32 = vector.extract_strided_slice %3 {offsets = [4, 0], sizes = [16, 128], strides = [1, 1]} : vector<20x128xbf16> to vector<16x128xbf16>
    %c1_34 = arith.constant 1 : index
    %c2_35 = arith.constant 2 : index
    %c0_36 = arith.constant 0 : index
    %c0_37 = arith.constant 0 : index
    %33 = vector.load %arg5[%c1_34, %c2_35, %c0_36, %c0_37] : memref<3x3x128x128xbf16, #tpu.memory_space<vmem>>, vector<1x1x128x128xbf16>
    %34 = vector.shape_cast %33 : vector<1x1x128x128xbf16> to vector<128x128xbf16>
    %cst_38 = arith.constant dense<0.000000e+00> : vector<16x128xf32>
    %35 = tpu.matmul %32, %34, %cst_38 {dimension_numbers = #tpu.dot_dimension_numbers<[1], [0], [0], [1], [0, 0, 1, 1], [], []>} : vector<16x128xbf16>, vector<128x128xbf16>, vector<16x128xf32> -> vector<16x128xf32>
    %36 = arith.addf %31, %35 : vector<16x128xf32>
    %37 = vector.extract_strided_slice %5 {offsets = [0, 0], sizes = [16, 128], strides = [1, 1]} : vector<20x128xbf16> to vector<16x128xbf16>
    %c2_39 = arith.constant 2 : index
    %c0_40 = arith.constant 0 : index
    %c0_41 = arith.constant 0 : index
    %c0_42 = arith.constant 0 : index
    %38 = vector.load %arg5[%c2_39, %c0_40, %c0_41, %c0_42] : memref<3x3x128x128xbf16, #tpu.memory_space<vmem>>, vector<1x1x128x128xbf16>
    %39 = vector.shape_cast %38 : vector<1x1x128x128xbf16> to vector<128x128xbf16>
    %cst_43 = arith.constant dense<0.000000e+00> : vector<16x128xf32>
    %40 = tpu.matmul %37, %39, %cst_43 {dimension_numbers = #tpu.dot_dimension_numbers<[1], [0], [0], [1], [0, 0, 1, 1], [], []>} : vector<16x128xbf16>, vector<128x128xbf16>, vector<16x128xf32> -> vector<16x128xf32>
    %41 = arith.addf %36, %40 : vector<16x128xf32>
    %42 = vector.extract_strided_slice %5 {offsets = [2, 0], sizes = [16, 128], strides = [1, 1]} : vector<20x128xbf16> to vector<16x128xbf16>
    %c2_44 = arith.constant 2 : index
    %c1_45 = arith.constant 1 : index
    %c0_46 = arith.constant 0 : index
    %c0_47 = arith.constant 0 : index
    %43 = vector.load %arg5[%c2_44, %c1_45, %c0_46, %c0_47] : memref<3x3x128x128xbf16, #tpu.memory_space<vmem>>, vector<1x1x128x128xbf16>
    %44 = vector.shape_cast %43 : vector<1x1x128x128xbf16> to vector<128x128xbf16>
    %cst_48 = arith.constant dense<0.000000e+00> : vector<16x128xf32>
    %45 = tpu.matmul %42, %44, %cst_48 {dimension_numbers = #tpu.dot_dimension_numbers<[1], [0], [0], [1], [0, 0, 1, 1], [], []>} : vector<16x128xbf16>, vector<128x128xbf16>, vector<16x128xf32> -> vector<16x128xf32>
    %46 = arith.addf %41, %45 : vector<16x128xf32>
    %47 = vector.extract_strided_slice %5 {offsets = [4, 0], sizes = [16, 128], strides = [1, 1]} : vector<20x128xbf16> to vector<16x128xbf16>
    %c2_49 = arith.constant 2 : index
    %c2_50 = arith.constant 2 : index
    %c0_51 = arith.constant 0 : index
    %c0_52 = arith.constant 0 : index
    %48 = vector.load %arg5[%c2_49, %c2_50, %c0_51, %c0_52] : memref<3x3x128x128xbf16, #tpu.memory_space<vmem>>, vector<1x1x128x128xbf16>
    %49 = vector.shape_cast %48 : vector<1x1x128x128xbf16> to vector<128x128xbf16>
    %cst_53 = arith.constant dense<0.000000e+00> : vector<16x128xf32>
    %50 = tpu.matmul %47, %49, %cst_53 {dimension_numbers = #tpu.dot_dimension_numbers<[1], [0], [0], [1], [0, 0, 1, 1], [], []>} : vector<16x128xbf16>, vector<128x128xbf16>, vector<16x128xf32> -> vector<16x128xf32>
    %51 = arith.addf %46, %50 : vector<16x128xf32>
    %c0_54 = arith.constant 0 : index
    %c0_55 = arith.constant 0 : index
    %52 = vector.load %arg6[%c0_54, %c0_55] : memref<1x128xf32, #tpu.memory_space<vmem>>, vector<1x128xf32>
    %53 = vector.broadcast %52 : vector<1x128xf32> to vector<16x128xf32>
    %54 = arith.addf %51, %53 : vector<16x128xf32>
    %cst_56 = arith.constant 0.000000e+00 : f32
    %55 = vector.broadcast %cst_56 : f32 to vector<16x128xf32>
    %56 = arith.maximumf %54, %55 : vector<16x128xf32>
    %57 = arith.truncf %56 : vector<16x128xf32> to vector<16x128xbf16>
    %c0_57 = arith.constant 0 : index
    %c0_58 = arith.constant 0 : index
    %c0_59 = arith.constant 0 : index
    %c0_60 = arith.constant 0 : index
    %58 = vector.load %arg8[%c0_57, %c0_58, %c0_59, %c0_60] : memref<1x1x16x128xbf16, #tpu.memory_space<vmem>>, vector<1x1x16x128xbf16>
    %59 = vector.shape_cast %58 : vector<1x1x16x128xbf16> to vector<16x128xbf16>
    %60 = vector.shape_cast %57 : vector<16x128xbf16> to vector<1x1x16x128xbf16>
    tpu.vector_store %arg8[%c0_57, %c0_58, %c0_59, %c0_60], %60 {strides = array<i32>} : memref<1x1x16x128xbf16, #tpu.memory_space<vmem>>, vector<1x1x16x128xbf16>,
    %c0_61 = arith.constant 0 : index
    %c0_62 = arith.constant 0 : index
    %c0_63 = arith.constant 0 : index
    %c0_64 = arith.constant 0 : index
    %61 = vector.load %arg7[%c0_61, %c0_62, %c0_63, %c0_64] : memref<1x1x16x128xf32, #tpu.memory_space<vmem>>, vector<1x1x16x128xf32>
    %62 = vector.shape_cast %61 : vector<1x1x16x128xf32> to vector<16x128xf32>
    %63 = arith.addf %62, %56 : vector<16x128xf32>
    %c0_65 = arith.constant 0 : index
    %c0_66 = arith.constant 0 : index
    %c0_67 = arith.constant 0 : index
    %c0_68 = arith.constant 0 : index
    %64 = vector.load %arg9[%c0_65, %c0_66, %c0_67, %c0_68] : memref<1x1x16x128xf32, #tpu.memory_space<vmem>>, vector<1x1x16x128xf32>
    %65 = vector.shape_cast %64 : vector<1x1x16x128xf32> to vector<16x128xf32>
    %66 = vector.shape_cast %63 : vector<16x128xf32> to vector<1x1x16x128xf32>
    tpu.vector_store %arg9[%c0_65, %c0_66, %c0_67, %c0_68], %66 {strides = array<i32>} : memref<1x1x16x128xf32, #tpu.memory_space<vmem>>, vector<1x1x16x128xf32>,
    return
  }
  func.func @transform_0(%arg0: i32, %arg1: i32) -> (i32, i32, i32, i32) {
    %c0_i32 = arith.constant 0 : i32
    %0 = arith.addi %arg1, %c0_i32 : i32
    %c0_i32_0 = arith.constant 0 : i32
    %c0_i32_1 = arith.constant 0 : i32
    %c0_i32_2 = arith.constant 0 : i32
    return %arg0, %0, %c0_i32_0, %c0_i32_1 : i32, i32, i32, i32
  }
  func.func @transform_1(%arg0: i32, %arg1: i32) -> (i32, i32, i32, i32) {
    %c2_i32 = arith.constant 2 : i32
    %0 = arith.addi %arg1, %c2_i32 : i32
    %c0_i32 = arith.constant 0 : i32
    %c0_i32_0 = arith.constant 0 : i32
    %c0_i32_1 = arith.constant 0 : i32
    return %arg0, %0, %c0_i32, %c0_i32_0 : i32, i32, i32, i32
  }
  func.func @transform_2(%arg0: i32, %arg1: i32) -> (i32, i32, i32, i32) {
    %c4_i32 = arith.constant 4 : i32
    %0 = arith.addi %arg1, %c4_i32 : i32
    %c0_i32 = arith.constant 0 : i32
    %c0_i32_0 = arith.constant 0 : i32
    %c0_i32_1 = arith.constant 0 : i32
    return %arg0, %0, %c0_i32, %c0_i32_0 : i32, i32, i32, i32
  }
  func.func @transform_3(%arg0: i32, %arg1: i32) -> (i32, i32, i32, i32) {
    %c0_i32 = arith.constant 0 : i32
    %c0_i32_0 = arith.constant 0 : i32
    %c0_i32_1 = arith.constant 0 : i32
    %c0_i32_2 = arith.constant 0 : i32
    %c0_i32_3 = arith.constant 0 : i32
    return %c0_i32, %c0_i32_0, %c0_i32_1, %c0_i32_2 : i32, i32, i32, i32
  }
  func.func @transform_4(%arg0: i32, %arg1: i32) -> (i32, i32) {
    %c0_i32 = arith.constant 0 : i32
    %c0_i32_0 = arith.constant 0 : i32
    %c0_i32_1 = arith.constant 0 : i32
    return %c0_i32, %c0_i32_0 : i32, i32
  }
  func.func @transform_5(%arg0: i32, %arg1: i32) -> (i32, i32, i32, i32) {
    %c0_i32 = arith.constant 0 : i32
    %c0_i32_0 = arith.constant 0 : i32
    %c0_i32_1 = arith.constant 0 : i32
    return %arg0, %arg1, %c0_i32, %c0_i32_0 : i32, i32, i32, i32
  }
  func.func @transform_6(%arg0: i32, %arg1: i32) -> (i32, i32, i32, i32) {
    %c0_i32 = arith.constant 0 : i32
    %c0_i32_0 = arith.constant 0 : i32
    %c0_i32_1 = arith.constant 0 : i32
    return %arg0, %arg1, %c0_i32, %c0_i32_0 : i32, i32, i32, i32
  }
  func.func @transform_7(%arg0: i32, %arg1: i32) -> (i32, i32, i32, i32) {
    %c0_i32 = arith.constant 0 : i32
    %c0_i32_0 = arith.constant 0 : i32
    %c0_i32_1 = arith.constant 0 : i32
    return %arg0, %arg1, %c0_i32, %c0_i32_0 : i32, i32, i32, i32
  }
}

module attributes {stable_mosaic.version = 11 : i64} {
  func.func @_dconv_relu_acc_kernel(%arg0: i32, %arg1: i32, %arg2: memref<1x1x32x128xbf16, #tpu.memory_space<vmem>>, %arg3: memref<1x1x32x128xbf16, #tpu.memory_space<vmem>>, %arg4: memref<1x1x32x128xbf16, #tpu.memory_space<vmem>>, %arg5: memref<3x3x128x128xbf16, #tpu.memory_space<vmem>>, %arg6: memref<1x128xf32, #tpu.memory_space<vmem>>, %arg7: memref<1x1x16x128xf32, #tpu.memory_space<vmem>>, %arg8: memref<1x1x16x128xbf16, #tpu.memory_space<vmem>>, %arg9: memref<1x1x16x128xf32, #tpu.memory_space<vmem>>) attributes {dimension_semantics = [#tpu.dimension_semantics<parallel>, #tpu.dimension_semantics<parallel>], iteration_bounds = array<i64: 2, 16>, scalar_prefetch = 0 : i64, scratch_operands = 0 : i64, tpu.core_type = #tpu.core_type<tc>, window_params = [{transform_indices = @transform_0, window_bounds = array<i64: 1, 1, 32, 128>}, {transform_indices = @transform_1, window_bounds = array<i64: 1, 1, 32, 128>}, {transform_indices = @transform_2, window_bounds = array<i64: 1, 1, 32, 128>}, {pipeline_mode = #tpu.pipeline_mode<synchronous>, transform_indices = @transform_3, window_bounds = array<i64: 3, 3, 128, 128>}, {pipeline_mode = #tpu.pipeline_mode<synchronous>, transform_indices = @transform_4, window_bounds = array<i64: 1, 128>}, {transform_indices = @transform_5, window_bounds = array<i64: 1, 1, 16, 128>}, {transform_indices = @transform_6, window_bounds = array<i64: 1, 1, 16, 128>}, {transform_indices = @transform_7, window_bounds = array<i64: 1, 1, 16, 128>}]} {
    %c0 = arith.constant 0 : index
    %c0_0 = arith.constant 0 : index
    %c0_1 = arith.constant 0 : index
    %c0_2 = arith.constant 0 : index
    %0 = vector.load %arg2[%c0, %c0_0, %c0_1, %c0_2] : memref<1x1x32x128xbf16, #tpu.memory_space<vmem>>, vector<1x1x32x128xbf16>
    %1 = vector.shape_cast %0 : vector<1x1x32x128xbf16> to vector<32x128xbf16>
    %c0_3 = arith.constant 0 : index
    %c0_4 = arith.constant 0 : index
    %c0_5 = arith.constant 0 : index
    %c0_6 = arith.constant 0 : index
    %2 = vector.load %arg3[%c0_3, %c0_4, %c0_5, %c0_6] : memref<1x1x32x128xbf16, #tpu.memory_space<vmem>>, vector<1x1x32x128xbf16>
    %3 = vector.shape_cast %2 : vector<1x1x32x128xbf16> to vector<32x128xbf16>
    %c0_7 = arith.constant 0 : index
    %c0_8 = arith.constant 0 : index
    %c0_9 = arith.constant 0 : index
    %c0_10 = arith.constant 0 : index
    %4 = vector.load %arg4[%c0_7, %c0_8, %c0_9, %c0_10] : memref<1x1x32x128xbf16, #tpu.memory_space<vmem>>, vector<1x1x32x128xbf16>
    %5 = vector.shape_cast %4 : vector<1x1x32x128xbf16> to vector<32x128xbf16>
    %cst = arith.constant 0.000000e+00 : f32
    %6 = vector.broadcast %cst : f32 to vector<16x128xf32>
    %7 = vector.extract_strided_slice %1 {offsets = [0, 0], sizes = [16, 128], strides = [1, 1]} : vector<32x128xbf16> to vector<16x128xbf16>
    %c0_11 = arith.constant 0 : index
    %c0_12 = arith.constant 0 : index
    %c0_13 = arith.constant 0 : index
    %c0_14 = arith.constant 0 : index
    %8 = vector.load %arg5[%c0_11, %c0_12, %c0_13, %c0_14] : memref<3x3x128x128xbf16, #tpu.memory_space<vmem>>, vector<1x1x128x128xbf16>
    %9 = vector.shape_cast %8 : vector<1x1x128x128xbf16> to vector<128x128xbf16>
    %cst_15 = arith.constant dense<0.000000e+00> : vector<16x128xf32>
    %10 = tpu.matmul %7, %9, %cst_15 {dimension_numbers = #tpu.dot_dimension_numbers<[1], [0], [0], [1], [0, 0, 1, 1], [], []>} : vector<16x128xbf16>, vector<128x128xbf16>, vector<16x128xf32> -> vector<16x128xf32>
    %11 = arith.addf %6, %10 : vector<16x128xf32>
    %12 = vector.extract_strided_slice %1 {offsets = [8, 0], sizes = [16, 128], strides = [1, 1]} : vector<32x128xbf16> to vector<16x128xbf16>
    %c0_16 = arith.constant 0 : index
    %c1 = arith.constant 1 : index
    %c0_17 = arith.constant 0 : index
    %c0_18 = arith.constant 0 : index
    %13 = vector.load %arg5[%c0_16, %c1, %c0_17, %c0_18] : memref<3x3x128x128xbf16, #tpu.memory_space<vmem>>, vector<1x1x128x128xbf16>
    %14 = vector.shape_cast %13 : vector<1x1x128x128xbf16> to vector<128x128xbf16>
    %cst_19 = arith.constant dense<0.000000e+00> : vector<16x128xf32>
    %15 = tpu.matmul %12, %14, %cst_19 {dimension_numbers = #tpu.dot_dimension_numbers<[1], [0], [0], [1], [0, 0, 1, 1], [], []>} : vector<16x128xbf16>, vector<128x128xbf16>, vector<16x128xf32> -> vector<16x128xf32>
    %16 = arith.addf %11, %15 : vector<16x128xf32>
    %17 = vector.extract_strided_slice %1 {offsets = [16, 0], sizes = [16, 128], strides = [1, 1]} : vector<32x128xbf16> to vector<16x128xbf16>
    %c0_20 = arith.constant 0 : index
    %c2 = arith.constant 2 : index
    %c0_21 = arith.constant 0 : index
    %c0_22 = arith.constant 0 : index
    %18 = vector.load %arg5[%c0_20, %c2, %c0_21, %c0_22] : memref<3x3x128x128xbf16, #tpu.memory_space<vmem>>, vector<1x1x128x128xbf16>
    %19 = vector.shape_cast %18 : vector<1x1x128x128xbf16> to vector<128x128xbf16>
    %cst_23 = arith.constant dense<0.000000e+00> : vector<16x128xf32>
    %20 = tpu.matmul %17, %19, %cst_23 {dimension_numbers = #tpu.dot_dimension_numbers<[1], [0], [0], [1], [0, 0, 1, 1], [], []>} : vector<16x128xbf16>, vector<128x128xbf16>, vector<16x128xf32> -> vector<16x128xf32>
    %21 = arith.addf %16, %20 : vector<16x128xf32>
    %22 = vector.extract_strided_slice %3 {offsets = [0, 0], sizes = [16, 128], strides = [1, 1]} : vector<32x128xbf16> to vector<16x128xbf16>
    %c1_24 = arith.constant 1 : index
    %c0_25 = arith.constant 0 : index
    %c0_26 = arith.constant 0 : index
    %c0_27 = arith.constant 0 : index
    %23 = vector.load %arg5[%c1_24, %c0_25, %c0_26, %c0_27] : memref<3x3x128x128xbf16, #tpu.memory_space<vmem>>, vector<1x1x128x128xbf16>
    %24 = vector.shape_cast %23 : vector<1x1x128x128xbf16> to vector<128x128xbf16>
    %cst_28 = arith.constant dense<0.000000e+00> : vector<16x128xf32>
    %25 = tpu.matmul %22, %24, %cst_28 {dimension_numbers = #tpu.dot_dimension_numbers<[1], [0], [0], [1], [0, 0, 1, 1], [], []>} : vector<16x128xbf16>, vector<128x128xbf16>, vector<16x128xf32> -> vector<16x128xf32>
    %26 = arith.addf %21, %25 : vector<16x128xf32>
    %27 = vector.extract_strided_slice %3 {offsets = [8, 0], sizes = [16, 128], strides = [1, 1]} : vector<32x128xbf16> to vector<16x128xbf16>
    %c1_29 = arith.constant 1 : index
    %c1_30 = arith.constant 1 : index
    %c0_31 = arith.constant 0 : index
    %c0_32 = arith.constant 0 : index
    %28 = vector.load %arg5[%c1_29, %c1_30, %c0_31, %c0_32] : memref<3x3x128x128xbf16, #tpu.memory_space<vmem>>, vector<1x1x128x128xbf16>
    %29 = vector.shape_cast %28 : vector<1x1x128x128xbf16> to vector<128x128xbf16>
    %cst_33 = arith.constant dense<0.000000e+00> : vector<16x128xf32>
    %30 = tpu.matmul %27, %29, %cst_33 {dimension_numbers = #tpu.dot_dimension_numbers<[1], [0], [0], [1], [0, 0, 1, 1], [], []>} : vector<16x128xbf16>, vector<128x128xbf16>, vector<16x128xf32> -> vector<16x128xf32>
    %31 = arith.addf %26, %30 : vector<16x128xf32>
    %32 = vector.extract_strided_slice %3 {offsets = [16, 0], sizes = [16, 128], strides = [1, 1]} : vector<32x128xbf16> to vector<16x128xbf16>
    %c1_34 = arith.constant 1 : index
    %c2_35 = arith.constant 2 : index
    %c0_36 = arith.constant 0 : index
    %c0_37 = arith.constant 0 : index
    %33 = vector.load %arg5[%c1_34, %c2_35, %c0_36, %c0_37] : memref<3x3x128x128xbf16, #tpu.memory_space<vmem>>, vector<1x1x128x128xbf16>
    %34 = vector.shape_cast %33 : vector<1x1x128x128xbf16> to vector<128x128xbf16>
    %cst_38 = arith.constant dense<0.000000e+00> : vector<16x128xf32>
    %35 = tpu.matmul %32, %34, %cst_38 {dimension_numbers = #tpu.dot_dimension_numbers<[1], [0], [0], [1], [0, 0, 1, 1], [], []>} : vector<16x128xbf16>, vector<128x128xbf16>, vector<16x128xf32> -> vector<16x128xf32>
    %36 = arith.addf %31, %35 : vector<16x128xf32>
    %37 = vector.extract_strided_slice %5 {offsets = [0, 0], sizes = [16, 128], strides = [1, 1]} : vector<32x128xbf16> to vector<16x128xbf16>
    %c2_39 = arith.constant 2 : index
    %c0_40 = arith.constant 0 : index
    %c0_41 = arith.constant 0 : index
    %c0_42 = arith.constant 0 : index
    %38 = vector.load %arg5[%c2_39, %c0_40, %c0_41, %c0_42] : memref<3x3x128x128xbf16, #tpu.memory_space<vmem>>, vector<1x1x128x128xbf16>
    %39 = vector.shape_cast %38 : vector<1x1x128x128xbf16> to vector<128x128xbf16>
    %cst_43 = arith.constant dense<0.000000e+00> : vector<16x128xf32>
    %40 = tpu.matmul %37, %39, %cst_43 {dimension_numbers = #tpu.dot_dimension_numbers<[1], [0], [0], [1], [0, 0, 1, 1], [], []>} : vector<16x128xbf16>, vector<128x128xbf16>, vector<16x128xf32> -> vector<16x128xf32>
    %41 = arith.addf %36, %40 : vector<16x128xf32>
    %42 = vector.extract_strided_slice %5 {offsets = [8, 0], sizes = [16, 128], strides = [1, 1]} : vector<32x128xbf16> to vector<16x128xbf16>
    %c2_44 = arith.constant 2 : index
    %c1_45 = arith.constant 1 : index
    %c0_46 = arith.constant 0 : index
    %c0_47 = arith.constant 0 : index
    %43 = vector.load %arg5[%c2_44, %c1_45, %c0_46, %c0_47] : memref<3x3x128x128xbf16, #tpu.memory_space<vmem>>, vector<1x1x128x128xbf16>
    %44 = vector.shape_cast %43 : vector<1x1x128x128xbf16> to vector<128x128xbf16>
    %cst_48 = arith.constant dense<0.000000e+00> : vector<16x128xf32>
    %45 = tpu.matmul %42, %44, %cst_48 {dimension_numbers = #tpu.dot_dimension_numbers<[1], [0], [0], [1], [0, 0, 1, 1], [], []>} : vector<16x128xbf16>, vector<128x128xbf16>, vector<16x128xf32> -> vector<16x128xf32>
    %46 = arith.addf %41, %45 : vector<16x128xf32>
    %47 = vector.extract_strided_slice %5 {offsets = [16, 0], sizes = [16, 128], strides = [1, 1]} : vector<32x128xbf16> to vector<16x128xbf16>
    %c2_49 = arith.constant 2 : index
    %c2_50 = arith.constant 2 : index
    %c0_51 = arith.constant 0 : index
    %c0_52 = arith.constant 0 : index
    %48 = vector.load %arg5[%c2_49, %c2_50, %c0_51, %c0_52] : memref<3x3x128x128xbf16, #tpu.memory_space<vmem>>, vector<1x1x128x128xbf16>
    %49 = vector.shape_cast %48 : vector<1x1x128x128xbf16> to vector<128x128xbf16>
    %cst_53 = arith.constant dense<0.000000e+00> : vector<16x128xf32>
    %50 = tpu.matmul %47, %49, %cst_53 {dimension_numbers = #tpu.dot_dimension_numbers<[1], [0], [0], [1], [0, 0, 1, 1], [], []>} : vector<16x128xbf16>, vector<128x128xbf16>, vector<16x128xf32> -> vector<16x128xf32>
    %51 = arith.addf %46, %50 : vector<16x128xf32>
    %c0_54 = arith.constant 0 : index
    %c0_55 = arith.constant 0 : index
    %52 = vector.load %arg6[%c0_54, %c0_55] : memref<1x128xf32, #tpu.memory_space<vmem>>, vector<1x128xf32>
    %53 = vector.broadcast %52 : vector<1x128xf32> to vector<16x128xf32>
    %54 = arith.addf %51, %53 : vector<16x128xf32>
    %cst_56 = arith.constant 0.000000e+00 : f32
    %55 = vector.broadcast %cst_56 : f32 to vector<16x128xf32>
    %56 = arith.maximumf %54, %55 : vector<16x128xf32>
    %57 = arith.truncf %56 : vector<16x128xf32> to vector<16x128xbf16>
    %c0_57 = arith.constant 0 : index
    %c0_58 = arith.constant 0 : index
    %c0_59 = arith.constant 0 : index
    %c0_60 = arith.constant 0 : index
    %58 = vector.load %arg8[%c0_57, %c0_58, %c0_59, %c0_60] : memref<1x1x16x128xbf16, #tpu.memory_space<vmem>>, vector<1x1x16x128xbf16>
    %59 = vector.shape_cast %58 : vector<1x1x16x128xbf16> to vector<16x128xbf16>
    %60 = vector.shape_cast %57 : vector<16x128xbf16> to vector<1x1x16x128xbf16>
    tpu.vector_store %arg8[%c0_57, %c0_58, %c0_59, %c0_60], %60 {strides = array<i32>} : memref<1x1x16x128xbf16, #tpu.memory_space<vmem>>, vector<1x1x16x128xbf16>,
    %c0_61 = arith.constant 0 : index
    %c0_62 = arith.constant 0 : index
    %c0_63 = arith.constant 0 : index
    %c0_64 = arith.constant 0 : index
    %61 = vector.load %arg7[%c0_61, %c0_62, %c0_63, %c0_64] : memref<1x1x16x128xf32, #tpu.memory_space<vmem>>, vector<1x1x16x128xf32>
    %62 = vector.shape_cast %61 : vector<1x1x16x128xf32> to vector<16x128xf32>
    %63 = arith.addf %62, %56 : vector<16x128xf32>
    %c0_65 = arith.constant 0 : index
    %c0_66 = arith.constant 0 : index
    %c0_67 = arith.constant 0 : index
    %c0_68 = arith.constant 0 : index
    %64 = vector.load %arg9[%c0_65, %c0_66, %c0_67, %c0_68] : memref<1x1x16x128xf32, #tpu.memory_space<vmem>>, vector<1x1x16x128xf32>
    %65 = vector.shape_cast %64 : vector<1x1x16x128xf32> to vector<16x128xf32>
    %66 = vector.shape_cast %63 : vector<16x128xf32> to vector<1x1x16x128xf32>
    tpu.vector_store %arg9[%c0_65, %c0_66, %c0_67, %c0_68], %66 {strides = array<i32>} : memref<1x1x16x128xf32, #tpu.memory_space<vmem>>, vector<1x1x16x128xf32>,
    return
  }
  func.func @transform_0(%arg0: i32, %arg1: i32) -> (i32, i32, i32, i32) {
    %c0_i32 = arith.constant 0 : i32
    %0 = arith.addi %arg1, %c0_i32 : i32
    %c0_i32_0 = arith.constant 0 : i32
    %c0_i32_1 = arith.constant 0 : i32
    %c0_i32_2 = arith.constant 0 : i32
    return %arg0, %0, %c0_i32_0, %c0_i32_1 : i32, i32, i32, i32
  }
  func.func @transform_1(%arg0: i32, %arg1: i32) -> (i32, i32, i32, i32) {
    %c8_i32 = arith.constant 8 : i32
    %0 = arith.addi %arg1, %c8_i32 : i32
    %c0_i32 = arith.constant 0 : i32
    %c0_i32_0 = arith.constant 0 : i32
    %c0_i32_1 = arith.constant 0 : i32
    return %arg0, %0, %c0_i32, %c0_i32_0 : i32, i32, i32, i32
  }
  func.func @transform_2(%arg0: i32, %arg1: i32) -> (i32, i32, i32, i32) {
    %c16_i32 = arith.constant 16 : i32
    %0 = arith.addi %arg1, %c16_i32 : i32
    %c0_i32 = arith.constant 0 : i32
    %c0_i32_0 = arith.constant 0 : i32
    %c0_i32_1 = arith.constant 0 : i32
    return %arg0, %0, %c0_i32, %c0_i32_0 : i32, i32, i32, i32
  }
  func.func @transform_3(%arg0: i32, %arg1: i32) -> (i32, i32, i32, i32) {
    %c0_i32 = arith.constant 0 : i32
    %c0_i32_0 = arith.constant 0 : i32
    %c0_i32_1 = arith.constant 0 : i32
    %c0_i32_2 = arith.constant 0 : i32
    %c0_i32_3 = arith.constant 0 : i32
    return %c0_i32, %c0_i32_0, %c0_i32_1, %c0_i32_2 : i32, i32, i32, i32
  }
  func.func @transform_4(%arg0: i32, %arg1: i32) -> (i32, i32) {
    %c0_i32 = arith.constant 0 : i32
    %c0_i32_0 = arith.constant 0 : i32
    %c0_i32_1 = arith.constant 0 : i32
    return %c0_i32, %c0_i32_0 : i32, i32
  }
  func.func @transform_5(%arg0: i32, %arg1: i32) -> (i32, i32, i32, i32) {
    %c0_i32 = arith.constant 0 : i32
    %c0_i32_0 = arith.constant 0 : i32
    %c0_i32_1 = arith.constant 0 : i32
    return %arg0, %arg1, %c0_i32, %c0_i32_0 : i32, i32, i32, i32
  }
  func.func @transform_6(%arg0: i32, %arg1: i32) -> (i32, i32, i32, i32) {
    %c0_i32 = arith.constant 0 : i32
    %c0_i32_0 = arith.constant 0 : i32
    %c0_i32_1 = arith.constant 0 : i32
    return %arg0, %arg1, %c0_i32, %c0_i32_0 : i32, i32, i32, i32
  }
  func.func @transform_7(%arg0: i32, %arg1: i32) -> (i32, i32, i32, i32) {
    %c0_i32 = arith.constant 0 : i32
    %c0_i32_0 = arith.constant 0 : i32
    %c0_i32_1 = arith.constant 0 : i32
    return %arg0, %arg1, %c0_i32, %c0_i32_0 : i32, i32, i32, i32
  }
}

module attributes {stable_mosaic.version = 11 : i64} {
  func.func @_dconv_relu_acc_kernel_last(%arg0: i32, %arg1: i32, %arg2: memref<1x1x48x128xbf16, #tpu.memory_space<vmem>>, %arg3: memref<1x1x48x128xbf16, #tpu.memory_space<vmem>>, %arg4: memref<1x1x48x128xbf16, #tpu.memory_space<vmem>>, %arg5: memref<3x3x128x128xbf16, #tpu.memory_space<vmem>>, %arg6: memref<1x128xf32, #tpu.memory_space<vmem>>, %arg7: memref<1x1x16x128xf32, #tpu.memory_space<vmem>>, %arg8: memref<1x1x16x128xf32, #tpu.memory_space<vmem>>) attributes {dimension_semantics = [#tpu.dimension_semantics<parallel>, #tpu.dimension_semantics<parallel>], iteration_bounds = array<i64: 2, 16>, scalar_prefetch = 0 : i64, scratch_operands = 0 : i64, tpu.core_type = #tpu.core_type<tc>, window_params = [{transform_indices = @transform_0, window_bounds = array<i64: 1, 1, 48, 128>}, {transform_indices = @transform_1, window_bounds = array<i64: 1, 1, 48, 128>}, {transform_indices = @transform_2, window_bounds = array<i64: 1, 1, 48, 128>}, {pipeline_mode = #tpu.pipeline_mode<synchronous>, transform_indices = @transform_3, window_bounds = array<i64: 3, 3, 128, 128>}, {pipeline_mode = #tpu.pipeline_mode<synchronous>, transform_indices = @transform_4, window_bounds = array<i64: 1, 128>}, {transform_indices = @transform_5, window_bounds = array<i64: 1, 1, 16, 128>}, {transform_indices = @transform_6, window_bounds = array<i64: 1, 1, 16, 128>}]} {
    %c0 = arith.constant 0 : index
    %c0_0 = arith.constant 0 : index
    %c0_1 = arith.constant 0 : index
    %c0_2 = arith.constant 0 : index
    %0 = vector.load %arg2[%c0, %c0_0, %c0_1, %c0_2] : memref<1x1x48x128xbf16, #tpu.memory_space<vmem>>, vector<1x1x48x128xbf16>
    %1 = vector.shape_cast %0 : vector<1x1x48x128xbf16> to vector<48x128xbf16>
    %c0_3 = arith.constant 0 : index
    %c0_4 = arith.constant 0 : index
    %c0_5 = arith.constant 0 : index
    %c0_6 = arith.constant 0 : index
    %2 = vector.load %arg3[%c0_3, %c0_4, %c0_5, %c0_6] : memref<1x1x48x128xbf16, #tpu.memory_space<vmem>>, vector<1x1x48x128xbf16>
    %3 = vector.shape_cast %2 : vector<1x1x48x128xbf16> to vector<48x128xbf16>
    %c0_7 = arith.constant 0 : index
    %c0_8 = arith.constant 0 : index
    %c0_9 = arith.constant 0 : index
    %c0_10 = arith.constant 0 : index
    %4 = vector.load %arg4[%c0_7, %c0_8, %c0_9, %c0_10] : memref<1x1x48x128xbf16, #tpu.memory_space<vmem>>, vector<1x1x48x128xbf16>
    %5 = vector.shape_cast %4 : vector<1x1x48x128xbf16> to vector<48x128xbf16>
    %cst = arith.constant 0.000000e+00 : f32
    %6 = vector.broadcast %cst : f32 to vector<16x128xf32>
    %7 = vector.extract_strided_slice %1 {offsets = [0, 0], sizes = [16, 128], strides = [1, 1]} : vector<48x128xbf16> to vector<16x128xbf16>
    %c0_11 = arith.constant 0 : index
    %c0_12 = arith.constant 0 : index
    %c0_13 = arith.constant 0 : index
    %c0_14 = arith.constant 0 : index
    %8 = vector.load %arg5[%c0_11, %c0_12, %c0_13, %c0_14] : memref<3x3x128x128xbf16, #tpu.memory_space<vmem>>, vector<1x1x128x128xbf16>
    %9 = vector.shape_cast %8 : vector<1x1x128x128xbf16> to vector<128x128xbf16>
    %cst_15 = arith.constant dense<0.000000e+00> : vector<16x128xf32>
    %10 = tpu.matmul %7, %9, %cst_15 {dimension_numbers = #tpu.dot_dimension_numbers<[1], [0], [0], [1], [0, 0, 1, 1], [], []>} : vector<16x128xbf16>, vector<128x128xbf16>, vector<16x128xf32> -> vector<16x128xf32>
    %11 = arith.addf %6, %10 : vector<16x128xf32>
    %12 = vector.extract_strided_slice %1 {offsets = [16, 0], sizes = [16, 128], strides = [1, 1]} : vector<48x128xbf16> to vector<16x128xbf16>
    %c0_16 = arith.constant 0 : index
    %c1 = arith.constant 1 : index
    %c0_17 = arith.constant 0 : index
    %c0_18 = arith.constant 0 : index
    %13 = vector.load %arg5[%c0_16, %c1, %c0_17, %c0_18] : memref<3x3x128x128xbf16, #tpu.memory_space<vmem>>, vector<1x1x128x128xbf16>
    %14 = vector.shape_cast %13 : vector<1x1x128x128xbf16> to vector<128x128xbf16>
    %cst_19 = arith.constant dense<0.000000e+00> : vector<16x128xf32>
    %15 = tpu.matmul %12, %14, %cst_19 {dimension_numbers = #tpu.dot_dimension_numbers<[1], [0], [0], [1], [0, 0, 1, 1], [], []>} : vector<16x128xbf16>, vector<128x128xbf16>, vector<16x128xf32> -> vector<16x128xf32>
    %16 = arith.addf %11, %15 : vector<16x128xf32>
    %17 = vector.extract_strided_slice %1 {offsets = [32, 0], sizes = [16, 128], strides = [1, 1]} : vector<48x128xbf16> to vector<16x128xbf16>
    %c0_20 = arith.constant 0 : index
    %c2 = arith.constant 2 : index
    %c0_21 = arith.constant 0 : index
    %c0_22 = arith.constant 0 : index
    %18 = vector.load %arg5[%c0_20, %c2, %c0_21, %c0_22] : memref<3x3x128x128xbf16, #tpu.memory_space<vmem>>, vector<1x1x128x128xbf16>
    %19 = vector.shape_cast %18 : vector<1x1x128x128xbf16> to vector<128x128xbf16>
    %cst_23 = arith.constant dense<0.000000e+00> : vector<16x128xf32>
    %20 = tpu.matmul %17, %19, %cst_23 {dimension_numbers = #tpu.dot_dimension_numbers<[1], [0], [0], [1], [0, 0, 1, 1], [], []>} : vector<16x128xbf16>, vector<128x128xbf16>, vector<16x128xf32> -> vector<16x128xf32>
    %21 = arith.addf %16, %20 : vector<16x128xf32>
    %22 = vector.extract_strided_slice %3 {offsets = [0, 0], sizes = [16, 128], strides = [1, 1]} : vector<48x128xbf16> to vector<16x128xbf16>
    %c1_24 = arith.constant 1 : index
    %c0_25 = arith.constant 0 : index
    %c0_26 = arith.constant 0 : index
    %c0_27 = arith.constant 0 : index
    %23 = vector.load %arg5[%c1_24, %c0_25, %c0_26, %c0_27] : memref<3x3x128x128xbf16, #tpu.memory_space<vmem>>, vector<1x1x128x128xbf16>
    %24 = vector.shape_cast %23 : vector<1x1x128x128xbf16> to vector<128x128xbf16>
    %cst_28 = arith.constant dense<0.000000e+00> : vector<16x128xf32>
    %25 = tpu.matmul %22, %24, %cst_28 {dimension_numbers = #tpu.dot_dimension_numbers<[1], [0], [0], [1], [0, 0, 1, 1], [], []>} : vector<16x128xbf16>, vector<128x128xbf16>, vector<16x128xf32> -> vector<16x128xf32>
    %26 = arith.addf %21, %25 : vector<16x128xf32>
    %27 = vector.extract_strided_slice %3 {offsets = [16, 0], sizes = [16, 128], strides = [1, 1]} : vector<48x128xbf16> to vector<16x128xbf16>
    %c1_29 = arith.constant 1 : index
    %c1_30 = arith.constant 1 : index
    %c0_31 = arith.constant 0 : index
    %c0_32 = arith.constant 0 : index
    %28 = vector.load %arg5[%c1_29, %c1_30, %c0_31, %c0_32] : memref<3x3x128x128xbf16, #tpu.memory_space<vmem>>, vector<1x1x128x128xbf16>
    %29 = vector.shape_cast %28 : vector<1x1x128x128xbf16> to vector<128x128xbf16>
    %cst_33 = arith.constant dense<0.000000e+00> : vector<16x128xf32>
    %30 = tpu.matmul %27, %29, %cst_33 {dimension_numbers = #tpu.dot_dimension_numbers<[1], [0], [0], [1], [0, 0, 1, 1], [], []>} : vector<16x128xbf16>, vector<128x128xbf16>, vector<16x128xf32> -> vector<16x128xf32>
    %31 = arith.addf %26, %30 : vector<16x128xf32>
    %32 = vector.extract_strided_slice %3 {offsets = [32, 0], sizes = [16, 128], strides = [1, 1]} : vector<48x128xbf16> to vector<16x128xbf16>
    %c1_34 = arith.constant 1 : index
    %c2_35 = arith.constant 2 : index
    %c0_36 = arith.constant 0 : index
    %c0_37 = arith.constant 0 : index
    %33 = vector.load %arg5[%c1_34, %c2_35, %c0_36, %c0_37] : memref<3x3x128x128xbf16, #tpu.memory_space<vmem>>, vector<1x1x128x128xbf16>
    %34 = vector.shape_cast %33 : vector<1x1x128x128xbf16> to vector<128x128xbf16>
    %cst_38 = arith.constant dense<0.000000e+00> : vector<16x128xf32>
    %35 = tpu.matmul %32, %34, %cst_38 {dimension_numbers = #tpu.dot_dimension_numbers<[1], [0], [0], [1], [0, 0, 1, 1], [], []>} : vector<16x128xbf16>, vector<128x128xbf16>, vector<16x128xf32> -> vector<16x128xf32>
    %36 = arith.addf %31, %35 : vector<16x128xf32>
    %37 = vector.extract_strided_slice %5 {offsets = [0, 0], sizes = [16, 128], strides = [1, 1]} : vector<48x128xbf16> to vector<16x128xbf16>
    %c2_39 = arith.constant 2 : index
    %c0_40 = arith.constant 0 : index
    %c0_41 = arith.constant 0 : index
    %c0_42 = arith.constant 0 : index
    %38 = vector.load %arg5[%c2_39, %c0_40, %c0_41, %c0_42] : memref<3x3x128x128xbf16, #tpu.memory_space<vmem>>, vector<1x1x128x128xbf16>
    %39 = vector.shape_cast %38 : vector<1x1x128x128xbf16> to vector<128x128xbf16>
    %cst_43 = arith.constant dense<0.000000e+00> : vector<16x128xf32>
    %40 = tpu.matmul %37, %39, %cst_43 {dimension_numbers = #tpu.dot_dimension_numbers<[1], [0], [0], [1], [0, 0, 1, 1], [], []>} : vector<16x128xbf16>, vector<128x128xbf16>, vector<16x128xf32> -> vector<16x128xf32>
    %41 = arith.addf %36, %40 : vector<16x128xf32>
    %42 = vector.extract_strided_slice %5 {offsets = [16, 0], sizes = [16, 128], strides = [1, 1]} : vector<48x128xbf16> to vector<16x128xbf16>
    %c2_44 = arith.constant 2 : index
    %c1_45 = arith.constant 1 : index
    %c0_46 = arith.constant 0 : index
    %c0_47 = arith.constant 0 : index
    %43 = vector.load %arg5[%c2_44, %c1_45, %c0_46, %c0_47] : memref<3x3x128x128xbf16, #tpu.memory_space<vmem>>, vector<1x1x128x128xbf16>
    %44 = vector.shape_cast %43 : vector<1x1x128x128xbf16> to vector<128x128xbf16>
    %cst_48 = arith.constant dense<0.000000e+00> : vector<16x128xf32>
    %45 = tpu.matmul %42, %44, %cst_48 {dimension_numbers = #tpu.dot_dimension_numbers<[1], [0], [0], [1], [0, 0, 1, 1], [], []>} : vector<16x128xbf16>, vector<128x128xbf16>, vector<16x128xf32> -> vector<16x128xf32>
    %46 = arith.addf %41, %45 : vector<16x128xf32>
    %47 = vector.extract_strided_slice %5 {offsets = [32, 0], sizes = [16, 128], strides = [1, 1]} : vector<48x128xbf16> to vector<16x128xbf16>
    %c2_49 = arith.constant 2 : index
    %c2_50 = arith.constant 2 : index
    %c0_51 = arith.constant 0 : index
    %c0_52 = arith.constant 0 : index
    %48 = vector.load %arg5[%c2_49, %c2_50, %c0_51, %c0_52] : memref<3x3x128x128xbf16, #tpu.memory_space<vmem>>, vector<1x1x128x128xbf16>
    %49 = vector.shape_cast %48 : vector<1x1x128x128xbf16> to vector<128x128xbf16>
    %cst_53 = arith.constant dense<0.000000e+00> : vector<16x128xf32>
    %50 = tpu.matmul %47, %49, %cst_53 {dimension_numbers = #tpu.dot_dimension_numbers<[1], [0], [0], [1], [0, 0, 1, 1], [], []>} : vector<16x128xbf16>, vector<128x128xbf16>, vector<16x128xf32> -> vector<16x128xf32>
    %51 = arith.addf %46, %50 : vector<16x128xf32>
    %c0_54 = arith.constant 0 : index
    %c0_55 = arith.constant 0 : index
    %52 = vector.load %arg6[%c0_54, %c0_55] : memref<1x128xf32, #tpu.memory_space<vmem>>, vector<1x128xf32>
    %53 = vector.broadcast %52 : vector<1x128xf32> to vector<16x128xf32>
    %54 = arith.addf %51, %53 : vector<16x128xf32>
    %cst_56 = arith.constant 0.000000e+00 : f32
    %55 = vector.broadcast %cst_56 : f32 to vector<16x128xf32>
    %56 = arith.maximumf %54, %55 : vector<16x128xf32>
    %c0_57 = arith.constant 0 : index
    %c0_58 = arith.constant 0 : index
    %c0_59 = arith.constant 0 : index
    %c0_60 = arith.constant 0 : index
    %57 = vector.load %arg7[%c0_57, %c0_58, %c0_59, %c0_60] : memref<1x1x16x128xf32, #tpu.memory_space<vmem>>, vector<1x1x16x128xf32>
    %58 = vector.shape_cast %57 : vector<1x1x16x128xf32> to vector<16x128xf32>
    %59 = arith.addf %58, %56 : vector<16x128xf32>
    %c0_61 = arith.constant 0 : index
    %c0_62 = arith.constant 0 : index
    %c0_63 = arith.constant 0 : index
    %c0_64 = arith.constant 0 : index
    %60 = vector.load %arg8[%c0_61, %c0_62, %c0_63, %c0_64] : memref<1x1x16x128xf32, #tpu.memory_space<vmem>>, vector<1x1x16x128xf32>
    %61 = vector.shape_cast %60 : vector<1x1x16x128xf32> to vector<16x128xf32>
    %62 = vector.shape_cast %59 : vector<16x128xf32> to vector<1x1x16x128xf32>
    tpu.vector_store %arg8[%c0_61, %c0_62, %c0_63, %c0_64], %62 {strides = array<i32>} : memref<1x1x16x128xf32, #tpu.memory_space<vmem>>, vector<1x1x16x128xf32>,
    return
  }
  func.func @transform_0(%arg0: i32, %arg1: i32) -> (i32, i32, i32, i32) {
    %c0_i32 = arith.constant 0 : i32
    %0 = arith.addi %arg1, %c0_i32 : i32
    %c0_i32_0 = arith.constant 0 : i32
    %c0_i32_1 = arith.constant 0 : i32
    %c0_i32_2 = arith.constant 0 : i32
    return %arg0, %0, %c0_i32_0, %c0_i32_1 : i32, i32, i32, i32
  }
  func.func @transform_1(%arg0: i32, %arg1: i32) -> (i32, i32, i32, i32) {
    %c16_i32 = arith.constant 16 : i32
    %0 = arith.addi %arg1, %c16_i32 : i32
    %c0_i32 = arith.constant 0 : i32
    %c0_i32_0 = arith.constant 0 : i32
    %c0_i32_1 = arith.constant 0 : i32
    return %arg0, %0, %c0_i32, %c0_i32_0 : i32, i32, i32, i32
  }
  func.func @transform_2(%arg0: i32, %arg1: i32) -> (i32, i32, i32, i32) {
    %c32_i32 = arith.constant 32 : i32
    %0 = arith.addi %arg1, %c32_i32 : i32
    %c0_i32 = arith.constant 0 : i32
    %c0_i32_0 = arith.constant 0 : i32
    %c0_i32_1 = arith.constant 0 : i32
    return %arg0, %0, %c0_i32, %c0_i32_0 : i32, i32, i32, i32
  }
  func.func @transform_3(%arg0: i32, %arg1: i32) -> (i32, i32, i32, i32) {
    %c0_i32 = arith.constant 0 : i32
    %c0_i32_0 = arith.constant 0 : i32
    %c0_i32_1 = arith.constant 0 : i32
    %c0_i32_2 = arith.constant 0 : i32
    %c0_i32_3 = arith.constant 0 : i32
    return %c0_i32, %c0_i32_0, %c0_i32_1, %c0_i32_2 : i32, i32, i32, i32
  }
  func.func @transform_4(%arg0: i32, %arg1: i32) -> (i32, i32) {
    %c0_i32 = arith.constant 0 : i32
    %c0_i32_0 = arith.constant 0 : i32
    %c0_i32_1 = arith.constant 0 : i32
    return %c0_i32, %c0_i32_0 : i32, i32
  }
  func.func @transform_5(%arg0: i32, %arg1: i32) -> (i32, i32, i32, i32) {
    %c0_i32 = arith.constant 0 : i32
    %c0_i32_0 = arith.constant 0 : i32
    %c0_i32_1 = arith.constant 0 : i32
    return %arg0, %arg1, %c0_i32, %c0_i32_0 : i32, i32, i32, i32
  }
  func.func @transform_6(%arg0: i32, %arg1: i32) -> (i32, i32, i32, i32) {
    %c0_i32 = arith.constant 0 : i32
    %c0_i32_0 = arith.constant 0 : i32
    %c0_i32_1 = arith.constant 0 : i32
    return %arg0, %arg1, %c0_i32, %c0_i32_0 : i32, i32, i32, i32
  }
}

</mosaic_0001>

<bundles_post_ra>
// kernel: a_call__.6
= control target key start
LH: loop header
LB: loop body
LE: loop exit
PB: predicated region body
PF: predicated region fallthrough
CT: control target
= control target key end

     0   :  { %s2424_s24 = smov 0   ;;  %s2426_s25 = smov 0   ;;  %s2845_s0 = inlined_call_operand.vmem [shape: bf16[2,20,20,128], index: 0, kind: input, shape index: {}, may-alias: {0,1,2}]   ;;  %s2846_s1 = inlined_call_operand.vmem [shape: bf16[2,20,20,128], index: 1, kind: input, shape index: {}, may-alias: {0,1,2}]   ;;  %s2847_s2 = inlined_call_operand.vmem [shape: bf16[2,20,20,128], index: 2, kind: input, shape index: {}, may-alias: {0,1,2}]   ;;  %s2848_s3 = inlined_call_operand.vmem [shape: bf16[3,3,128,128], index: 3, kind: input, shape index: {}]   ;;  %s2849_s4 = inlined_call_operand.vmem [shape: f32[1,128], index: 4, kind: input, shape index: {}]   ;;  %s2850_s5 = inlined_call_operand.vmem [shape: f32[2,16,16,128], index: 5, kind: input, shape index: {}, may-alias: {5,7}]   ;;  %s2851_s6 = inlined_call_operand.vmem [shape: bf16[2,16,16,128], index: 6, kind: output, shape index: {0}]   ;;  %s2852_s7 = inlined_call_operand.vmem [shape: f32[2,16,16,128], index: 7, kind: output, shape index: {1}, may-alias: {5,7}]  }
   0x1   :  { %s2428_s26 = smov 0   ;;  %s2430_s27 = smov 0  }
   0x2   :  { %s2432_s28 = smov 0  }
   0x3 LB: > { %s27_s29 = sadd.s32 1, %s2372_s26  ;;  %s30_s30 = sadd.s32 1, %s2376_s27  ;;  %s2380_s28 = sphi %s2432_s28, %s18_s28   ;;  %s2376_s27 = sphi %s2430_s27, %s2856_s27   ;;  %s2372_s26 = sphi %s2428_s26, %s2855_s26   ;;  %s2368_s25 = sphi %s2426_s25, %s2854_s25   ;;  %s2364_s24 = sphi %s2424_s24, %s2853_s24  }
   0x4   : > { %p28_p0 = scmp.ge.s32.totalorder %s27_s29, 16  ;;  %p1726_p1 = scmp.ge.s32.totalorder %s2380_s28, 1 }
   0x5   : > { %p318_p2 = scmp.lt.s32.totalorder %s2380_s28, 33 }
   0x6   : > { %s2858_s29 = smov (%p28_p0, %s27_s29), 0  ;;  %s2860_s30 = smov (!%p28_p0, %s30_s30), %s2376_s27 }
   0x7   : > { %p319_p3 = pnand %p1726_p1, %p318_p2  ;;  %p32_p4 = scmp.ge.s32.totalorder %s2860_s30, 2 }
   0x8   : > { %v2264_v0 = vld [vmem:[%s2848_s3 + $0x40] sm:$0xff] (!%p319_p3)   ;;  %v2382_v1 = vmov (!%p319_p3), 0.0   ;;  %v2266_v3 = vld [vmem:[%s2848_s3 + $0x48] sm:$0xff] (!%p319_p3)   ;;  %vm2383_vm0 = vmmov (!%p319_p3), 0   ;;  %p396_p5 = scmp.lt.s32.totalorder (!%p319_p3), %s2368_s25, 1  ;;  %p398_p6 = scmp.lt.s32.totalorder (!%p319_p3), %s2364_s24, 19 }
   0x9   : > { %s2862_s30 = smov (%p32_p4, %s2860_s30), 0  ;;  %322 = sbr.rel (%p319_p3) target bundleno = 393 (0x189), region = 44 }
   0xa   : > { %2038 = vmatprep.subr.bf16.mxu0 (!%p319_p3), %v2382_v1  ;;  %2058 = vmatprep.subr.bf16.mxu1 (!%p319_p3), %v2382_v1  ;;  %v2265_v2 = vld [vmem:[%s2848_s3] sm:$0xff] (!%p319_p3)   ;;  %v2267_v4 = vld [vmem:[%s2848_s3 + $0x8] sm:$0xff] (!%p319_p3)   ;;  %v2268_v5 = vld [vmem:[%s2848_s3 + $0x50] sm:$0xff] (!%p319_p3)   ;;  %s405_s13 = sadd.s32 (!%p319_p3), 2, %s2364_s24  ;;  %vm505_vm1 = vcmask (!%p319_p3), 1046528   ;;  %s416_s10 = sadd.s32 (!%p319_p3), 4, %s2364_s24 }
   0xb   : > { %2039 = vmatpush3.bf16.msra.mxu0 (!%p319_p3), %v2264_v0  ;;  %2054 = vmatprep.mubr.msk.bf16.mxu0 (!%p319_p3), %vm2383_vm0, %v2382_v1  ;;  %v2269_v6 = vld [vmem:[%s2848_s3 + $0x10] sm:$0xff] (!%p319_p3)   ;;  %v2270_v7 = vld [vmem:[%s2848_s3 + $0x58] sm:$0xff] (!%p319_p3)   ;;  %v2272_v9 = vld [vmem:[%s2848_s3 + $0x60] sm:$0xff] (!%p319_p3)   ;;  %p408_p7 = scmp.lt.s32.totalorder (!%p319_p3), %s405_s13, 19  ;;  %p419_p8 = scmp.lt.s32.totalorder (!%p319_p3), %s416_s10, 19  ;;  %vm706_vm2 = vcmask (!%p319_p3), 1045504  }
   0xc   : > { %2059 = vmatpush3.bf16.msra.mxu1 (!%p319_p3), %v2265_v2  ;;  %2040 = vmatprep.subr.bf16.mxu0 (!%p319_p3), %v2382_v1  ;;  %v2271_v8 = vld [vmem:[%s2848_s3 + $0x18] sm:$0xff] (!%p319_p3)   ;;  %v2273_v10 = vld [vmem:[%s2848_s3 + $0x20] sm:$0xff] (!%p319_p3)   ;;  %v2274_v11 = vld [vmem:[%s2848_s3 + $0x68] sm:$0xff] (!%p319_p3)   ;;  %p429_p9 = scmp.lt.s32.totalorder (!%p319_p3), %s2364_s24, 15 }
   0xd   : > { %2060 = vmatprep.subr.bf16.mxu1 (!%p319_p3), %v2382_v1  ;;  %2074 = vmatprep.mubr.msk.bf16.mxu1 (!%p319_p3), %vm2383_vm0, %v2382_v1  ;;  %v2275_v12 = vld [vmem:[%s2848_s3 + $0x28] sm:$0xff] (!%p319_p3)   ;;  %v2276_v14 = vld [vmem:[%s2848_s3 + $0x70] sm:$0xff] (!%p319_p3)   ;;  %v2278_v17 = vld [vmem:[%s2848_s3 + $0x78] sm:$0xff] (!%p319_p3)  }
   0xe   : > { %v2277_v16 = vld [vmem:[%s2848_s3 + $0x30] sm:$0xff] (!%p319_p3)   ;;  %v2279_v20 = vld [vmem:[%s2848_s3 + $0x38] sm:$0xff] (!%p319_p3)   ;;  %v2282_v22 = vld [vmem:[%s2848_s3 + $0x80] sm:$0xff] (!%p319_p3)  }
   0xf   : > { %2041 = vmatpush3.bf16.msra.mxu0 (!%p319_p3), %v2266_v3  ;;  %v2283_v23 = vld [vmem:[%s2848_s3 + $0xc0] sm:$0xff] (!%p319_p3)   ;;  %v2284_v24 = vld [vmem:[%s2848_s3 + $0x88] sm:$0xff] (!%p319_p3)   ;;  %v2286_v26 = vld [vmem:[%s2848_s3 + $0x90] sm:$0xff] (!%p319_p3)  }
  0x10   : > { %s2864_s25 = smov (!%p396_p5, %s2368_s25), 1  ;;  %2061 = vmatpush3.bf16.msra.mxu1 %v2267_v4  ;;  %2042 = vmatprep.subr.bf16.mxu0 %v2382_v1  ;;  %s2866_s13 = smov (!%p408_p7, %s405_s13), 19  ;;  %v2285_v25 = vld [vmem:[%s2848_s3 + $0xc8] sm:$0xff]   ;;  %v2287_v27 = vld [vmem:[%s2848_s3 + $0xd0] sm:$0xff]   ;;  %v2288_v28 = vld [vmem:[%s2848_s3 + $0x98] sm:$0xff]  }
  0x11   : > { %s399_s16 = scalar_select %p398_p6, %s2364_s24, 19  ;;  %2062 = vmatprep.subr.bf16.mxu1 %v2382_v1  ;;  %v2289_v29 = vld [vmem:[%s2848_s3 + $0xd8] sm:$0xff]   ;;  %v2290_v30 = vld [vmem:[%s2848_s3 + $0xa0] sm:$0xff]   ;;  %v2292_v32 = vld [vmem:[%s2848_s3 + $0xa8] sm:$0xff]  }
  0x12   : > { %s2488_s19 = smul.u32 60, %s2864_s25  ;;  %v2291_v31 = vld [vmem:[%s2848_s3 + $0xe0] sm:$0xff]   ;;  %v2293_v33 = vld [vmem:[%s2848_s3 + $0xe8] sm:$0xff]   ;;  %s2868_s10 = smov (!%p419_p8, %s416_s10), 19  ;;  %v2294_v34 = vld [vmem:[%s2848_s3 + $0xb0] sm:$0xff]  }
  0x13   : > { %s2218_s22 = smul.u32 3, %s399_s16  ;;  %2043 = vmatpush3.bf16.msra.mxu0 %v2268_v5  ;;  %v2295_v35 = vld [vmem:[%s2848_s3 + $0xf0] sm:$0xff]   ;;  %v2296_v37 = vld [vmem:[%s2848_s3 + $0xb8] sm:$0xff]   ;;  %v2298_v40 = vld [vmem:[%s2848_s3 + $0x100] sm:$0xff]   ;;  %s2870_s24 = smov (!%p429_p9, %s2364_s24), 15 }
  0x14   : > { %2063 = vmatpush3.bf16.msra.mxu1 %v2269_v6  ;;  %2044 = vmatprep.subr.bf16.mxu0 %v2382_v1  ;;  %s2220_s15 = smul.u32 3, %s2866_s13  ;;  %v2297_v39 = vld [vmem:[%s2848_s3 + $0xf8] sm:$0xff]   ;;  %v2300_v43 = vld [vmem:[%s2848_s3 + $0x140] sm:$0xff]   ;;  %v2301_v44 = vld [vmem:[%s2848_s3 + $0x108] sm:$0xff]   ;;  %s1731_s8 = sshll.u32 %s2864_s25, 5 }
  0x15   : > { %s402_s23 = sadd.s32 %s2488_s19, %s2218_s22  ;;  %2064 = vmatprep.subr.bf16.mxu1 %v2382_v1  ;;  %s2221_s9 = smul.u32 3, %s2868_s10  ;;  %v2302_v45 = vld [vmem:[%s2848_s3 + $0x148] sm:$0xff]   ;;  %v2303_v46 = vld [vmem:[%s2848_s3 + $0x110] sm:$0xff]   ;;  %v2305_v48 = vld [vmem:[%s2848_s3 + $0x118] sm:$0xff]  }
  0x16   : > { %s1727_s12 = sshll.u32 %s402_s23, 2  ;;  %s412_s13 = sadd.s32 %s2220_s15, %s2488_s19  ;;  %v2304_v47 = vld [vmem:[%s2848_s3 + $0x150] sm:$0xff]   ;;  %v2306_v49 = vld [vmem:[%s2848_s3 + $0x158] sm:$0xff]   ;;  %v2307_v50 = vld [vmem:[%s2848_s3 + $0x120] sm:$0xff]  }
  0x17   : > { %2045 = vmatpush3.bf16.msra.mxu0 %v2270_v7  ;;  %s404_s21 = scalar_lea.vmem %s2845_s0, %s1727_s12  ;;  %s1728_s23 = sshll.u32 %s412_s13, 2  ;;  %v2308_v51 = vld [vmem:[%s2848_s3 + $0x160] sm:$0xff]   ;;  %v2309_v52 = vld [vmem:[%s2848_s3 + $0x128] sm:$0xff]   ;;  %v2311_v54 = vld [vmem:[%s2848_s3 + $0x130] sm:$0xff]  }
  0x18   : > { %2065 = vmatpush3.bf16.msra.mxu1 %v2271_v8  ;;  %2046 = vmatprep.subr.bf16.mxu0 %v2382_v1  ;;  %v2524_v13 = vld [vmem:[%s404_s21 + $0x8] ss:$0 sps:$4 sm:$0x33]   ;;  %v2529_v15 = vld [vmem:[%s404_s21] sm:$0xff]   ;;  %s2559_s12 = scalar_lea.vmem %s2846_s1, %s1728_s23  ;;  %s423_s10 = sadd.s32 %s2221_s9, %s2488_s19  ;;  %v2312_v56 = vld [vmem:[%s2848_s3 + $0x170] sm:$0xff]  }
  0x19   : > { %2066 = vmatprep.subr.bf16.mxu1 %v2382_v1  ;;  %v506_v18 = vrot.slane %v2529_v15, 1  ;;  %v507_v19 = vrot.slane %v2524_v13, 1  ;;  %v707_v36 = vrot.slane %v2529_v15, 2  ;;  %v708_v38 = vrot.slane %v2524_v13, 2  ;;  %v2631_v42 = vld [vmem:[%s2559_s12] sm:$0xff]   ;;  %s1729_s21 = sshll.u32 %s423_s10, 2 }
  0x1a   : > { %s2645_s9 = scalar_lea.vmem %s2847_s2, %s1729_s21  ;;  %v2310_v53 = vld [vmem:[%s2848_s3 + $0x168] sm:$0xff]   ;;  %v2313_v57 = vld [vmem:[%s2848_s3 + $0x138] sm:$0xff]   ;;  %v936_v58 = vrot.slane %v2631_v42, 1  ;;  %v1048_v61 = vrot.slane %v2631_v42, 2  ;;  %v2316_v0 = vld [vmem:[%s2848_s3 + $0x180] sm:$0xff]  }
  0x1b   : > { %2047 = vmatpush3.bf16.msra.mxu0 %v2272_v9  ;;  %v508_v21 = vsel %vm505_vm1, %v506_v18, %v507_v19  ;;  %v709_v41 = vsel %vm706_vm2, %v707_v36, %v708_v38  ;;  %v2315_v55 = vld [vmem:[%s2559_s12 + $0x8] ss:$0 sps:$4 sm:$0x33]   ;;  %v2314_v60 = vld [vmem:[%s2848_s3 + $0x178] sm:$0xff]   ;;  %v2317_v3 = vld [vmem:[%s2848_s3 + $0x1c0] sm:$0xff]  }
  0x1c   : > { %2067 = vmatpush3.bf16.msra.mxu1 %v2273_v10  ;;  %2048 = vmatprep.subr.bf16.mxu0 %v2382_v1  ;;  %v937_v59 = vrot.slane %v2315_v55, 1  ;;  %v1049_v62 = vrot.slane %v2315_v55, 2  ;;  %v2318_v4 = vld [vmem:[%s2848_s3 + $0x188] sm:$0xff]   ;;  %v2320_v6 = vld [vmem:[%s2848_s3 + $0x190] sm:$0xff]   ;;  %v2322_v8 = vld [vmem:[%s2848_s3 + $0x198] sm:$0xff]  }
  0x1d   : > { %2068 = vmatprep.subr.bf16.mxu1 %v2382_v1  ;;  %v2319_v5 = vld [vmem:[%s2848_s3 + $0x1c8] sm:$0xff]   ;;  %v2321_v7 = vld [vmem:[%s2848_s3 + $0x1d0] sm:$0xff]   ;;  %v2323_v9 = vld [vmem:[%s2848_s3 + $0x1d8] sm:$0xff]  }
  0x1e   : > { %v938_v63 = vsel %vm505_vm1, %v936_v58, %v937_v59  ;;  %v1050_v2 = vsel %vm706_vm2, %v1048_v61, %v1049_v62  ;;  %v2324_v10 = vld [vmem:[%s2848_s3 + $0x1a0] sm:$0xff]   ;;  %v2327_v13 = vld [vmem:[%s2848_s3 + $0x1e8] sm:$0xff]   ;;  %v2330_v18 = vld [vmem:[%s2848_s3 + $0x1b8] sm:$0xff]  }
  0x1f   : > { %2049 = vmatpush3.bf16.msra.mxu0 %v2274_v11  ;;  %v2325_v11 = vld [vmem:[%s2848_s3 + $0x1e0] sm:$0xff]   ;;  %v2331_v19 = vld [vmem:[%s2848_s3 + $0x1f8] sm:$0xff]  }
  0x20   : > { %2069 = vmatpush3.bf16.msra.mxu1 %v2275_v12  ;;  %2050 = vmatprep.subr.bf16.mxu0 %v2382_v1  ;;  %v2326_v12 = vld [vmem:[%s2848_s3 + $0x1a8] sm:$0xff]  }
  0x21   : > { %2070 = vmatprep.subr.bf16.mxu1 %v2382_v1 }
  0x23   : > { %2051 = vmatpush3.bf16.msra.mxu0 %v2276_v14  ;;  %v2328_v14 = vld [vmem:[%s2848_s3 + $0x1b0] sm:$0xff]  }
  0x24   : > { %2071 = vmatpush3.bf16.msra.mxu1 %v2277_v16  ;;  %2052 = vmatprep.subr.bf16.mxu0 %v2382_v1  ;;  %v2332_v16 = vld [vmem:[%s2645_s9] sm:$0xff]  }
  0x25   : > { %2072 = vmatprep.subr.bf16.mxu1 %v2382_v1 }
  0x27   : > { %2053 = vmatpush3.bf16.msra.mxu0 %v2278_v17  ;;  %v2334_v17 = vld [vmem:[%s2645_s9 + $0x8] ss:$0 sps:$4 sm:$0x33]   ;;  %s1730_s9 = sshll.u32 %s2870_s24, 1 }
  0x28   : > { %2073 = vmatpush3.bf16.msra.mxu1 %v2279_v20  ;;  %2078 = vmatprep.subr.bf16.mxu0 %v2382_v1  ;;  %v1277_v20 = vrot.slane %v2332_v16, 1  ;;  %s433_s11 = sadd.s32 %s1731_s8, %s1730_s9 }
  0x29   : > { %2098 = vmatprep.subr.bf16.mxu1 %v2382_v1  ;;  %s1732_s14 = sshll.u32 %s433_s11, 3  ;;  %s1735_s24 = sshll.u32 %s433_s11, 2 }
  0x2a   : > { %2055 = vmatmul.mubr.bf16.vlgmr.msra.gmra.mrb[0].mxu0 %v508_v21  ;;  %v1278_v21 = vrot.slane %v2334_v17, 1  ;;  %s435_s18 = scalar_lea.vmem %s2850_s5, %s1732_s14  ;;  %s453_s13 = scalar_lea.vmem %s2852_s7, %s1732_s14 }
  0x2b   : > { %2075 = vmatmul.mubr.bf16.vlgmr.msra.gmra.mrb[0].mxu1 %v2529_v15  ;;  %2079 = vmatpush3.bf16.msra.mxu0 %v2282_v22  ;;  %v2329_v15 = vld [vmem:[%s2848_s3 + $0x1f0] sm:$0xff]   ;;  %v2333_v22 = vld [vmem:[%s2848_s3 + $0x200] sm:$0xff]   ;;  %s444_s19 = scalar_lea.vmem %s2851_s6, %s1735_s24 }
  0x2c   : > { %2099 = vmatpush3.bf16.msra.mxu1 %v2283_v23  ;;  %2080 = vmatprep.subr.bf16.mxu0 %v2382_v1  ;;  %v1279_v23 = vsel %vm505_vm1, %v1277_v20, %v1278_v21 }
  0x2d   : > { %2100 = vmatprep.subr.bf16.mxu1 %v2382_v1  ;;  %2094 = vmatprep.mubr.msk.bf16.mxu0 %vm2383_vm0, %v2382_v1 }
  0x2e   : > { %2114 = vmatprep.mubr.msk.bf16.mxu1 %vm2383_vm0, %v2382_v1 }
  0x2f   : > { %2081 = vmatpush3.bf16.msra.mxu0 %v2284_v24  ;;  %v2335_v24 = vld [vmem:[%s2848_s3 + $0x208] sm:$0xff]  }
  0x30   : > { %2101 = vmatpush3.bf16.msra.mxu1 %v2285_v25  ;;  %2082 = vmatprep.subr.bf16.mxu0 %v2382_v1  ;;  %v2336_v25 = vld [vmem:[%s2848_s3 + $0x210] sm:$0xff]  }
  0x31   : > { %2102 = vmatprep.subr.bf16.mxu1 %v2382_v1 }
  0x33   : > { %2083 = vmatpush3.bf16.msra.mxu0 %v2286_v26  ;;  %v2337_v26 = vld [vmem:[%s2848_s3 + $0x218] sm:$0xff]  }
  0x34   : > { %2103 = vmatpush3.bf16.msra.mxu1 %v2287_v27  ;;  %2084 = vmatprep.subr.bf16.mxu0 %v2382_v1  ;;  %v2338_v27 = vld [vmem:[%s2848_s3 + $0x220] sm:$0xff]  }
  0x35   : > { %2104 = vmatprep.subr.bf16.mxu1 %v2382_v1 }
  0x37   : > { %2085 = vmatpush3.bf16.msra.mxu0 %v2288_v28  ;;  %v2339_v28 = vld [vmem:[%s2848_s3 + $0x228] sm:$0xff]  }
  0x38   : > { %2105 = vmatpush3.bf16.msra.mxu1 %v2289_v29  ;;  %2086 = vmatprep.subr.bf16.mxu0 %v2382_v1  ;;  %v2340_v29 = vld [vmem:[%s2848_s3 + $0x230] sm:$0xff]  }
  0x39   : > { %2106 = vmatprep.subr.bf16.mxu1 %v2382_v1 }
  0x3b   : > { %2087 = vmatpush3.bf16.msra.mxu0 %v2290_v30  ;;  %v2341_v30 = vld [vmem:[%s2848_s3 + $0x238] sm:$0xff]  }
  0x3c   : > { %2107 = vmatpush3.bf16.msra.mxu1 %v2291_v31  ;;  %2088 = vmatprep.subr.bf16.mxu0 %v2382_v1  ;;  %v1389_v31 = vrot.slane %v2332_v16, 2 }
  0x3d   : > { %2108 = vmatprep.subr.bf16.mxu1 %v2382_v1 }
  0x3f   : > { %2089 = vmatpush3.bf16.msra.mxu0 %v2292_v32  ;;  %v1390_v32 = vrot.slane %v2334_v17, 2  ;;  %v1945_v17 = vld [vmem:[%s2849_s4] ss:$0 sm:$0xff] }
  0x40   : > { %2109 = vmatpush3.bf16.msra.mxu1 %v2293_v33  ;;  %2090 = vmatprep.subr.bf16.mxu0 %v2382_v1 }
  0x41   : > { %2110 = vmatprep.subr.bf16.mxu1 %v2382_v1  ;;  %v1391_v33 = vsel %vm706_vm2, %v1389_v31, %v1390_v32 }
  0x43   : > { %2091 = vmatpush3.bf16.msra.mxu0 %v2294_v34 }
  0x44   : > { %2111 = vmatpush3.bf16.msra.mxu1 %v2295_v35  ;;  %2092 = vmatprep.subr.bf16.mxu0 %v2382_v1 }
  0x45   : > { %2112 = vmatprep.subr.bf16.mxu1 %v2382_v1 }
  0x47   : > { %2093 = vmatpush3.bf16.msra.mxu0 %v2296_v37 }
  0x48   : > { %2113 = vmatpush3.bf16.msra.mxu1 %v2297_v39  ;;  %2118 = vmatprep.subr.bf16.mxu0 %v2382_v1 }
  0x49   : > { %2138 = vmatprep.subr.bf16.mxu1 %v2382_v1 }
  0x4a   : > { %2095 = vmatmul.mubr.bf16.vlgmr.msra.gmra.mrb[4].mxu0 %v709_v41 }
  0x4b   : > { %2119 = vmatpush3.bf16.msra.mxu0 %v2298_v40  ;;  %2115 = vmatmul.mubr.bf16.vlgmr.msra.gmra.mrb[4].mxu1 %v2631_v42 }
  0x4c   : > { %2139 = vmatpush3.bf16.msra.mxu1 %v2300_v43  ;;  %2120 = vmatprep.subr.bf16.mxu0 %v2382_v1 }
  0x4d   : > { %2140 = vmatprep.subr.bf16.mxu1 %v2382_v1  ;;  %2134 = vmatprep.mubr.msk.bf16.mxu0 %vm2383_vm0, %v2382_v1 }
  0x4e   : > { %2154 = vmatprep.mubr.msk.bf16.mxu1 %vm2383_vm0, %v2382_v1 }
  0x4f   : > { %2121 = vmatpush3.bf16.msra.mxu0 %v2301_v44 }
  0x50   : > { %2141 = vmatpush3.bf16.msra.mxu1 %v2302_v45  ;;  %2122 = vmatprep.subr.bf16.mxu0 %v2382_v1 }
  0x51   : > { %2142 = vmatprep.subr.bf16.mxu1 %v2382_v1 }
  0x53   : > { %2123 = vmatpush3.bf16.msra.mxu0 %v2303_v46 }
  0x54   : > { %2143 = vmatpush3.bf16.msra.mxu1 %v2304_v47  ;;  %2124 = vmatprep.subr.bf16.mxu0 %v2382_v1 }
  0x55   : > { %2144 = vmatprep.subr.bf16.mxu1 %v2382_v1 }
  0x57   : > { %2125 = vmatpush3.bf16.msra.mxu0 %v2305_v48 }
  0x58   : > { %2145 = vmatpush3.bf16.msra.mxu1 %v2306_v49  ;;  %2126 = vmatprep.subr.bf16.mxu0 %v2382_v1 }
  0x59   : > { %2146 = vmatprep.subr.bf16.mxu1 %v2382_v1 }
  0x5b   : > { %2127 = vmatpush3.bf16.msra.mxu0 %v2307_v50 }
  0x5c   : > { %2147 = vmatpush3.bf16.msra.mxu1 %v2308_v51  ;;  %2128 = vmatprep.subr.bf16.mxu0 %v2382_v1 }
  0x5d   : > { %2148 = vmatprep.subr.bf16.mxu1 %v2382_v1 }
  0x5f   : > { %2129 = vmatpush3.bf16.msra.mxu0 %v2309_v52 }
  0x60   : > { %2149 = vmatpush3.bf16.msra.mxu1 %v2310_v53  ;;  %2130 = vmatprep.subr.bf16.mxu0 %v2382_v1 }
  0x61   : > { %2150 = vmatprep.subr.bf16.mxu1 %v2382_v1 }
  0x63   : > { %2131 = vmatpush3.bf16.msra.mxu0 %v2311_v54 }
  0x64   : > { %2151 = vmatpush3.bf16.msra.mxu1 %v2312_v56  ;;  %2132 = vmatprep.subr.bf16.mxu0 %v2382_v1 }
  0x65   : > { %2152 = vmatprep.subr.bf16.mxu1 %v2382_v1 }
  0x67   : > { %2133 = vmatpush3.bf16.msra.mxu0 %v2313_v57 }
  0x68   : > { %2153 = vmatpush3.bf16.msra.mxu1 %v2314_v60  ;;  %2158 = vmatprep.subr.bf16.mxu0 %v2382_v1 }
  0x69   : > { %2178 = vmatprep.subr.bf16.mxu1 %v2382_v1 }
  0x6a   : > { %2135 = vmatmul.mubr.bf16.vlgmr.msra.gmra.mrb[8].mxu0 %v938_v63 }
  0x6b   : > { %2159 = vmatpush3.bf16.msra.mxu0 %v2316_v0  ;;  %2155 = vmatmul.mubr.bf16.vlgmr.msra.gmra.mrb[8].mxu1 %v1050_v2 }
  0x6c   : > { %2179 = vmatpush3.bf16.msra.mxu1 %v2317_v3  ;;  %2160 = vmatprep.subr.bf16.mxu0 %v2382_v1 }
  0x6d   : > { %2180 = vmatprep.subr.bf16.mxu1 %v2382_v1  ;;  %2174 = vmatprep.mubr.msk.bf16.mxu0 %vm2383_vm0, %v2382_v1 }
  0x6e   : > { %2194 = vmatprep.mubr.msk.bf16.mxu1 %vm2383_vm0, %v2382_v1 }
  0x6f   : > { %2161 = vmatpush3.bf16.msra.mxu0 %v2318_v4 }
  0x70   : > { %2181 = vmatpush3.bf16.msra.mxu1 %v2319_v5  ;;  %2162 = vmatprep.subr.bf16.mxu0 %v2382_v1 }
  0x71   : > { %2182 = vmatprep.subr.bf16.mxu1 %v2382_v1 }
  0x73   : > { %2163 = vmatpush3.bf16.msra.mxu0 %v2320_v6 }
  0x74   : > { %2183 = vmatpush3.bf16.msra.mxu1 %v2321_v7  ;;  %2164 = vmatprep.subr.bf16.mxu0 %v2382_v1 }
  0x75   : > { %2184 = vmatprep.subr.bf16.mxu1 %v2382_v1 }
  0x77   : > { %2165 = vmatpush3.bf16.msra.mxu0 %v2322_v8 }
  0x78   : > { %2185 = vmatpush3.bf16.msra.mxu1 %v2323_v9  ;;  %2166 = vmatprep.subr.bf16.mxu0 %v2382_v1 }
  0x79   : > { %2186 = vmatprep.subr.bf16.mxu1 %v2382_v1 }
  0x7b   : > { %2167 = vmatpush3.bf16.msra.mxu0 %v2324_v10 }
  0x7c   : > { %2187 = vmatpush3.bf16.msra.mxu1 %v2325_v11  ;;  %2168 = vmatprep.subr.bf16.mxu0 %v2382_v1 }
  0x7d   : > { %2188 = vmatprep.subr.bf16.mxu1 %v2382_v1 }
  0x7f   : > { %2169 = vmatpush3.bf16.msra.mxu0 %v2326_v12 }
  0x80   : > { %2189 = vmatpush3.bf16.msra.mxu1 %v2327_v13  ;;  %2170 = vmatprep.subr.bf16.mxu0 %v2382_v1 }
  0x81   : > { %2190 = vmatprep.subr.bf16.mxu1 %v2382_v1 }
  0x83   : > { %2171 = vmatpush3.bf16.msra.mxu0 %v2328_v14 }
  0x84   : > { %2191 = vmatpush3.bf16.msra.mxu1 %v2329_v15  ;;  %2172 = vmatprep.subr.bf16.mxu0 %v2382_v1 }
  0x85   : > { %2192 = vmatprep.subr.bf16.mxu1 %v2382_v1 }
  0x87   : > { %2173 = vmatpush3.bf16.msra.mxu0 %v2330_v18 }
  0x88   : > { %2193 = vmatpush3.bf16.msra.mxu1 %v2331_v19  ;;  %2198 = vmatprep.subr.bf16.mxu0 %v2382_v1 }
  0x8a   : > { %2175 = vmatmul.mubr.bf16.vlgmr.msra.gmra.mrb[12].mxu0 %v2332_v16 }
  0x8b   : > { %2199 = vmatpush3.bf16.msra.mxu0 %v2333_v22  ;;  %2195 = vmatmul.mubr.bf16.vlgmr.msra.gmra.mrb[12].mxu1 %v1279_v23 }
  0x8c   : > { %2200 = vmatprep.subr.bf16.mxu0 %v2382_v1  ;;  %2214 = vmatprep.mubr.msk.bf16.mxu0 %vm2383_vm0, %v2382_v1 }
  0x8f   : > { %2201 = vmatpush3.bf16.msra.mxu0 %v2335_v24  ;;  %v1505_v24 = vld [vmem:[%s435_s18] sm:$0xff] }
  0x90   : > { %2202 = vmatprep.subr.bf16.mxu0 %v2382_v1 }
  0x93   : > { %2203 = vmatpush3.bf16.msra.mxu0 %v2336_v25 }
  0x94   : > { %2204 = vmatprep.subr.bf16.mxu0 %v2382_v1 }
  0x97   : > { %2205 = vmatpush3.bf16.msra.mxu0 %v2337_v26 }
  0x98   : > { %2206 = vmatprep.subr.bf16.mxu0 %v2382_v1 }
  0x9b   : > { %2207 = vmatpush3.bf16.msra.mxu0 %v2338_v27  ;;  %v1506_v27 = vld [vmem:[%s435_s18 + $0x8] sm:$0xff] }
  0x9c   : > { %2208 = vmatprep.subr.bf16.mxu0 %v2382_v1 }
  0x9f   : > { %2209 = vmatpush3.bf16.msra.mxu0 %v2339_v28 }
  0xa0   : > { %2210 = vmatprep.subr.bf16.mxu0 %v2382_v1 }
  0xa3   : > { %2211 = vmatpush3.bf16.msra.mxu0 %v2340_v29 }
  0xa4   : > { %2212 = vmatprep.subr.bf16.mxu0 %v2382_v1 }
  0xa7   : > { %2213 = vmatpush3.bf16.msra.mxu0 %v2341_v30 }
  0xaa   : > { %2215 = vmatmul.mubr.bf16.vlgmr.msra.gmra.mrb[16].mxu0 %v1391_v33 }
  0xfd   : > { %v592_v34 = vpop.f32.mrb[0].mxu0 }
  0xfe   : > { %v682_v35 = vpop.f32.mrb[0].mxu1  ;;  %v2056_v36 = vpop.f32.mrb[1].mxu0 }
  0xff   : > { %v683_v37 = vadd.f32 %v682_v35, %v592_v34  ;;  %v2076_v38 = vpop.f32.mrb[1].mxu1  ;;  %v595_v39 = vpop.f32.mrb[2].mxu0 }
 0x100   : > { %v685_v40 = vpop.f32.mrb[2].mxu1  ;;  %v2057_v41 = vpop.f32.mrb[3].mxu0 }
 0x101   : > { %v686_v42 = vadd.f32 %v685_v40, %v595_v39  ;;  %v2077_v43 = vpop.f32.mrb[3].mxu1 }
 0x11d   : > { %v793_v44 = vpop.f32.mrb[4].mxu0 }
 0x11e   : > { %v800_v45 = vadd.f32 %v793_v44, %v683_v37  ;;  %v2096_v46 = vpop.f32.mrb[5].mxu0  ;;  %v907_v47 = vpop.f32.mrb[4].mxu1 }
 0x11f   : > { %v796_v48 = vpop.f32.mrb[6].mxu0  ;;  %v2116_v1 = vpop.f32.mrb[5].mxu1 }
 0x120   : > { %v801_v49 = vadd.f32 %v796_v48, %v686_v42  ;;  %v914_v50 = vadd.f32 %v907_v47, %v800_v45  ;;  %v2097_v51 = vpop.f32.mrb[7].mxu0  ;;  %v910_v52 = vpop.f32.mrb[6].mxu1 }
 0x121   : > { %v2117_v53 = vpop.f32.mrb[7].mxu1 }
 0x122   : > { %v915_v54 = vadd.f32 %v910_v52, %v801_v49 }
 0x13d   : > { %v1022_v55 = vpop.f32.mrb[8].mxu0 }
 0x13e   : > { %v1029_v56 = vadd.f32 %v1022_v55, %v914_v50  ;;  %v2136_v57 = vpop.f32.mrb[9].mxu0  ;;  %v1134_v58 = vpop.f32.mrb[8].mxu1 }
 0x13f   : > { %v1025_v59 = vpop.f32.mrb[10].mxu0  ;;  %v2156_v60 = vpop.f32.mrb[9].mxu1 }
 0x140   : > { %v1030_v61 = vadd.f32 %v1025_v59, %v915_v54  ;;  %v1141_v62 = vadd.f32 %v1134_v58, %v1029_v56  ;;  %v2137_v63 = vpop.f32.mrb[11].mxu0  ;;  %v1137_v0 = vpop.f32.mrb[10].mxu1 }
 0x141   : > { %v2157_v2 = vpop.f32.mrb[11].mxu1 }
 0x142   : > { %v1142_v3 = vadd.f32 %v1137_v0, %v1030_v61 }
 0x15d   : > { %v1248_v4 = vpop.f32.mrb[12].mxu0 }
 0x15e   : > { %v1255_v5 = vadd.f32 %v1248_v4, %v1141_v62  ;;  %v2176_v6 = vpop.f32.mrb[13].mxu0  ;;  %v1363_v7 = vpop.f32.mrb[12].mxu1 }
 0x15f   : > { %v1251_v8 = vpop.f32.mrb[14].mxu0  ;;  %v2196_v9 = vpop.f32.mrb[13].mxu1 }
 0x160   : > { %v1256_v10 = vadd.f32 %v1251_v8, %v1142_v3  ;;  %v1370_v11 = vadd.f32 %v1363_v7, %v1255_v5  ;;  %v2177_v12 = vpop.f32.mrb[15].mxu0  ;;  %v1366_v13 = vpop.f32.mrb[14].mxu1 }
 0x161   : > { %v2197_v14 = vpop.f32.mrb[15].mxu1 }
 0x162   : > { %v1371_v15 = vadd.f32 %v1366_v13, %v1256_v10 }
 0x17d   : > { %v1475_v16 = vpop.f32.mrb[16].mxu0 }
 0x17e   : > { %v1482_v18 = vadd.f32 %v1475_v16, %v1370_v11  ;;  %v2216_v19 = vpop.f32.mrb[17].mxu0 }
 0x17f   : > { %v1478_v20 = vpop.f32.mrb[18].mxu0 }
 0x180   : > { %v1491_v21 = vadd.f32 %v1945_v17, %v1482_v18  ;;  %v1483_v22 = vadd.f32 %v1478_v20, %v1371_v15  ;;  %v2217_v23 = vpop.f32.mrb[19].mxu0 }
 0x182   : > { %v1493_v25 = vmax.f32 %v1491_v21, 0.0  ;;  %v1492_v26 = vadd.f32 %v1945_v17, %v1483_v22 }
 0x184   : > { %v1507_v28 = vadd.f32 %v1505_v24, %v1493_v25  ;;  %v1494_v29 = vmax.f32 %v1492_v26, 0.0 }
 0x186   : > { %v1955_v30 = vpack.c.bf16 %v1494_v29, %v1493_v25  ;;  %v1508_v31 = vadd.f32 %v1506_v27, %v1494_v29  ;;  %1509 = vst [vmem:[%s453_s13] sm:$0xff] %v1507_v28 }
 0x188   : > { %1956 = vst [vmem:[%s444_s19] sm:$0xff] %v1955_v30   ;;  %1510 = vst [vmem:[%s453_s13 + $0x8] sm:$0xff] %v1508_v31 }
 0x189 PF: > { %s18_s28 = sadd.s32 1, %s2380_s28   ;;  %s2853_s24 = smov %s2372_s26 }
 0x18a   : > { %p15_p10 = scmp.ge.s32.totalorder %s18_s28, 34   ;;  %s2854_s25 = smov %s2376_s27 }
 0x18b   : > { %s2855_s26 = smov %s2858_s29  ;;  %s2856_s27 = smov %s2862_s30 }
 0x18c   :  { %17 = sbr.rel (!%p15_p10) target bundleno = 3 (0x3), region = 103 }

// kernel: a_call__.5
= control target key start
LH: loop header
LB: loop body
LE: loop exit
PB: predicated region body
PF: predicated region fallthrough
CT: control target
= control target key end

     0   :  { %s2451_s24 = smov 0   ;;  %s2453_s25 = smov 0   ;;  %s2874_s0 = inlined_call_operand.vmem [shape: bf16[2,18,18,128], index: 0, kind: input, shape index: {}, may-alias: {0,1,2}]   ;;  %s2875_s1 = inlined_call_operand.vmem [shape: bf16[2,18,18,128], index: 1, kind: input, shape index: {}, may-alias: {0,1,2}]   ;;  %s2876_s2 = inlined_call_operand.vmem [shape: bf16[2,18,18,128], index: 2, kind: input, shape index: {}, may-alias: {0,1,2}]   ;;  %s2877_s3 = inlined_call_operand.vmem [shape: bf16[3,3,128,128], index: 3, kind: input, shape index: {}]   ;;  %s2878_s4 = inlined_call_operand.vmem [shape: f32[1,128], index: 4, kind: input, shape index: {}]   ;;  %s2879_s5 = inlined_call_operand.vmem [shape: f32[2,16,16,128], index: 5, kind: input, shape index: {}, may-alias: {5,7}]   ;;  %s2880_s6 = inlined_call_operand.vmem [shape: bf16[2,16,16,128], index: 6, kind: output, shape index: {0}]   ;;  %s2881_s7 = inlined_call_operand.vmem [shape: f32[2,16,16,128], index: 7, kind: output, shape index: {1}, may-alias: {5,7}]  }
   0x1   :  { %s2455_s26 = smov 0   ;;  %s2457_s27 = smov 0  }
   0x2   :  { %s2459_s28 = smov 0  }
   0x3 LB: > { %s27_s29 = sadd.s32 1, %s2399_s26  ;;  %s30_s30 = sadd.s32 1, %s2403_s27  ;;  %s2407_s28 = sphi %s2459_s28, %s18_s28   ;;  %s2403_s27 = sphi %s2457_s27, %s2885_s27   ;;  %s2399_s26 = sphi %s2455_s26, %s2884_s26   ;;  %s2395_s25 = sphi %s2453_s25, %s2883_s25   ;;  %s2391_s24 = sphi %s2451_s24, %s2882_s24  }
   0x4   : > { %p28_p0 = scmp.ge.s32.totalorder %s27_s29, 16  ;;  %p1753_p1 = scmp.ge.s32.totalorder %s2407_s28, 1 }
   0x5   : > { %p318_p2 = scmp.lt.s32.totalorder %s2407_s28, 33 }
   0x6   : > { %s2887_s29 = smov (%p28_p0, %s27_s29), 0  ;;  %s2889_s30 = smov (!%p28_p0, %s30_s30), %s2403_s27 }
   0x7   : > { %p319_p3 = pnand %p1753_p1, %p318_p2  ;;  %p32_p4 = scmp.ge.s32.totalorder %s2889_s30, 2 }
   0x8   : > { %v2291_v0 = vld [vmem:[%s2877_s3 + $0x40] sm:$0xff] (!%p319_p3)   ;;  %v2409_v1 = vmov (!%p319_p3), 0.0   ;;  %v2293_v3 = vld [vmem:[%s2877_s3 + $0x48] sm:$0xff] (!%p319_p3)   ;;  %vm2410_vm0 = vmmov (!%p319_p3), 0   ;;  %p396_p5 = scmp.lt.s32.totalorder (!%p319_p3), %s2395_s25, 1  ;;  %p398_p6 = scmp.lt.s32.totalorder (!%p319_p3), %s2391_s24, 17 }
   0x9   : > { %s2891_s30 = smov (%p32_p4, %s2889_s30), 0  ;;  %322 = sbr.rel (%p319_p3) target bundleno = 393 (0x189), region = 44 }
   0xa   : > { %2065 = vmatprep.subr.bf16.mxu0 (!%p319_p3), %v2409_v1  ;;  %2085 = vmatprep.subr.bf16.mxu1 (!%p319_p3), %v2409_v1  ;;  %v2292_v2 = vld [vmem:[%s2877_s3] sm:$0xff] (!%p319_p3)   ;;  %v2294_v4 = vld [vmem:[%s2877_s3 + $0x8] sm:$0xff] (!%p319_p3)   ;;  %v2295_v5 = vld [vmem:[%s2877_s3 + $0x50] sm:$0xff] (!%p319_p3)   ;;  %s405_s13 = sadd.s32 (!%p319_p3), 1, %s2391_s24  ;;  %vm505_vm1 = vsmask.f32 (!%p319_p3), 7424 }
   0xb   : > { %2066 = vmatpush3.bf16.msra.mxu0 (!%p319_p3), %v2291_v0  ;;  %2081 = vmatprep.mubr.msk.bf16.mxu0 (!%p319_p3), %vm2410_vm0, %v2409_v1  ;;  %v2296_v6 = vld [vmem:[%s2877_s3 + $0x10] sm:$0xff] (!%p319_p3)   ;;  %v2297_v7 = vld [vmem:[%s2877_s3 + $0x58] sm:$0xff] (!%p319_p3)   ;;  %v2299_v9 = vld [vmem:[%s2877_s3 + $0x60] sm:$0xff] (!%p319_p3)   ;;  %p408_p7 = scmp.lt.s32.totalorder (!%p319_p3), %s405_s13, 17  ;;  %vm715_vm2 = vcmask (!%p319_p3), 1046528   ;;  %p429_p9 = scmp.lt.s32.totalorder (!%p319_p3), %s2391_s24, 15 }
   0xc   : > { %2086 = vmatpush3.bf16.msra.mxu1 (!%p319_p3), %v2292_v2  ;;  %2067 = vmatprep.subr.bf16.mxu0 (!%p319_p3), %v2409_v1  ;;  %v2298_v8 = vld [vmem:[%s2877_s3 + $0x18] sm:$0xff] (!%p319_p3)   ;;  %v2300_v10 = vld [vmem:[%s2877_s3 + $0x20] sm:$0xff] (!%p319_p3)   ;;  %v2301_v13 = vld [vmem:[%s2877_s3 + $0x68] sm:$0xff] (!%p319_p3)  }
   0xd   : > { %2087 = vmatprep.subr.bf16.mxu1 (!%p319_p3), %v2409_v1  ;;  %2101 = vmatprep.mubr.msk.bf16.mxu1 (!%p319_p3), %vm2410_vm0, %v2409_v1  ;;  %v2302_v14 = vld [vmem:[%s2877_s3 + $0x28] sm:$0xff] (!%p319_p3)   ;;  %v2303_v16 = vld [vmem:[%s2877_s3 + $0x70] sm:$0xff] (!%p319_p3)   ;;  %v2305_v21 = vld [vmem:[%s2877_s3 + $0x78] sm:$0xff] (!%p319_p3)  }
   0xe   : > { %v2304_v20 = vld [vmem:[%s2877_s3 + $0x30] sm:$0xff] (!%p319_p3)   ;;  %v2306_v22 = vld [vmem:[%s2877_s3 + $0x38] sm:$0xff] (!%p319_p3)   ;;  %v2309_v26 = vld [vmem:[%s2877_s3 + $0x80] sm:$0xff] (!%p319_p3)  }
   0xf   : > { %2068 = vmatpush3.bf16.msra.mxu0 (!%p319_p3), %v2293_v3  ;;  %v2310_v27 = vld [vmem:[%s2877_s3 + $0xc0] sm:$0xff] (!%p319_p3)   ;;  %v2311_v28 = vld [vmem:[%s2877_s3 + $0x88] sm:$0xff] (!%p319_p3)   ;;  %v2313_v30 = vld [vmem:[%s2877_s3 + $0x90] sm:$0xff] (!%p319_p3)  }
  0x10   : > { %s2893_s25 = smov (!%p396_p5, %s2395_s25), 1  ;;  %2088 = vmatpush3.bf16.msra.mxu1 %v2294_v4  ;;  %2069 = vmatprep.subr.bf16.mxu0 %v2409_v1  ;;  %s2895_s13 = smov (!%p408_p7, %s405_s13), 17  ;;  %v2312_v29 = vld [vmem:[%s2877_s3 + $0xc8] sm:$0xff]   ;;  %v2314_v31 = vld [vmem:[%s2877_s3 + $0xd0] sm:$0xff]   ;;  %v2315_v32 = vld [vmem:[%s2877_s3 + $0x98] sm:$0xff]  }
  0x11   : > { %s399_s16 = scalar_select %p398_p6, %s2391_s24, 17  ;;  %2089 = vmatprep.subr.bf16.mxu1 %v2409_v1  ;;  %v2316_v33 = vld [vmem:[%s2877_s3 + $0xd8] sm:$0xff]   ;;  %v2317_v34 = vld [vmem:[%s2877_s3 + $0xa0] sm:$0xff]   ;;  %v2319_v36 = vld [vmem:[%s2877_s3 + $0xa8] sm:$0xff]  }
  0x12   : > { %s2515_s19 = smul.u32 54, %s2893_s25  ;;  %v2318_v35 = vld [vmem:[%s2877_s3 + $0xe0] sm:$0xff]   ;;  %v2320_v37 = vld [vmem:[%s2877_s3 + $0xe8] sm:$0xff]   ;;  %v2321_v38 = vld [vmem:[%s2877_s3 + $0xb0] sm:$0xff]   ;;  %s1758_s8 = sshll.u32 %s2893_s25, 5 }
  0x13   : > { %s2245_s22 = smul.u32 3, %s399_s16  ;;  %2070 = vmatpush3.bf16.msra.mxu0 %v2295_v5  ;;  %v2322_v39 = vld [vmem:[%s2877_s3 + $0xf0] sm:$0xff]   ;;  %v2323_v41 = vld [vmem:[%s2877_s3 + $0xb8] sm:$0xff]   ;;  %v2325_v44 = vld [vmem:[%s2877_s3 + $0x100] sm:$0xff]  }
  0x14   : > { %2090 = vmatpush3.bf16.msra.mxu1 %v2296_v6  ;;  %2071 = vmatprep.subr.bf16.mxu0 %v2409_v1  ;;  %s2247_s15 = smul.u32 3, %s2895_s13  ;;  %v2324_v43 = vld [vmem:[%s2877_s3 + $0xf8] sm:$0xff]   ;;  %v2327_v47 = vld [vmem:[%s2877_s3 + $0x140] sm:$0xff]   ;;  %v2328_v48 = vld [vmem:[%s2877_s3 + $0x108] sm:$0xff]  }
  0x15   : > { %s402_s23 = sadd.s32 %s2515_s19, %s2245_s22  ;;  %2091 = vmatprep.subr.bf16.mxu1 %v2409_v1  ;;  %v2329_v49 = vld [vmem:[%s2877_s3 + $0x148] sm:$0xff]   ;;  %v2330_v50 = vld [vmem:[%s2877_s3 + $0x110] sm:$0xff]   ;;  %v2332_v52 = vld [vmem:[%s2877_s3 + $0x118] sm:$0xff]  }
  0x16   : > { %s1754_s12 = sshll.u32 %s402_s23, 2  ;;  %s412_s21 = sadd.s32 %s2247_s15, %s2515_s19  ;;  %v2331_v51 = vld [vmem:[%s2877_s3 + $0x150] sm:$0xff]   ;;  %v2333_v53 = vld [vmem:[%s2877_s3 + $0x158] sm:$0xff]   ;;  %v2334_v54 = vld [vmem:[%s2877_s3 + $0x120] sm:$0xff]  }
  0x17   : > { %2072 = vmatpush3.bf16.msra.mxu0 %v2297_v7  ;;  %s404_s18 = scalar_lea.vmem %s2874_s0, %s1754_s12  ;;  %s1755_s9 = sshll.u32 %s412_s21, 2  ;;  %v2335_v55 = vld [vmem:[%s2877_s3 + $0x160] sm:$0xff]   ;;  %v2336_v56 = vld [vmem:[%s2877_s3 + $0x128] sm:$0xff]   ;;  %v2338_v60 = vld [vmem:[%s2877_s3 + $0x130] sm:$0xff]  }
  0x18   : > { %2092 = vmatpush3.bf16.msra.mxu1 %v2298_v8  ;;  %2073 = vmatprep.subr.bf16.mxu0 %v2409_v1  ;;  %v2543_v11 = vld [vmem:[%s404_s18] sm:$0xff]   ;;  %v2545_v12 = vld [vmem:[%s404_s18 + $0x8] ss:$0 sps:$4 sm:$0x11]   ;;  %s2591_s15 = scalar_lea.vmem %s2875_s1, %s1755_s9  ;;  %s416_s12 = sadd.s32 2, %s2391_s24  ;;  %v2339_v0 = vld [vmem:[%s2877_s3 + $0x170] sm:$0xff]  }
  0x19   : > { %2093 = vmatprep.subr.bf16.mxu1 %v2409_v1  ;;  %v509_v15 = vshll.u32 %v2543_v11, 16  ;;  %v507_v17 = vshrl.u32 %v2543_v11, 16  ;;  %v514_v19 = vshll.u32 %v2545_v12, 16  ;;  %p419_p8 = scmp.lt.s32.totalorder %s416_s12, 17  ;;  %v716_v40 = vrot.slane %v2543_v11, 1  ;;  %v2659_v46 = vld [vmem:[%s2591_s15] sm:$0xff]  }
  0x1a   : > { %v717_v42 = vrot.slane %v2545_v12, 1  ;;  %v2342_v57 = vld [vmem:[%s2591_s15 + $0x8] ss:$0 sps:$4 sm:$0x11]   ;;  %v948_v58 = vshll.u32 %v2659_v46, 16  ;;  %v946_v61 = vshrl.u32 %v2659_v46, 16 }
  0x1b   : > { %2074 = vmatpush3.bf16.msra.mxu0 %v2299_v9  ;;  %v511_v18 = vrot.slane %v509_v15, 1  ;;  %v516_v24 = vrot.slane %v514_v19, 1  ;;  %s2897_s12 = smov (!%p419_p8, %s416_s12), 17  ;;  %v2337_v59 = vld [vmem:[%s2877_s3 + $0x168] sm:$0xff]   ;;  %v953_v63 = vshll.u32 %v2342_v57, 16  ;;  %v2340_v2 = vld [vmem:[%s2877_s3 + $0x138] sm:$0xff]  }
  0x1c   : > { %2094 = vmatpush3.bf16.msra.mxu1 %v2300_v10  ;;  %2075 = vmatprep.subr.bf16.mxu0 %v2409_v1  ;;  %s2248_s9 = smul.u32 3, %s2897_s12  ;;  %v718_v45 = vsel %vm715_vm2, %v716_v40, %v717_v42  ;;  %v950_v62 = vrot.slane %v948_v58, 1  ;;  %v2341_v5 = vld [vmem:[%s2877_s3 + $0x178] sm:$0xff]   ;;  %v1066_v6 = vrot.slane %v2659_v46, 1  ;;  %v1067_v7 = vrot.slane %v2342_v57, 1  ;;  %v2343_v9 = vld [vmem:[%s2877_s3 + $0x180] sm:$0xff]  }
  0x1d   : > { %2095 = vmatprep.subr.bf16.mxu1 %v2409_v1  ;;  %v512_v23 = vor.u32 %v511_v18, %v507_v17  ;;  %v955_v4 = vrot.slane %v953_v63, 1  ;;  %v2345_v12 = vld [vmem:[%s2877_s3 + $0x188] sm:$0xff]   ;;  %v2348_v15 = vld [vmem:[%s2877_s3 + $0x1d0] sm:$0xff]   ;;  %v2350_v17 = vld [vmem:[%s2877_s3 + $0x1d8] sm:$0xff]   ;;  %s2899_s24 = smov (!%p429_p9, %s2391_s24), 15 }
  0x1e   : > { %s423_s12 = sadd.s32 %s2248_s9, %s2515_s19  ;;  %v951_v3 = vor.u32 %v950_v62, %v946_v61  ;;  %v1068_v10 = vsel %vm715_vm2, %v1066_v6, %v1067_v7  ;;  %v2351_v18 = vld [vmem:[%s2877_s3 + $0x1a0] sm:$0xff]   ;;  %v2366_v40 = vld [vmem:[%s2877_s3 + $0x228] sm:$0xff]   ;;  %v2368_v42 = vld [vmem:[%s2877_s3 + $0x238] sm:$0xff]   ;;  %s1757_s23 = sshll.u32 %s2899_s24, 1 }
  0x1f   : > { %2076 = vmatpush3.bf16.msra.mxu0 %v2301_v13  ;;  %v517_v25 = vsel %vm505_vm1, %v512_v23, %v516_v24  ;;  %s1756_s13 = sshll.u32 %s423_s12, 2  ;;  %v2346_v13 = vld [vmem:[%s2877_s3 + $0x1c8] sm:$0xff]   ;;  %v2352_v19 = vld [vmem:[%s2877_s3 + $0x1e0] sm:$0xff]   ;;  %s433_s9 = sadd.s32 %s1758_s8, %s1757_s23 }
  0x20   : > { %2096 = vmatpush3.bf16.msra.mxu1 %v2302_v14  ;;  %2077 = vmatprep.subr.bf16.mxu0 %v2409_v1  ;;  %s2677_s11 = scalar_lea.vmem %s2876_s2, %s1756_s13  ;;  %v956_v8 = vsel %vm505_vm1, %v951_v3, %v955_v4  ;;  %v2347_v14 = vld [vmem:[%s2877_s3 + $0x190] sm:$0xff]   ;;  %s1759_s10 = sshll.u32 %s433_s9, 3 }
  0x21   : > { %2097 = vmatprep.subr.bf16.mxu1 %v2409_v1  ;;  %v2361_v23 = vld [vmem:[%s2677_s11 + $0x8] ss:$0 sps:$4 sm:$0x11]   ;;  %s435_s15 = scalar_lea.vmem %s2879_s5, %s1759_s10  ;;  %s1762_s24 = sshll.u32 %s433_s9, 2 }
  0x22   : > { %s453_s20 = scalar_lea.vmem %s2881_s7, %s1759_s10  ;;  %s444_s13 = scalar_lea.vmem %s2880_s6, %s1762_s24 }
  0x23   : > { %2078 = vmatpush3.bf16.msra.mxu0 %v2303_v16  ;;  %v2349_v16 = vld [vmem:[%s2877_s3 + $0x198] sm:$0xff]  }
  0x24   : > { %2098 = vmatpush3.bf16.msra.mxu1 %v2304_v20  ;;  %2079 = vmatprep.subr.bf16.mxu0 %v2409_v1  ;;  %v2359_v20 = vld [vmem:[%s2677_s11] sm:$0xff]  }
  0x25   : > { %2099 = vmatprep.subr.bf16.mxu1 %v2409_v1  ;;  %v1298_v24 = vshll.u32 %v2359_v20, 16 }
  0x27   : > { %2080 = vmatpush3.bf16.msra.mxu0 %v2305_v21  ;;  %v2353_v21 = vld [vmem:[%s2877_s3 + $0x1a8] sm:$0xff]  }
  0x28   : > { %2100 = vmatpush3.bf16.msra.mxu1 %v2306_v22  ;;  %2105 = vmatprep.subr.bf16.mxu0 %v2409_v1  ;;  %v2354_v22 = vld [vmem:[%s2877_s3 + $0x1e8] sm:$0xff]  }
  0x29   : > { %2125 = vmatprep.subr.bf16.mxu1 %v2409_v1 }
  0x2a   : > { %2082 = vmatmul.mubr.bf16.vlgmr.msra.gmra.mrb[0].mxu0 %v517_v25  ;;  %v2355_v25 = vld [vmem:[%s2877_s3 + $0x1b0] sm:$0xff]  }
  0x2b   : > { %2102 = vmatmul.mubr.bf16.vlgmr.msra.gmra.mrb[0].mxu1 %v2543_v11  ;;  %2106 = vmatpush3.bf16.msra.mxu0 %v2309_v26  ;;  %v2344_v11 = vld [vmem:[%s2877_s3 + $0x1c0] sm:$0xff]   ;;  %v2356_v26 = vld [vmem:[%s2877_s3 + $0x1f0] sm:$0xff]  }
  0x2c   : > { %2126 = vmatpush3.bf16.msra.mxu1 %v2310_v27  ;;  %2107 = vmatprep.subr.bf16.mxu0 %v2409_v1  ;;  %v1296_v27 = vshrl.u32 %v2359_v20, 16 }
  0x2d   : > { %2127 = vmatprep.subr.bf16.mxu1 %v2409_v1  ;;  %2121 = vmatprep.mubr.msk.bf16.mxu0 %vm2410_vm0, %v2409_v1 }
  0x2e   : > { %2141 = vmatprep.mubr.msk.bf16.mxu1 %vm2410_vm0, %v2409_v1 }
  0x2f   : > { %2108 = vmatpush3.bf16.msra.mxu0 %v2311_v28  ;;  %v1300_v28 = vrot.slane %v1298_v24, 1 }
  0x30   : > { %2128 = vmatpush3.bf16.msra.mxu1 %v2312_v29  ;;  %2109 = vmatprep.subr.bf16.mxu0 %v2409_v1  ;;  %v1303_v29 = vshll.u32 %v2361_v23, 16 }
  0x31   : > { %2129 = vmatprep.subr.bf16.mxu1 %v2409_v1 }
  0x33   : > { %2110 = vmatpush3.bf16.msra.mxu0 %v2313_v30  ;;  %v2357_v30 = vld [vmem:[%s2877_s3 + $0x1b8] sm:$0xff]  }
  0x34   : > { %2130 = vmatpush3.bf16.msra.mxu1 %v2314_v31  ;;  %2111 = vmatprep.subr.bf16.mxu0 %v2409_v1  ;;  %v2358_v31 = vld [vmem:[%s2877_s3 + $0x1f8] sm:$0xff]  }
  0x35   : > { %2131 = vmatprep.subr.bf16.mxu1 %v2409_v1 }
  0x37   : > { %2112 = vmatpush3.bf16.msra.mxu0 %v2315_v32  ;;  %v1301_v32 = vor.u32 %v1300_v28, %v1296_v27 }
  0x38   : > { %2132 = vmatpush3.bf16.msra.mxu1 %v2316_v33  ;;  %2113 = vmatprep.subr.bf16.mxu0 %v2409_v1  ;;  %v1305_v33 = vrot.slane %v1303_v29, 1  ;;  %v1972_v29 = vld [vmem:[%s2878_s4] ss:$0 sm:$0xff] }
  0x39   : > { %2133 = vmatprep.subr.bf16.mxu1 %v2409_v1 }
  0x3b   : > { %2114 = vmatpush3.bf16.msra.mxu0 %v2317_v34  ;;  %v2360_v34 = vld [vmem:[%s2877_s3 + $0x200] sm:$0xff]  }
  0x3c   : > { %2134 = vmatpush3.bf16.msra.mxu1 %v2318_v35  ;;  %2115 = vmatprep.subr.bf16.mxu0 %v2409_v1  ;;  %v1306_v35 = vsel %vm505_vm1, %v1301_v32, %v1305_v33 }
  0x3d   : > { %2135 = vmatprep.subr.bf16.mxu1 %v2409_v1 }
  0x3f   : > { %2116 = vmatpush3.bf16.msra.mxu0 %v2319_v36  ;;  %v2362_v36 = vld [vmem:[%s2877_s3 + $0x208] sm:$0xff]  }
  0x40   : > { %2136 = vmatpush3.bf16.msra.mxu1 %v2320_v37  ;;  %2117 = vmatprep.subr.bf16.mxu0 %v2409_v1  ;;  %v2363_v37 = vld [vmem:[%s2877_s3 + $0x210] sm:$0xff]  }
  0x41   : > { %2137 = vmatprep.subr.bf16.mxu1 %v2409_v1 }
  0x43   : > { %2118 = vmatpush3.bf16.msra.mxu0 %v2321_v38  ;;  %v2364_v38 = vld [vmem:[%s2877_s3 + $0x218] sm:$0xff]  }
  0x44   : > { %2138 = vmatpush3.bf16.msra.mxu1 %v2322_v39  ;;  %2119 = vmatprep.subr.bf16.mxu0 %v2409_v1  ;;  %v2365_v39 = vld [vmem:[%s2877_s3 + $0x220] sm:$0xff]  }
  0x45   : > { %2139 = vmatprep.subr.bf16.mxu1 %v2409_v1 }
  0x47   : > { %2120 = vmatpush3.bf16.msra.mxu0 %v2323_v41  ;;  %v2367_v41 = vld [vmem:[%s2877_s3 + $0x230] sm:$0xff]  }
  0x48   : > { %2140 = vmatpush3.bf16.msra.mxu1 %v2324_v43  ;;  %2145 = vmatprep.subr.bf16.mxu0 %v2409_v1  ;;  %v1416_v43 = vrot.slane %v2359_v20, 1 }
  0x49   : > { %2165 = vmatprep.subr.bf16.mxu1 %v2409_v1 }
  0x4a   : > { %2122 = vmatmul.mubr.bf16.vlgmr.msra.gmra.mrb[4].mxu0 %v718_v45 }
  0x4b   : > { %2146 = vmatpush3.bf16.msra.mxu0 %v2325_v44  ;;  %2142 = vmatmul.mubr.bf16.vlgmr.msra.gmra.mrb[4].mxu1 %v2659_v46  ;;  %v1417_v44 = vrot.slane %v2361_v23, 1 }
  0x4c   : > { %2166 = vmatpush3.bf16.msra.mxu1 %v2327_v47  ;;  %2147 = vmatprep.subr.bf16.mxu0 %v2409_v1 }
  0x4d   : > { %2167 = vmatprep.subr.bf16.mxu1 %v2409_v1  ;;  %2161 = vmatprep.mubr.msk.bf16.mxu0 %vm2410_vm0, %v2409_v1  ;;  %v1418_v45 = vsel %vm715_vm2, %v1416_v43, %v1417_v44 }
  0x4e   : > { %2181 = vmatprep.mubr.msk.bf16.mxu1 %vm2410_vm0, %v2409_v1 }
  0x4f   : > { %2148 = vmatpush3.bf16.msra.mxu0 %v2328_v48 }
  0x50   : > { %2168 = vmatpush3.bf16.msra.mxu1 %v2329_v49  ;;  %2149 = vmatprep.subr.bf16.mxu0 %v2409_v1 }
  0x51   : > { %2169 = vmatprep.subr.bf16.mxu1 %v2409_v1 }
  0x53   : > { %2150 = vmatpush3.bf16.msra.mxu0 %v2330_v50 }
  0x54   : > { %2170 = vmatpush3.bf16.msra.mxu1 %v2331_v51  ;;  %2151 = vmatprep.subr.bf16.mxu0 %v2409_v1 }
  0x55   : > { %2171 = vmatprep.subr.bf16.mxu1 %v2409_v1 }
  0x57   : > { %2152 = vmatpush3.bf16.msra.mxu0 %v2332_v52 }
  0x58   : > { %2172 = vmatpush3.bf16.msra.mxu1 %v2333_v53  ;;  %2153 = vmatprep.subr.bf16.mxu0 %v2409_v1 }
  0x59   : > { %2173 = vmatprep.subr.bf16.mxu1 %v2409_v1 }
  0x5b   : > { %2154 = vmatpush3.bf16.msra.mxu0 %v2334_v54 }
  0x5c   : > { %2174 = vmatpush3.bf16.msra.mxu1 %v2335_v55  ;;  %2155 = vmatprep.subr.bf16.mxu0 %v2409_v1 }
  0x5d   : > { %2175 = vmatprep.subr.bf16.mxu1 %v2409_v1 }
  0x5f   : > { %2156 = vmatpush3.bf16.msra.mxu0 %v2336_v56 }
  0x60   : > { %2176 = vmatpush3.bf16.msra.mxu1 %v2337_v59  ;;  %2157 = vmatprep.subr.bf16.mxu0 %v2409_v1 }
  0x61   : > { %2177 = vmatprep.subr.bf16.mxu1 %v2409_v1 }
  0x63   : > { %2158 = vmatpush3.bf16.msra.mxu0 %v2338_v60 }
  0x64   : > { %2178 = vmatpush3.bf16.msra.mxu1 %v2339_v0  ;;  %2159 = vmatprep.subr.bf16.mxu0 %v2409_v1 }
  0x65   : > { %2179 = vmatprep.subr.bf16.mxu1 %v2409_v1 }
  0x67   : > { %2160 = vmatpush3.bf16.msra.mxu0 %v2340_v2 }
  0x68   : > { %2180 = vmatpush3.bf16.msra.mxu1 %v2341_v5  ;;  %2185 = vmatprep.subr.bf16.mxu0 %v2409_v1 }
  0x69   : > { %2205 = vmatprep.subr.bf16.mxu1 %v2409_v1 }
  0x6a   : > { %2162 = vmatmul.mubr.bf16.vlgmr.msra.gmra.mrb[8].mxu0 %v956_v8 }
  0x6b   : > { %2186 = vmatpush3.bf16.msra.mxu0 %v2343_v9  ;;  %2182 = vmatmul.mubr.bf16.vlgmr.msra.gmra.mrb[8].mxu1 %v1068_v10 }
  0x6c   : > { %2206 = vmatpush3.bf16.msra.mxu1 %v2344_v11  ;;  %2187 = vmatprep.subr.bf16.mxu0 %v2409_v1 }
  0x6d   : > { %2207 = vmatprep.subr.bf16.mxu1 %v2409_v1  ;;  %2201 = vmatprep.mubr.msk.bf16.mxu0 %vm2410_vm0, %v2409_v1 }
  0x6e   : > { %2221 = vmatprep.mubr.msk.bf16.mxu1 %vm2410_vm0, %v2409_v1 }
  0x6f   : > { %2188 = vmatpush3.bf16.msra.mxu0 %v2345_v12 }
  0x70   : > { %2208 = vmatpush3.bf16.msra.mxu1 %v2346_v13  ;;  %2189 = vmatprep.subr.bf16.mxu0 %v2409_v1 }
  0x71   : > { %2209 = vmatprep.subr.bf16.mxu1 %v2409_v1 }
  0x73   : > { %2190 = vmatpush3.bf16.msra.mxu0 %v2347_v14 }
  0x74   : > { %2210 = vmatpush3.bf16.msra.mxu1 %v2348_v15  ;;  %2191 = vmatprep.subr.bf16.mxu0 %v2409_v1 }
  0x75   : > { %2211 = vmatprep.subr.bf16.mxu1 %v2409_v1 }
  0x77   : > { %2192 = vmatpush3.bf16.msra.mxu0 %v2349_v16 }
  0x78   : > { %2212 = vmatpush3.bf16.msra.mxu1 %v2350_v17  ;;  %2193 = vmatprep.subr.bf16.mxu0 %v2409_v1 }
  0x79   : > { %2213 = vmatprep.subr.bf16.mxu1 %v2409_v1 }
  0x7b   : > { %2194 = vmatpush3.bf16.msra.mxu0 %v2351_v18 }
  0x7c   : > { %2214 = vmatpush3.bf16.msra.mxu1 %v2352_v19  ;;  %2195 = vmatprep.subr.bf16.mxu0 %v2409_v1 }
  0x7d   : > { %2215 = vmatprep.subr.bf16.mxu1 %v2409_v1 }
  0x7f   : > { %2196 = vmatpush3.bf16.msra.mxu0 %v2353_v21 }
  0x80   : > { %2216 = vmatpush3.bf16.msra.mxu1 %v2354_v22  ;;  %2197 = vmatprep.subr.bf16.mxu0 %v2409_v1 }
  0x81   : > { %2217 = vmatprep.subr.bf16.mxu1 %v2409_v1 }
  0x83   : > { %2198 = vmatpush3.bf16.msra.mxu0 %v2355_v25 }
  0x84   : > { %2218 = vmatpush3.bf16.msra.mxu1 %v2356_v26  ;;  %2199 = vmatprep.subr.bf16.mxu0 %v2409_v1 }
  0x85   : > { %2219 = vmatprep.subr.bf16.mxu1 %v2409_v1 }
  0x87   : > { %2200 = vmatpush3.bf16.msra.mxu0 %v2357_v30 }
  0x88   : > { %2220 = vmatpush3.bf16.msra.mxu1 %v2358_v31  ;;  %2225 = vmatprep.subr.bf16.mxu0 %v2409_v1 }
  0x8a   : > { %2202 = vmatmul.mubr.bf16.vlgmr.msra.gmra.mrb[12].mxu0 %v2359_v20 }
  0x8b   : > { %2226 = vmatpush3.bf16.msra.mxu0 %v2360_v34  ;;  %2222 = vmatmul.mubr.bf16.vlgmr.msra.gmra.mrb[12].mxu1 %v1306_v35 }
  0x8c   : > { %2227 = vmatprep.subr.bf16.mxu0 %v2409_v1  ;;  %2241 = vmatprep.mubr.msk.bf16.mxu0 %vm2410_vm0, %v2409_v1 }
  0x8f   : > { %2228 = vmatpush3.bf16.msra.mxu0 %v2362_v36  ;;  %v1532_v36 = vld [vmem:[%s435_s15] sm:$0xff] }
  0x90   : > { %2229 = vmatprep.subr.bf16.mxu0 %v2409_v1 }
  0x93   : > { %2230 = vmatpush3.bf16.msra.mxu0 %v2363_v37 }
  0x94   : > { %2231 = vmatprep.subr.bf16.mxu0 %v2409_v1 }
  0x97   : > { %2232 = vmatpush3.bf16.msra.mxu0 %v2364_v38 }
  0x98   : > { %2233 = vmatprep.subr.bf16.mxu0 %v2409_v1 }
  0x9b   : > { %2234 = vmatpush3.bf16.msra.mxu0 %v2365_v39  ;;  %v1533_v39 = vld [vmem:[%s435_s15 + $0x8] sm:$0xff] }
  0x9c   : > { %2235 = vmatprep.subr.bf16.mxu0 %v2409_v1 }
  0x9f   : > { %2236 = vmatpush3.bf16.msra.mxu0 %v2366_v40 }
  0xa0   : > { %2237 = vmatprep.subr.bf16.mxu0 %v2409_v1 }
  0xa3   : > { %2238 = vmatpush3.bf16.msra.mxu0 %v2367_v41 }
  0xa4   : > { %2239 = vmatprep.subr.bf16.mxu0 %v2409_v1 }
  0xa7   : > { %2240 = vmatpush3.bf16.msra.mxu0 %v2368_v42 }
  0xaa   : > { %2242 = vmatmul.mubr.bf16.vlgmr.msra.gmra.mrb[16].mxu0 %v1418_v45 }
  0xfd   : > { %v601_v46 = vpop.f32.mrb[0].mxu0 }
  0xfe   : > { %v691_v47 = vpop.f32.mrb[0].mxu1  ;;  %v2083_v48 = vpop.f32.mrb[1].mxu0 }
  0xff   : > { %v692_v49 = vadd.f32 %v691_v47, %v601_v46  ;;  %v2103_v50 = vpop.f32.mrb[1].mxu1  ;;  %v604_v51 = vpop.f32.mrb[2].mxu0 }
 0x100   : > { %v694_v52 = vpop.f32.mrb[2].mxu1  ;;  %v2084_v53 = vpop.f32.mrb[3].mxu0 }
 0x101   : > { %v695_v54 = vadd.f32 %v694_v52, %v604_v51  ;;  %v2104_v55 = vpop.f32.mrb[3].mxu1 }
 0x11d   : > { %v802_v56 = vpop.f32.mrb[4].mxu0 }
 0x11e   : > { %v809_v57 = vadd.f32 %v802_v56, %v692_v49  ;;  %v2123_v58 = vpop.f32.mrb[5].mxu0  ;;  %v916_v59 = vpop.f32.mrb[4].mxu1 }
 0x11f   : > { %v805_v60 = vpop.f32.mrb[6].mxu0  ;;  %v2143_v1 = vpop.f32.mrb[5].mxu1 }
 0x120   : > { %v810_v61 = vadd.f32 %v805_v60, %v695_v54  ;;  %v923_v62 = vadd.f32 %v916_v59, %v809_v57  ;;  %v2124_v63 = vpop.f32.mrb[7].mxu0  ;;  %v919_v0 = vpop.f32.mrb[6].mxu1 }
 0x121   : > { %v2144_v2 = vpop.f32.mrb[7].mxu1 }
 0x122   : > { %v924_v3 = vadd.f32 %v919_v0, %v810_v61 }
 0x13d   : > { %v1040_v4 = vpop.f32.mrb[8].mxu0 }
 0x13e   : > { %v1047_v5 = vadd.f32 %v1040_v4, %v923_v62  ;;  %v2163_v6 = vpop.f32.mrb[9].mxu0  ;;  %v1152_v7 = vpop.f32.mrb[8].mxu1 }
 0x13f   : > { %v1043_v8 = vpop.f32.mrb[10].mxu0  ;;  %v2183_v9 = vpop.f32.mrb[9].mxu1 }
 0x140   : > { %v1048_v10 = vadd.f32 %v1043_v8, %v924_v3  ;;  %v1159_v11 = vadd.f32 %v1152_v7, %v1047_v5  ;;  %v2164_v12 = vpop.f32.mrb[11].mxu0  ;;  %v1155_v13 = vpop.f32.mrb[10].mxu1 }
 0x141   : > { %v2184_v14 = vpop.f32.mrb[11].mxu1 }
 0x142   : > { %v1160_v15 = vadd.f32 %v1155_v13, %v1048_v10 }
 0x15d   : > { %v1266_v16 = vpop.f32.mrb[12].mxu0 }
 0x15e   : > { %v1273_v17 = vadd.f32 %v1266_v16, %v1159_v11  ;;  %v2203_v18 = vpop.f32.mrb[13].mxu0  ;;  %v1390_v19 = vpop.f32.mrb[12].mxu1 }
 0x15f   : > { %v1269_v20 = vpop.f32.mrb[14].mxu0  ;;  %v2223_v21 = vpop.f32.mrb[13].mxu1 }
 0x160   : > { %v1274_v22 = vadd.f32 %v1269_v20, %v1160_v15  ;;  %v1397_v23 = vadd.f32 %v1390_v19, %v1273_v17  ;;  %v2204_v24 = vpop.f32.mrb[15].mxu0  ;;  %v1393_v25 = vpop.f32.mrb[14].mxu1 }
 0x161   : > { %v2224_v26 = vpop.f32.mrb[15].mxu1 }
 0x162   : > { %v1398_v27 = vadd.f32 %v1393_v25, %v1274_v22 }
 0x17d   : > { %v1502_v28 = vpop.f32.mrb[16].mxu0 }
 0x17e   : > { %v1509_v30 = vadd.f32 %v1502_v28, %v1397_v23  ;;  %v2243_v31 = vpop.f32.mrb[17].mxu0 }
 0x17f   : > { %v1505_v32 = vpop.f32.mrb[18].mxu0 }
 0x180   : > { %v1518_v33 = vadd.f32 %v1972_v29, %v1509_v30  ;;  %v1510_v34 = vadd.f32 %v1505_v32, %v1398_v27  ;;  %v2244_v35 = vpop.f32.mrb[19].mxu0 }
 0x182   : > { %v1520_v37 = vmax.f32 %v1518_v33, 0.0  ;;  %v1519_v38 = vadd.f32 %v1972_v29, %v1510_v34 }
 0x184   : > { %v1534_v40 = vadd.f32 %v1532_v36, %v1520_v37  ;;  %v1521_v41 = vmax.f32 %v1519_v38, 0.0 }
 0x186   : > { %v1982_v42 = vpack.c.bf16 %v1521_v41, %v1520_v37  ;;  %v1535_v43 = vadd.f32 %v1533_v39, %v1521_v41  ;;  %1536 = vst [vmem:[%s453_s20] sm:$0xff] %v1534_v40 }
 0x188   : > { %1983 = vst [vmem:[%s444_s13] sm:$0xff] %v1982_v42   ;;  %1537 = vst [vmem:[%s453_s20 + $0x8] sm:$0xff] %v1535_v43 }
 0x189 PF: > { %s18_s28 = sadd.s32 1, %s2407_s28   ;;  %s2882_s24 = smov %s2399_s26 }
 0x18a   : > { %p15_p10 = scmp.ge.s32.totalorder %s18_s28, 34   ;;  %s2883_s25 = smov %s2403_s27 }
 0x18b   : > { %s2884_s26 = smov %s2887_s29  ;;  %s2885_s27 = smov %s2891_s30 }
 0x18c   :  { %17 = sbr.rel (!%p15_p10) target bundleno = 3 (0x3), region = 103 }

// kernel: a_call__.8
= control target key start
LH: loop header
LB: loop body
LE: loop exit
PB: predicated region body
PF: predicated region fallthrough
CT: control target
= control target key end

     0   :  { %s2424_s24 = smov 0   ;;  %s2426_s25 = smov 0   ;;  %s2843_s0 = inlined_call_operand.vmem [shape: bf16[2,32,32,128], index: 0, kind: input, shape index: {}, may-alias: {0,1,2}]   ;;  %s2844_s1 = inlined_call_operand.vmem [shape: bf16[2,32,32,128], index: 1, kind: input, shape index: {}, may-alias: {0,1,2}]   ;;  %s2845_s2 = inlined_call_operand.vmem [shape: bf16[2,32,32,128], index: 2, kind: input, shape index: {}, may-alias: {0,1,2}]   ;;  %s2846_s3 = inlined_call_operand.vmem [shape: bf16[3,3,128,128], index: 3, kind: input, shape index: {}]   ;;  %s2847_s4 = inlined_call_operand.vmem [shape: f32[1,128], index: 4, kind: input, shape index: {}]   ;;  %s2848_s5 = inlined_call_operand.vmem [shape: f32[2,16,16,128], index: 5, kind: input, shape index: {}, may-alias: {5,7}]   ;;  %s2849_s6 = inlined_call_operand.vmem [shape: bf16[2,16,16,128], index: 6, kind: output, shape index: {0}]   ;;  %s2850_s7 = inlined_call_operand.vmem [shape: f32[2,16,16,128], index: 7, kind: output, shape index: {1}, may-alias: {5,7}]  }
   0x1   :  { %s2428_s26 = smov 0   ;;  %s2430_s27 = smov 0  }
   0x2   :  { %s2432_s28 = smov 0  }
   0x3 LB: > { %s27_s29 = sadd.s32 1, %s2372_s26  ;;  %s30_s30 = sadd.s32 1, %s2376_s27  ;;  %s2380_s28 = sphi %s2432_s28, %s18_s28   ;;  %s2376_s27 = sphi %s2430_s27, %s2854_s27   ;;  %s2372_s26 = sphi %s2428_s26, %s2853_s26   ;;  %s2368_s25 = sphi %s2426_s25, %s2852_s25   ;;  %s2364_s24 = sphi %s2424_s24, %s2851_s24  }
   0x4   : > { %p28_p0 = scmp.ge.s32.totalorder %s27_s29, 16  ;;  %p1718_p1 = scmp.ge.s32.totalorder %s2380_s28, 1 }
   0x5   : > { %p318_p2 = scmp.lt.s32.totalorder %s2380_s28, 33 }
   0x6   : > { %s2856_s29 = smov (%p28_p0, %s27_s29), 0  ;;  %s2858_s30 = smov (!%p28_p0, %s30_s30), %s2376_s27 }
   0x7   : > { %p319_p3 = pnand %p1718_p1, %p318_p2  ;;  %p32_p4 = scmp.ge.s32.totalorder %s2858_s30, 2 }
   0x8   : > { %v2261_v0 = vld [vmem:[%s2846_s3 + $0x40] sm:$0xff] (!%p319_p3)   ;;  %v2382_v1 = vmov (!%p319_p3), 0.0   ;;  %v2263_v3 = vld [vmem:[%s2846_s3 + $0x48] sm:$0xff] (!%p319_p3)   ;;  %vm2383_vm0 = vmmov (!%p319_p3), 0   ;;  %p396_p5 = scmp.lt.s32.totalorder (!%p319_p3), %s2368_s25, 1  ;;  %p398_p6 = scmp.lt.s32.totalorder (!%p319_p3), %s2364_s24, 31 }
   0x9   : > { %s2860_s30 = smov (%p32_p4, %s2858_s30), 0  ;;  %322 = sbr.rel (%p319_p3) target bundleno = 393 (0x189), region = 44 }
   0xa   : > { %2039 = vmatprep.subr.bf16.mxu0 (!%p319_p3), %v2382_v1  ;;  %2059 = vmatprep.subr.bf16.mxu1 (!%p319_p3), %v2382_v1  ;;  %v2262_v2 = vld [vmem:[%s2846_s3] sm:$0xff] (!%p319_p3)   ;;  %v2264_v4 = vld [vmem:[%s2846_s3 + $0x8] sm:$0xff] (!%p319_p3)   ;;  %v2265_v5 = vld [vmem:[%s2846_s3 + $0x50] sm:$0xff] (!%p319_p3)   ;;  %s405_s11 = sadd.s32 (!%p319_p3), 8, %s2364_s24  ;;  %p429_p9 = scmp.lt.s32.totalorder (!%p319_p3), %s2364_s24, 15 }
   0xb   : > { %2040 = vmatpush3.bf16.msra.mxu0 (!%p319_p3), %v2261_v0  ;;  %2055 = vmatprep.mubr.msk.bf16.mxu0 (!%p319_p3), %vm2383_vm0, %v2382_v1  ;;  %v2266_v6 = vld [vmem:[%s2846_s3 + $0x10] sm:$0xff] (!%p319_p3)   ;;  %v2267_v7 = vld [vmem:[%s2846_s3 + $0x58] sm:$0xff] (!%p319_p3)   ;;  %v2269_v9 = vld [vmem:[%s2846_s3 + $0x60] sm:$0xff] (!%p319_p3)   ;;  %p408_p7 = scmp.lt.s32.totalorder (!%p319_p3), %s405_s11, 31 }
   0xc   : > { %2060 = vmatpush3.bf16.msra.mxu1 (!%p319_p3), %v2262_v2  ;;  %2041 = vmatprep.subr.bf16.mxu0 (!%p319_p3), %v2382_v1  ;;  %v2268_v8 = vld [vmem:[%s2846_s3 + $0x18] sm:$0xff] (!%p319_p3)   ;;  %v2270_v10 = vld [vmem:[%s2846_s3 + $0x20] sm:$0xff] (!%p319_p3)   ;;  %v2271_v11 = vld [vmem:[%s2846_s3 + $0x68] sm:$0xff] (!%p319_p3)  }
   0xd   : > { %2061 = vmatprep.subr.bf16.mxu1 (!%p319_p3), %v2382_v1  ;;  %2075 = vmatprep.mubr.msk.bf16.mxu1 (!%p319_p3), %vm2383_vm0, %v2382_v1  ;;  %v2272_v12 = vld [vmem:[%s2846_s3 + $0x28] sm:$0xff] (!%p319_p3)   ;;  %v2273_v13 = vld [vmem:[%s2846_s3 + $0x70] sm:$0xff] (!%p319_p3)   ;;  %v2275_v15 = vld [vmem:[%s2846_s3 + $0x78] sm:$0xff] (!%p319_p3)  }
   0xe   : > { %v2274_v14 = vld [vmem:[%s2846_s3 + $0x30] sm:$0xff] (!%p319_p3)   ;;  %v2276_v16 = vld [vmem:[%s2846_s3 + $0x38] sm:$0xff] (!%p319_p3)   ;;  %v2280_v22 = vld [vmem:[%s2846_s3 + $0x80] sm:$0xff] (!%p319_p3)  }
   0xf   : > { %2042 = vmatpush3.bf16.msra.mxu0 (!%p319_p3), %v2263_v3  ;;  %v2281_v23 = vld [vmem:[%s2846_s3 + $0xc0] sm:$0xff] (!%p319_p3)   ;;  %v2282_v24 = vld [vmem:[%s2846_s3 + $0x88] sm:$0xff] (!%p319_p3)   ;;  %v2284_v26 = vld [vmem:[%s2846_s3 + $0x90] sm:$0xff] (!%p319_p3)  }
  0x10   : > { %2062 = vmatpush3.bf16.msra.mxu1 %v2264_v4  ;;  %2043 = vmatprep.subr.bf16.mxu0 %v2382_v1  ;;  %s2862_s25 = smov (!%p396_p5, %s2368_s25), 1  ;;  %v2283_v25 = vld [vmem:[%s2846_s3 + $0xc8] sm:$0xff]   ;;  %v2285_v27 = vld [vmem:[%s2846_s3 + $0xd0] sm:$0xff]   ;;  %v2286_v28 = vld [vmem:[%s2846_s3 + $0x98] sm:$0xff]   ;;  %s2864_s11 = smov (!%p408_p7, %s405_s11), 31 }
  0x11   : > { %2063 = vmatprep.subr.bf16.mxu1 %v2382_v1  ;;  %s399_s20 = scalar_select %p398_p6, %s2364_s24, 31  ;;  %v2287_v29 = vld [vmem:[%s2846_s3 + $0xd8] sm:$0xff]   ;;  %v2288_v30 = vld [vmem:[%s2846_s3 + $0xa0] sm:$0xff]   ;;  %v2290_v32 = vld [vmem:[%s2846_s3 + $0xa8] sm:$0xff]  }
  0x12   : > { %s2501_s10 = sshll.u32 %s2862_s25, 7  ;;  %s1722_s22 = sshll.u32 %s2864_s11, 2  ;;  %v2289_v31 = vld [vmem:[%s2846_s3 + $0xe0] sm:$0xff]   ;;  %v2291_v33 = vld [vmem:[%s2846_s3 + $0xe8] sm:$0xff]   ;;  %v2292_v34 = vld [vmem:[%s2846_s3 + $0xb0] sm:$0xff]  }
  0x13   : > { %2044 = vmatpush3.bf16.msra.mxu0 %v2265_v5  ;;  %s1719_s9 = sshll.u32 %s399_s20, 2  ;;  %s412_s12 = sadd.s32 %s1722_s22, %s2501_s10  ;;  %v2293_v35 = vld [vmem:[%s2846_s3 + $0xf0] sm:$0xff]   ;;  %v2294_v37 = vld [vmem:[%s2846_s3 + $0xb8] sm:$0xff]   ;;  %v2296_v42 = vld [vmem:[%s2846_s3 + $0x100] sm:$0xff]  }
  0x14   : > { %2064 = vmatpush3.bf16.msra.mxu1 %v2266_v6  ;;  %2045 = vmatprep.subr.bf16.mxu0 %v2382_v1  ;;  %s402_s15 = sadd.s32 %s2501_s10, %s1719_s9  ;;  %s1724_s16 = sshll.u32 %s412_s12, 2  ;;  %v2295_v38 = vld [vmem:[%s2846_s3 + $0xf8] sm:$0xff]   ;;  %v2298_v44 = vld [vmem:[%s2846_s3 + $0x140] sm:$0xff]   ;;  %v2299_v45 = vld [vmem:[%s2846_s3 + $0x108] sm:$0xff]  }
  0x15   : > { %2065 = vmatprep.subr.bf16.mxu1 %v2382_v1  ;;  %s1721_s20 = sshll.u32 %s402_s15, 2  ;;  %s2611_s23 = scalar_lea.vmem %s2844_s1, %s1724_s16  ;;  %v2300_v46 = vld [vmem:[%s2846_s3 + $0x148] sm:$0xff]   ;;  %v2301_v47 = vld [vmem:[%s2846_s3 + $0x110] sm:$0xff]   ;;  %v2303_v49 = vld [vmem:[%s2846_s3 + $0x118] sm:$0xff]  }
  0x16   : > { %s2526_s9 = scalar_lea.vmem %s2843_s0, %s1721_s20  ;;  %v459_v39 = vld [vmem:[%s2611_s23] sm:$0xf]  ;;  %v2624_v40 = vld [vmem:[%s2611_s23 + $0x4] sm:$0xf]  ;;  %v2302_v48 = vld [vmem:[%s2846_s3 + $0x150] sm:$0xff]   ;;  %s416_s12 = sadd.s32 16, %s2364_s24 }
  0x17   : > { %2046 = vmatpush3.bf16.msra.mxu0 %v2267_v7  ;;  %v456_v17 = vld [vmem:[%s2526_s9 + $0x4] sm:$0xf]  ;;  %v2541_v18 = vld [vmem:[%s2526_s9 + $0x8] sm:$0xf]  ;;  %v455_v19 = vld [vmem:[%s2526_s9] sm:$0xf]  ;;  %v1812_v43 = vcombine.low %v459_v39, %v2624_v40 }
  0x18   : > { %2066 = vmatpush3.bf16.msra.mxu1 %v2268_v8  ;;  %2047 = vmatprep.subr.bf16.mxu0 %v2382_v1  ;;  %v1753_v20 = vcombine.low %v456_v17, %v2541_v18  ;;  %v1762_v21 = vcombine.low %v455_v19, %v456_v17  ;;  %v458_v36 = vld [vmem:[%s2526_s9 + $0xc] sm:$0xf]  ;;  %v2304_v50 = vld [vmem:[%s2846_s3 + $0x158] sm:$0xff]   ;;  %v2305_v51 = vld [vmem:[%s2846_s3 + $0x120] sm:$0xff]   ;;  %p419_p8 = scmp.lt.s32.totalorder %s416_s12, 31  ;;  %s2868_s24 = smov (!%p429_p9, %s2364_s24), 15 }
  0x19   : > { %2067 = vmatprep.subr.bf16.mxu1 %v2382_v1  ;;  %v1787_v41 = vcombine.low %v2541_v18, %v458_v36  ;;  %v2306_v52 = vld [vmem:[%s2846_s3 + $0x160] sm:$0xff]   ;;  %v2307_v53 = vld [vmem:[%s2846_s3 + $0x128] sm:$0xff]   ;;  %v2309_v55 = vld [vmem:[%s2846_s3 + $0x130] sm:$0xff]   ;;  %s1729_s14 = sshll.u32 %s2862_s25, 5 }
  0x1a   : > { %v2308_v54 = vld [vmem:[%s2846_s3 + $0x168] sm:$0xff]   ;;  %v2310_v56 = vld [vmem:[%s2846_s3 + $0x170] sm:$0xff]   ;;  %v2311_v57 = vld [vmem:[%s2846_s3 + $0x138] sm:$0xff]   ;;  %s2866_s12 = smov (!%p419_p8, %s416_s12), 31 }
  0x1b   : > { %2048 = vmatpush3.bf16.msra.mxu0 %v2269_v9  ;;  %v461_v58 = vld [vmem:[%s2611_s23 + $0x8] sm:$0xf]  ;;  %v2312_v59 = vld [vmem:[%s2846_s3 + $0x178] sm:$0xff]   ;;  %v462_v60 = vld [vmem:[%s2611_s23 + $0xc] sm:$0xf]  ;;  %s1725_s23 = sshll.u32 %s2866_s12, 2 }
  0x1c   : > { %2068 = vmatpush3.bf16.msra.mxu1 %v2270_v10  ;;  %2049 = vmatprep.subr.bf16.mxu0 %v2382_v1  ;;  %v1837_v61 = vcombine.low %v2624_v40, %v461_v58  ;;  %v2314_v62 = vld [vmem:[%s2846_s3 + $0x180] sm:$0xff]   ;;  %v1862_v63 = vcombine.low %v461_v58, %v462_v60  ;;  %v2317_v2 = vld [vmem:[%s2846_s3 + $0x188] sm:$0xff]   ;;  %v2319_v4 = vld [vmem:[%s2846_s3 + $0x190] sm:$0xff]   ;;  %s423_s8 = sadd.s32 %s1725_s23, %s2501_s10 }
  0x1d   : > { %2069 = vmatprep.subr.bf16.mxu1 %v2382_v1  ;;  %v2316_v0 = vld [vmem:[%s2846_s3 + $0x1c0] sm:$0xff]   ;;  %v2318_v3 = vld [vmem:[%s2846_s3 + $0x1c8] sm:$0xff]   ;;  %v2320_v5 = vld [vmem:[%s2846_s3 + $0x1d0] sm:$0xff]   ;;  %s1727_s11 = sshll.u32 %s423_s8, 2 }
  0x1e   : > { %v2321_v6 = vld [vmem:[%s2846_s3 + $0x198] sm:$0xff]   ;;  %v2323_v8 = vld [vmem:[%s2846_s3 + $0x1a0] sm:$0xff]   ;;  %v2325_v10 = vld [vmem:[%s2846_s3 + $0x1a8] sm:$0xff]   ;;  %s2764_s20 = scalar_lea.vmem %s2845_s2, %s1727_s11 }
  0x1f   : > { %2050 = vmatpush3.bf16.msra.mxu0 %v2271_v11  ;;  %v2322_v7 = vld [vmem:[%s2846_s3 + $0x1d8] sm:$0xff]   ;;  %v2324_v9 = vld [vmem:[%s2846_s3 + $0x1e0] sm:$0xff]   ;;  %v2326_v11 = vld [vmem:[%s2846_s3 + $0x1e8] sm:$0xff]  }
  0x20   : > { %2070 = vmatpush3.bf16.msra.mxu1 %v2272_v12  ;;  %2051 = vmatprep.subr.bf16.mxu0 %v2382_v1  ;;  %v2327_v12 = vld [vmem:[%s2846_s3 + $0x1b0] sm:$0xff]   ;;  %v2330_v17 = vld [vmem:[%s2846_s3 + $0x1f8] sm:$0xff]   ;;  %v465_v18 = vld [vmem:[%s2764_s20 + $0x8] sm:$0xf] }
  0x21   : > { %2071 = vmatprep.subr.bf16.mxu1 %v2382_v1 }
  0x23   : > { %2052 = vmatpush3.bf16.msra.mxu0 %v2273_v13  ;;  %v2328_v13 = vld [vmem:[%s2846_s3 + $0x1f0] sm:$0xff]  }
  0x24   : > { %2072 = vmatpush3.bf16.msra.mxu1 %v2274_v14  ;;  %2053 = vmatprep.subr.bf16.mxu0 %v2382_v1  ;;  %v2329_v14 = vld [vmem:[%s2846_s3 + $0x1b8] sm:$0xff]  }
  0x25   : > { %2073 = vmatprep.subr.bf16.mxu1 %v2382_v1 }
  0x27   : > { %2054 = vmatpush3.bf16.msra.mxu0 %v2275_v15  ;;  %v463_v15 = vld [vmem:[%s2764_s20] sm:$0xf] }
  0x28   : > { %2074 = vmatpush3.bf16.msra.mxu1 %v2276_v16  ;;  %2079 = vmatprep.subr.bf16.mxu0 %v2382_v1  ;;  %v464_v16 = vld [vmem:[%s2764_s20 + $0x4] sm:$0xf] }
  0x29   : > { %2099 = vmatprep.subr.bf16.mxu1 %v2382_v1  ;;  %v1887_v19 = vcombine.low %v463_v15, %v464_v16 }
  0x2a   : > { %2056 = vmatmul.mubr.bf16.vlgmr.msra.gmra.mrb[0].mxu0 %v1753_v20  ;;  %v2332_v20 = vld [vmem:[%s2846_s3 + $0x200] sm:$0xff]  }
  0x2b   : > { %2076 = vmatmul.mubr.bf16.vlgmr.msra.gmra.mrb[0].mxu1 %v1762_v21  ;;  %2080 = vmatpush3.bf16.msra.mxu0 %v2280_v22  ;;  %v1912_v21 = vcombine.low %v464_v16, %v465_v18  ;;  %v2334_v22 = vld [vmem:[%s2846_s3 + $0x208] sm:$0xff]  }
  0x2c   : > { %2100 = vmatpush3.bf16.msra.mxu1 %v2281_v23  ;;  %2081 = vmatprep.subr.bf16.mxu0 %v2382_v1  ;;  %v2335_v23 = vld [vmem:[%s2846_s3 + $0x210] sm:$0xff]  }
  0x2d   : > { %2101 = vmatprep.subr.bf16.mxu1 %v2382_v1  ;;  %2095 = vmatprep.mubr.msk.bf16.mxu0 %vm2383_vm0, %v2382_v1 }
  0x2e   : > { %2115 = vmatprep.mubr.msk.bf16.mxu1 %vm2383_vm0, %v2382_v1 }
  0x2f   : > { %2082 = vmatpush3.bf16.msra.mxu0 %v2282_v24  ;;  %v2336_v24 = vld [vmem:[%s2846_s3 + $0x218] sm:$0xff]  }
  0x30   : > { %2102 = vmatpush3.bf16.msra.mxu1 %v2283_v25  ;;  %2083 = vmatprep.subr.bf16.mxu0 %v2382_v1  ;;  %v2337_v25 = vld [vmem:[%s2846_s3 + $0x220] sm:$0xff]  }
  0x31   : > { %2103 = vmatprep.subr.bf16.mxu1 %v2382_v1 }
  0x33   : > { %2084 = vmatpush3.bf16.msra.mxu0 %v2284_v26  ;;  %v2338_v26 = vld [vmem:[%s2846_s3 + $0x228] sm:$0xff]  }
  0x34   : > { %2104 = vmatpush3.bf16.msra.mxu1 %v2285_v27  ;;  %2085 = vmatprep.subr.bf16.mxu0 %v2382_v1  ;;  %v2339_v27 = vld [vmem:[%s2846_s3 + $0x230] sm:$0xff]  }
  0x35   : > { %2105 = vmatprep.subr.bf16.mxu1 %v2382_v1 }
  0x37   : > { %2086 = vmatpush3.bf16.msra.mxu0 %v2286_v28  ;;  %v2340_v28 = vld [vmem:[%s2846_s3 + $0x238] sm:$0xff]  }
  0x38   : > { %2106 = vmatpush3.bf16.msra.mxu1 %v2287_v29  ;;  %2087 = vmatprep.subr.bf16.mxu0 %v2382_v1  ;;  %v466_v29 = vld [vmem:[%s2764_s20 + $0xc] sm:$0xf]  ;;  %s1728_s20 = sshll.u32 %s2868_s24, 1 }
  0x39   : > { %2107 = vmatprep.subr.bf16.mxu1 %v2382_v1  ;;  %s433_s9 = sadd.s32 %s1729_s14, %s1728_s20 }
  0x3a   : > { %s1730_s12 = sshll.u32 %s433_s9, 3  ;;  %s1733_s24 = sshll.u32 %s433_s9, 2 }
  0x3b   : > { %2088 = vmatpush3.bf16.msra.mxu0 %v2288_v30  ;;  %v1937_v30 = vcombine.low %v465_v18, %v466_v29  ;;  %s435_s17 = scalar_lea.vmem %s2848_s5, %s1730_s12  ;;  %s453_s19 = scalar_lea.vmem %s2850_s7, %s1730_s12 }
  0x3c   : > { %2108 = vmatpush3.bf16.msra.mxu1 %v2289_v31  ;;  %2089 = vmatprep.subr.bf16.mxu0 %v2382_v1  ;;  %s444_s22 = scalar_lea.vmem %s2849_s6, %s1733_s24 }
  0x3d   : > { %2109 = vmatprep.subr.bf16.mxu1 %v2382_v1 }
  0x3f   : > { %2090 = vmatpush3.bf16.msra.mxu0 %v2290_v32 }
  0x40   : > { %2110 = vmatpush3.bf16.msra.mxu1 %v2291_v33  ;;  %2091 = vmatprep.subr.bf16.mxu0 %v2382_v1 }
  0x41   : > { %2111 = vmatprep.subr.bf16.mxu1 %v2382_v1 }
  0x43   : > { %2092 = vmatpush3.bf16.msra.mxu0 %v2292_v34 }
  0x44   : > { %2112 = vmatpush3.bf16.msra.mxu1 %v2293_v35  ;;  %2093 = vmatprep.subr.bf16.mxu0 %v2382_v1 }
  0x45   : > { %2113 = vmatprep.subr.bf16.mxu1 %v2382_v1 }
  0x47   : > { %2094 = vmatpush3.bf16.msra.mxu0 %v2294_v37 }
  0x48   : > { %2114 = vmatpush3.bf16.msra.mxu1 %v2295_v38  ;;  %2119 = vmatprep.subr.bf16.mxu0 %v2382_v1 }
  0x49   : > { %2139 = vmatprep.subr.bf16.mxu1 %v2382_v1 }
  0x4a   : > { %2096 = vmatmul.mubr.bf16.vlgmr.msra.gmra.mrb[4].mxu0 %v1787_v41 }
  0x4b   : > { %2120 = vmatpush3.bf16.msra.mxu0 %v2296_v42  ;;  %2116 = vmatmul.mubr.bf16.vlgmr.msra.gmra.mrb[4].mxu1 %v1812_v43 }
  0x4c   : > { %2140 = vmatpush3.bf16.msra.mxu1 %v2298_v44  ;;  %2121 = vmatprep.subr.bf16.mxu0 %v2382_v1 }
  0x4d   : > { %2141 = vmatprep.subr.bf16.mxu1 %v2382_v1  ;;  %2135 = vmatprep.mubr.msk.bf16.mxu0 %vm2383_vm0, %v2382_v1 }
  0x4e   : > { %2155 = vmatprep.mubr.msk.bf16.mxu1 %vm2383_vm0, %v2382_v1 }
  0x4f   : > { %2122 = vmatpush3.bf16.msra.mxu0 %v2299_v45 }
  0x50   : > { %2142 = vmatpush3.bf16.msra.mxu1 %v2300_v46  ;;  %2123 = vmatprep.subr.bf16.mxu0 %v2382_v1 }
  0x51   : > { %2143 = vmatprep.subr.bf16.mxu1 %v2382_v1 }
  0x53   : > { %2124 = vmatpush3.bf16.msra.mxu0 %v2301_v47 }
  0x54   : > { %2144 = vmatpush3.bf16.msra.mxu1 %v2302_v48  ;;  %2125 = vmatprep.subr.bf16.mxu0 %v2382_v1 }
  0x55   : > { %2145 = vmatprep.subr.bf16.mxu1 %v2382_v1 }
  0x57   : > { %2126 = vmatpush3.bf16.msra.mxu0 %v2303_v49 }
  0x58   : > { %2146 = vmatpush3.bf16.msra.mxu1 %v2304_v50  ;;  %2127 = vmatprep.subr.bf16.mxu0 %v2382_v1 }
  0x59   : > { %2147 = vmatprep.subr.bf16.mxu1 %v2382_v1 }
  0x5b   : > { %2128 = vmatpush3.bf16.msra.mxu0 %v2305_v51 }
  0x5c   : > { %2148 = vmatpush3.bf16.msra.mxu1 %v2306_v52  ;;  %2129 = vmatprep.subr.bf16.mxu0 %v2382_v1 }
  0x5d   : > { %2149 = vmatprep.subr.bf16.mxu1 %v2382_v1 }
  0x5f   : > { %2130 = vmatpush3.bf16.msra.mxu0 %v2307_v53 }
  0x60   : > { %2150 = vmatpush3.bf16.msra.mxu1 %v2308_v54  ;;  %2131 = vmatprep.subr.bf16.mxu0 %v2382_v1 }
  0x61   : > { %2151 = vmatprep.subr.bf16.mxu1 %v2382_v1 }
  0x63   : > { %2132 = vmatpush3.bf16.msra.mxu0 %v2309_v55 }
  0x64   : > { %2152 = vmatpush3.bf16.msra.mxu1 %v2310_v56  ;;  %2133 = vmatprep.subr.bf16.mxu0 %v2382_v1 }
  0x65   : > { %2153 = vmatprep.subr.bf16.mxu1 %v2382_v1 }
  0x67   : > { %2134 = vmatpush3.bf16.msra.mxu0 %v2311_v57 }
  0x68   : > { %2154 = vmatpush3.bf16.msra.mxu1 %v2312_v59  ;;  %2159 = vmatprep.subr.bf16.mxu0 %v2382_v1 }
  0x69   : > { %2179 = vmatprep.subr.bf16.mxu1 %v2382_v1 }
  0x6a   : > { %2136 = vmatmul.mubr.bf16.vlgmr.msra.gmra.mrb[8].mxu0 %v1837_v61 }
  0x6b   : > { %2160 = vmatpush3.bf16.msra.mxu0 %v2314_v62  ;;  %2156 = vmatmul.mubr.bf16.vlgmr.msra.gmra.mrb[8].mxu1 %v1862_v63 }
  0x6c   : > { %2180 = vmatpush3.bf16.msra.mxu1 %v2316_v0  ;;  %2161 = vmatprep.subr.bf16.mxu0 %v2382_v1 }
  0x6d   : > { %2181 = vmatprep.subr.bf16.mxu1 %v2382_v1  ;;  %2175 = vmatprep.mubr.msk.bf16.mxu0 %vm2383_vm0, %v2382_v1 }
  0x6e   : > { %2195 = vmatprep.mubr.msk.bf16.mxu1 %vm2383_vm0, %v2382_v1 }
  0x6f   : > { %2162 = vmatpush3.bf16.msra.mxu0 %v2317_v2 }
  0x70   : > { %2182 = vmatpush3.bf16.msra.mxu1 %v2318_v3  ;;  %2163 = vmatprep.subr.bf16.mxu0 %v2382_v1 }
  0x71   : > { %2183 = vmatprep.subr.bf16.mxu1 %v2382_v1 }
  0x73   : > { %2164 = vmatpush3.bf16.msra.mxu0 %v2319_v4 }
  0x74   : > { %2184 = vmatpush3.bf16.msra.mxu1 %v2320_v5  ;;  %2165 = vmatprep.subr.bf16.mxu0 %v2382_v1 }
  0x75   : > { %2185 = vmatprep.subr.bf16.mxu1 %v2382_v1 }
  0x77   : > { %2166 = vmatpush3.bf16.msra.mxu0 %v2321_v6 }
  0x78   : > { %2186 = vmatpush3.bf16.msra.mxu1 %v2322_v7  ;;  %2167 = vmatprep.subr.bf16.mxu0 %v2382_v1 }
  0x79   : > { %2187 = vmatprep.subr.bf16.mxu1 %v2382_v1 }
  0x7b   : > { %2168 = vmatpush3.bf16.msra.mxu0 %v2323_v8 }
  0x7c   : > { %2188 = vmatpush3.bf16.msra.mxu1 %v2324_v9  ;;  %2169 = vmatprep.subr.bf16.mxu0 %v2382_v1 }
  0x7d   : > { %2189 = vmatprep.subr.bf16.mxu1 %v2382_v1 }
  0x7f   : > { %2170 = vmatpush3.bf16.msra.mxu0 %v2325_v10 }
  0x80   : > { %2190 = vmatpush3.bf16.msra.mxu1 %v2326_v11  ;;  %2171 = vmatprep.subr.bf16.mxu0 %v2382_v1 }
  0x81   : > { %2191 = vmatprep.subr.bf16.mxu1 %v2382_v1 }
  0x83   : > { %2172 = vmatpush3.bf16.msra.mxu0 %v2327_v12 }
  0x84   : > { %2192 = vmatpush3.bf16.msra.mxu1 %v2328_v13  ;;  %2173 = vmatprep.subr.bf16.mxu0 %v2382_v1 }
  0x85   : > { %2193 = vmatprep.subr.bf16.mxu1 %v2382_v1 }
  0x87   : > { %2174 = vmatpush3.bf16.msra.mxu0 %v2329_v14  ;;  %v1946_v14 = vld [vmem:[%s2847_s4] ss:$0 sm:$0xff] }
  0x88   : > { %2194 = vmatpush3.bf16.msra.mxu1 %v2330_v17  ;;  %2199 = vmatprep.subr.bf16.mxu0 %v2382_v1 }
  0x8a   : > { %2176 = vmatmul.mubr.bf16.vlgmr.msra.gmra.mrb[12].mxu0 %v1887_v19 }
  0x8b   : > { %2200 = vmatpush3.bf16.msra.mxu0 %v2332_v20  ;;  %2196 = vmatmul.mubr.bf16.vlgmr.msra.gmra.mrb[12].mxu1 %v1912_v21  ;;  %v1497_v21 = vld [vmem:[%s435_s17] sm:$0xff] }
  0x8c   : > { %2201 = vmatprep.subr.bf16.mxu0 %v2382_v1  ;;  %2215 = vmatprep.mubr.msk.bf16.mxu0 %vm2383_vm0, %v2382_v1 }
  0x8f   : > { %2202 = vmatpush3.bf16.msra.mxu0 %v2334_v22 }
  0x90   : > { %2203 = vmatprep.subr.bf16.mxu0 %v2382_v1 }
  0x93   : > { %2204 = vmatpush3.bf16.msra.mxu0 %v2335_v23 }
  0x94   : > { %2205 = vmatprep.subr.bf16.mxu0 %v2382_v1 }
  0x97   : > { %2206 = vmatpush3.bf16.msra.mxu0 %v2336_v24  ;;  %v1498_v24 = vld [vmem:[%s435_s17 + $0x8] sm:$0xff] }
  0x98   : > { %2207 = vmatprep.subr.bf16.mxu0 %v2382_v1 }
  0x9b   : > { %2208 = vmatpush3.bf16.msra.mxu0 %v2337_v25 }
  0x9c   : > { %2209 = vmatprep.subr.bf16.mxu0 %v2382_v1 }
  0x9f   : > { %2210 = vmatpush3.bf16.msra.mxu0 %v2338_v26 }
  0xa0   : > { %2211 = vmatprep.subr.bf16.mxu0 %v2382_v1 }
  0xa3   : > { %2212 = vmatpush3.bf16.msra.mxu0 %v2339_v27 }
  0xa4   : > { %2213 = vmatprep.subr.bf16.mxu0 %v2382_v1 }
  0xa7   : > { %2214 = vmatpush3.bf16.msra.mxu0 %v2340_v28 }
  0xaa   : > { %2216 = vmatmul.mubr.bf16.vlgmr.msra.gmra.mrb[16].mxu0 %v1937_v30 }
  0xfd   : > { %v588_v31 = vpop.f32.mrb[0].mxu0 }
  0xfe   : > { %v681_v32 = vpop.f32.mrb[0].mxu1  ;;  %v2057_v33 = vpop.f32.mrb[1].mxu0 }
  0xff   : > { %v682_v34 = vadd.f32 %v681_v32, %v588_v31  ;;  %v2077_v35 = vpop.f32.mrb[1].mxu1  ;;  %v591_v36 = vpop.f32.mrb[2].mxu0 }
 0x100   : > { %v684_v37 = vpop.f32.mrb[2].mxu1  ;;  %v2058_v38 = vpop.f32.mrb[3].mxu0 }
 0x101   : > { %v685_v39 = vadd.f32 %v684_v37, %v591_v36  ;;  %v2078_v40 = vpop.f32.mrb[3].mxu1 }
 0x11d   : > { %v791_v41 = vpop.f32.mrb[4].mxu0 }
 0x11e   : > { %v798_v42 = vadd.f32 %v791_v41, %v682_v34  ;;  %v2097_v43 = vpop.f32.mrb[5].mxu0  ;;  %v905_v44 = vpop.f32.mrb[4].mxu1 }
 0x11f   : > { %v794_v45 = vpop.f32.mrb[6].mxu0  ;;  %v2117_v46 = vpop.f32.mrb[5].mxu1 }
 0x120   : > { %v799_v1 = vadd.f32 %v794_v45, %v685_v39  ;;  %v912_v47 = vadd.f32 %v905_v44, %v798_v42  ;;  %v2098_v48 = vpop.f32.mrb[7].mxu0  ;;  %v908_v49 = vpop.f32.mrb[6].mxu1 }
 0x121   : > { %v2118_v50 = vpop.f32.mrb[7].mxu1 }
 0x122   : > { %v913_v51 = vadd.f32 %v908_v49, %v799_v1 }
 0x13d   : > { %v1017_v52 = vpop.f32.mrb[8].mxu0 }
 0x13e   : > { %v1024_v53 = vadd.f32 %v1017_v52, %v912_v47  ;;  %v2137_v54 = vpop.f32.mrb[9].mxu0  ;;  %v1129_v55 = vpop.f32.mrb[8].mxu1 }
 0x13f   : > { %v1020_v56 = vpop.f32.mrb[10].mxu0  ;;  %v2157_v57 = vpop.f32.mrb[9].mxu1 }
 0x140   : > { %v1025_v58 = vadd.f32 %v1020_v56, %v913_v51  ;;  %v1136_v59 = vadd.f32 %v1129_v55, %v1024_v53  ;;  %v2138_v60 = vpop.f32.mrb[11].mxu0  ;;  %v1132_v61 = vpop.f32.mrb[10].mxu1 }
 0x141   : > { %v2158_v62 = vpop.f32.mrb[11].mxu1 }
 0x142   : > { %v1137_v63 = vadd.f32 %v1132_v61, %v1025_v58 }
 0x15d   : > { %v1243_v0 = vpop.f32.mrb[12].mxu0 }
 0x15e   : > { %v1250_v2 = vadd.f32 %v1243_v0, %v1136_v59  ;;  %v2177_v3 = vpop.f32.mrb[13].mxu0  ;;  %v1355_v4 = vpop.f32.mrb[12].mxu1 }
 0x15f   : > { %v1246_v5 = vpop.f32.mrb[14].mxu0  ;;  %v2197_v6 = vpop.f32.mrb[13].mxu1 }
 0x160   : > { %v1251_v7 = vadd.f32 %v1246_v5, %v1137_v63  ;;  %v1362_v8 = vadd.f32 %v1355_v4, %v1250_v2  ;;  %v2178_v9 = vpop.f32.mrb[15].mxu0  ;;  %v1358_v10 = vpop.f32.mrb[14].mxu1 }
 0x161   : > { %v2198_v11 = vpop.f32.mrb[15].mxu1 }
 0x162   : > { %v1363_v12 = vadd.f32 %v1358_v10, %v1251_v7 }
 0x17d   : > { %v1467_v13 = vpop.f32.mrb[16].mxu0 }
 0x17e   : > { %v1474_v15 = vadd.f32 %v1467_v13, %v1362_v8  ;;  %v2217_v16 = vpop.f32.mrb[17].mxu0 }
 0x17f   : > { %v1470_v17 = vpop.f32.mrb[18].mxu0 }
 0x180   : > { %v1483_v18 = vadd.f32 %v1946_v14, %v1474_v15  ;;  %v1475_v19 = vadd.f32 %v1470_v17, %v1363_v12  ;;  %v2218_v20 = vpop.f32.mrb[19].mxu0 }
 0x182   : > { %v1485_v22 = vmax.f32 %v1483_v18, 0.0  ;;  %v1484_v23 = vadd.f32 %v1946_v14, %v1475_v19 }
 0x184   : > { %v1499_v25 = vadd.f32 %v1497_v21, %v1485_v22  ;;  %v1486_v26 = vmax.f32 %v1484_v23, 0.0 }
 0x186   : > { %v1956_v27 = vpack.c.bf16 %v1486_v26, %v1485_v22  ;;  %v1500_v28 = vadd.f32 %v1498_v24, %v1486_v26  ;;  %1501 = vst [vmem:[%s453_s19] sm:$0xff] %v1499_v25 }
 0x188   : > { %1957 = vst [vmem:[%s444_s22] sm:$0xff] %v1956_v27   ;;  %1502 = vst [vmem:[%s453_s19 + $0x8] sm:$0xff] %v1500_v28 }
 0x189 PF: > { %s18_s28 = sadd.s32 1, %s2380_s28   ;;  %s2851_s24 = smov %s2372_s26 }
 0x18a   : > { %p15_p10 = scmp.ge.s32.totalorder %s18_s28, 34   ;;  %s2852_s25 = smov %s2376_s27 }
 0x18b   : > { %s2853_s26 = smov %s2856_s29  ;;  %s2854_s27 = smov %s2860_s30 }
 0x18c   :  { %17 = sbr.rel (!%p15_p10) target bundleno = 3 (0x3), region = 103 }

// kernel: a_call__.7
= control target key start
LH: loop header
LB: loop body
LE: loop exit
PB: predicated region body
PF: predicated region fallthrough
CT: control target
= control target key end

     0   :  { %s2423_s24 = smov 0   ;;  %s2425_s25 = smov 0   ;;  %s2857_s0 = inlined_call_operand.vmem [shape: bf16[2,24,24,128], index: 0, kind: input, shape index: {}, may-alias: {0,1,2}]   ;;  %s2858_s1 = inlined_call_operand.vmem [shape: bf16[2,24,24,128], index: 1, kind: input, shape index: {}, may-alias: {0,1,2}]   ;;  %s2859_s2 = inlined_call_operand.vmem [shape: bf16[2,24,24,128], index: 2, kind: input, shape index: {}, may-alias: {0,1,2}]   ;;  %s2860_s3 = inlined_call_operand.vmem [shape: bf16[3,3,128,128], index: 3, kind: input, shape index: {}]   ;;  %s2861_s4 = inlined_call_operand.vmem [shape: f32[1,128], index: 4, kind: input, shape index: {}]   ;;  %s2862_s5 = inlined_call_operand.vmem [shape: f32[2,16,16,128], index: 5, kind: input, shape index: {}, may-alias: {5,7}]   ;;  %s2863_s6 = inlined_call_operand.vmem [shape: bf16[2,16,16,128], index: 6, kind: output, shape index: {0}]   ;;  %s2864_s7 = inlined_call_operand.vmem [shape: f32[2,16,16,128], index: 7, kind: output, shape index: {1}, may-alias: {5,7}]  }
   0x1   :  { %s2427_s26 = smov 0   ;;  %s2429_s27 = smov 0  }
   0x2   :  { %s2431_s28 = smov 0  }
   0x3 LB: > { %s27_s29 = sadd.s32 1, %s2371_s26  ;;  %s30_s30 = sadd.s32 1, %s2375_s27  ;;  %s2379_s28 = sphi %s2431_s28, %s18_s28   ;;  %s2375_s27 = sphi %s2429_s27, %s2868_s27   ;;  %s2371_s26 = sphi %s2427_s26, %s2867_s26   ;;  %s2367_s25 = sphi %s2425_s25, %s2866_s25   ;;  %s2363_s24 = sphi %s2423_s24, %s2865_s24  }
   0x4   : > { %p28_p0 = scmp.ge.s32.totalorder %s27_s29, 16  ;;  %p1719_p1 = scmp.ge.s32.totalorder %s2379_s28, 1 }
   0x5   : > { %p318_p2 = scmp.lt.s32.totalorder %s2379_s28, 33 }
   0x6   : > { %s2870_s29 = smov (%p28_p0, %s27_s29), 0  ;;  %s2872_s30 = smov (!%p28_p0, %s30_s30), %s2375_s27 }
   0x7   : > { %p319_p3 = pnand %p1719_p1, %p318_p2  ;;  %p32_p4 = scmp.ge.s32.totalorder %s2872_s30, 2 }
   0x8   : > { %v2260_v0 = vld [vmem:[%s2860_s3 + $0x40] sm:$0xff] (!%p319_p3)   ;;  %v2381_v1 = vmov (!%p319_p3), 0.0   ;;  %v2262_v3 = vld [vmem:[%s2860_s3 + $0x48] sm:$0xff] (!%p319_p3)   ;;  %vm2382_vm0 = vmmov (!%p319_p3), 0   ;;  %p396_p5 = scmp.lt.s32.totalorder (!%p319_p3), %s2367_s25, 1  ;;  %p398_p6 = scmp.lt.s32.totalorder (!%p319_p3), %s2363_s24, 23 }
   0x9   : > { %s2874_s30 = smov (%p32_p4, %s2872_s30), 0  ;;  %322 = sbr.rel (%p319_p3) target bundleno = 393 (0x189), region = 44 }
   0xa   : > { %2034 = vmatprep.subr.bf16.mxu0 (!%p319_p3), %v2381_v1  ;;  %2054 = vmatprep.subr.bf16.mxu1 (!%p319_p3), %v2381_v1  ;;  %v2261_v2 = vld [vmem:[%s2860_s3] sm:$0xff] (!%p319_p3)   ;;  %v2263_v4 = vld [vmem:[%s2860_s3 + $0x8] sm:$0xff] (!%p319_p3)   ;;  %v2264_v5 = vld [vmem:[%s2860_s3 + $0x50] sm:$0xff] (!%p319_p3)   ;;  %vm505_vm1 = vcmask (!%p319_p3), 1045504   ;;  %p429_p9 = scmp.lt.s32.totalorder (!%p319_p3), %s2363_s24, 15 }
   0xb   : > { %2035 = vmatpush3.bf16.msra.mxu0 (!%p319_p3), %v2260_v0  ;;  %2050 = vmatprep.mubr.msk.bf16.mxu0 (!%p319_p3), %vm2382_vm0, %v2381_v1  ;;  %v2265_v6 = vld [vmem:[%s2860_s3 + $0x10] sm:$0xff] (!%p319_p3)   ;;  %v2266_v7 = vld [vmem:[%s2860_s3 + $0x58] sm:$0xff] (!%p319_p3)   ;;  %v2268_v9 = vld [vmem:[%s2860_s3 + $0x60] sm:$0xff] (!%p319_p3)  }
   0xc   : > { %2055 = vmatpush3.bf16.msra.mxu1 (!%p319_p3), %v2261_v2  ;;  %2036 = vmatprep.subr.bf16.mxu0 (!%p319_p3), %v2381_v1  ;;  %v2267_v8 = vld [vmem:[%s2860_s3 + $0x18] sm:$0xff] (!%p319_p3)   ;;  %v2269_v10 = vld [vmem:[%s2860_s3 + $0x20] sm:$0xff] (!%p319_p3)   ;;  %v2270_v11 = vld [vmem:[%s2860_s3 + $0x68] sm:$0xff] (!%p319_p3)  }
   0xd   : > { %2056 = vmatprep.subr.bf16.mxu1 (!%p319_p3), %v2381_v1  ;;  %2070 = vmatprep.mubr.msk.bf16.mxu1 (!%p319_p3), %vm2382_vm0, %v2381_v1  ;;  %v2271_v12 = vld [vmem:[%s2860_s3 + $0x28] sm:$0xff] (!%p319_p3)   ;;  %v2272_v16 = vld [vmem:[%s2860_s3 + $0x70] sm:$0xff] (!%p319_p3)   ;;  %v2274_v20 = vld [vmem:[%s2860_s3 + $0x78] sm:$0xff] (!%p319_p3)  }
   0xe   : > { %v2273_v19 = vld [vmem:[%s2860_s3 + $0x30] sm:$0xff] (!%p319_p3)   ;;  %v2275_v23 = vld [vmem:[%s2860_s3 + $0x38] sm:$0xff] (!%p319_p3)   ;;  %v2278_v25 = vld [vmem:[%s2860_s3 + $0x80] sm:$0xff] (!%p319_p3)  }
   0xf   : > { %2037 = vmatpush3.bf16.msra.mxu0 (!%p319_p3), %v2262_v3  ;;  %v2279_v26 = vld [vmem:[%s2860_s3 + $0xc0] sm:$0xff] (!%p319_p3)   ;;  %v2280_v27 = vld [vmem:[%s2860_s3 + $0x88] sm:$0xff] (!%p319_p3)   ;;  %v2282_v29 = vld [vmem:[%s2860_s3 + $0x90] sm:$0xff] (!%p319_p3)  }
  0x10   : > { %s2876_s25 = smov (!%p396_p5, %s2367_s25), 1  ;;  %2057 = vmatpush3.bf16.msra.mxu1 %v2263_v4  ;;  %2038 = vmatprep.subr.bf16.mxu0 %v2381_v1  ;;  %v2281_v28 = vld [vmem:[%s2860_s3 + $0xc8] sm:$0xff]   ;;  %v2283_v30 = vld [vmem:[%s2860_s3 + $0xd0] sm:$0xff]   ;;  %v2284_v31 = vld [vmem:[%s2860_s3 + $0x98] sm:$0xff]  }
  0x11   : > { %s399_s16 = scalar_select %p398_p6, %s2363_s24, 23  ;;  %2058 = vmatprep.subr.bf16.mxu1 %v2381_v1  ;;  %v2285_v32 = vld [vmem:[%s2860_s3 + $0xd8] sm:$0xff]   ;;  %v2286_v33 = vld [vmem:[%s2860_s3 + $0xa0] sm:$0xff]   ;;  %v2288_v35 = vld [vmem:[%s2860_s3 + $0xa8] sm:$0xff]  }
  0x12   : > { %s2487_s19 = smul.u32 72, %s2876_s25  ;;  %v2287_v34 = vld [vmem:[%s2860_s3 + $0xe0] sm:$0xff]   ;;  %v2289_v36 = vld [vmem:[%s2860_s3 + $0xe8] sm:$0xff]   ;;  %v2290_v37 = vld [vmem:[%s2860_s3 + $0xb0] sm:$0xff]  }
  0x13   : > { %s2214_s22 = smul.u32 3, %s399_s16  ;;  %2039 = vmatpush3.bf16.msra.mxu0 %v2264_v5  ;;  %v2291_v38 = vld [vmem:[%s2860_s3 + $0xf0] sm:$0xff]   ;;  %v2292_v39 = vld [vmem:[%s2860_s3 + $0xb8] sm:$0xff]   ;;  %v2295_v44 = vld [vmem:[%s2860_s3 + $0x100] sm:$0xff]  }
  0x14   : > { %2059 = vmatpush3.bf16.msra.mxu1 %v2265_v6  ;;  %2040 = vmatprep.subr.bf16.mxu0 %v2381_v1  ;;  %v2293_v40 = vld [vmem:[%s2860_s3 + $0xf8] sm:$0xff]   ;;  %v2297_v46 = vld [vmem:[%s2860_s3 + $0x140] sm:$0xff]   ;;  %v2298_v47 = vld [vmem:[%s2860_s3 + $0x108] sm:$0xff]  }
  0x15   : > { %s402_s23 = sadd.s32 %s2487_s19, %s2214_s22  ;;  %2060 = vmatprep.subr.bf16.mxu1 %v2381_v1  ;;  %s405_s22 = sadd.s32 4, %s2363_s24  ;;  %v2299_v50 = vld [vmem:[%s2860_s3 + $0x148] sm:$0xff]   ;;  %v2300_v55 = vld [vmem:[%s2860_s3 + $0x110] sm:$0xff]   ;;  %v2302_v59 = vld [vmem:[%s2860_s3 + $0x118] sm:$0xff]  }
  0x16   : > { %s1720_s12 = sshll.u32 %s402_s23, 2  ;;  %p408_p7 = scmp.lt.s32.totalorder %s405_s22, 23  ;;  %v2301_v56 = vld [vmem:[%s2860_s3 + $0x150] sm:$0xff]   ;;  %v2303_v60 = vld [vmem:[%s2860_s3 + $0x158] sm:$0xff]   ;;  %v2304_v61 = vld [vmem:[%s2860_s3 + $0x120] sm:$0xff]  }
  0x17   : > { %2041 = vmatpush3.bf16.msra.mxu0 %v2266_v7  ;;  %s404_s17 = scalar_lea.vmem %s2857_s0, %s1720_s12  ;;  %v2305_v62 = vld [vmem:[%s2860_s3 + $0x160] sm:$0xff]   ;;  %v2306_v63 = vld [vmem:[%s2860_s3 + $0x128] sm:$0xff]   ;;  %v2308_v3 = vld [vmem:[%s2860_s3 + $0x130] sm:$0xff]  }
  0x18   : > { %2061 = vmatpush3.bf16.msra.mxu1 %v2267_v8  ;;  %2042 = vmatprep.subr.bf16.mxu0 %v2381_v1  ;;  %v455_v13 = vld [vmem:[%s404_s17] sm:$0xf]  ;;  %v2520_v14 = vld [vmem:[%s404_s17 + $0x4] sm:$0xf]  ;;  %v2523_v15 = vld [vmem:[%s404_s17 + $0x8] sm:$0xf] }
  0x19   : > { %2062 = vmatprep.subr.bf16.mxu1 %v2381_v1  ;;  %v1748_v17 = vcombine.low %v455_v13, %v2520_v14  ;;  %v1749_v18 = vcombine.low %v2523_v15, %v2523_v15  ;;  %s2878_s22 = smov (!%p408_p7, %s405_s22), 23  ;;  %s416_s17 = sadd.s32 8, %s2363_s24  ;;  %v1782_v43 = vcombine.low %v2520_v14, %v2523_v15  ;;  %v2307_v0 = vld [vmem:[%s2860_s3 + $0x168] sm:$0xff]   ;;  %v2309_v5 = vld [vmem:[%s2860_s3 + $0x170] sm:$0xff]   ;;  %v2310_v6 = vld [vmem:[%s2860_s3 + $0x138] sm:$0xff]  }
  0x1a   : > { %s2216_s21 = smul.u32 3, %s2878_s22  ;;  %p419_p8 = scmp.lt.s32.totalorder %s416_s17, 23  ;;  %v2315_v13 = vld [vmem:[%s2860_s3 + $0x1c0] sm:$0xff]   ;;  %v2316_v14 = vld [vmem:[%s2860_s3 + $0x188] sm:$0xff]  }
  0x1b   : > { %2043 = vmatpush3.bf16.msra.mxu0 %v2268_v9  ;;  %v506_v21 = vrot.slane %v1748_v17, 2  ;;  %v507_v22 = vrot.slane %v1749_v18, 2  ;;  %v2311_v9 = vld [vmem:[%s2860_s3 + $0x178] sm:$0xff]   ;;  %v2317_v15 = vld [vmem:[%s2860_s3 + $0x1c8] sm:$0xff]   ;;  %s2882_s24 = smov (!%p429_p9, %s2363_s24), 15 }
  0x1c   : > { %2063 = vmatpush3.bf16.msra.mxu1 %v2269_v10  ;;  %2044 = vmatprep.subr.bf16.mxu0 %v2381_v1  ;;  %s412_s11 = sadd.s32 %s2216_s21, %s2487_s19  ;;  %s2880_s17 = smov (!%p419_p8, %s416_s17), 23  ;;  %v2320_v18 = vld [vmem:[%s2860_s3 + $0x198] sm:$0xff]  }
  0x1d   : > { %2064 = vmatprep.subr.bf16.mxu1 %v2381_v1  ;;  %v508_v24 = vsel %vm505_vm1, %v506_v21, %v507_v22  ;;  %s1721_s15 = sshll.u32 %s412_s11, 2  ;;  %s2217_s16 = smul.u32 3, %s2880_s17  ;;  %v2323_v21 = vld [vmem:[%s2860_s3 + $0x1e0] sm:$0xff]   ;;  %v2324_v22 = vld [vmem:[%s2860_s3 + $0x1a8] sm:$0xff]  }
  0x1e   : > { %s2611_s10 = scalar_lea.vmem %s2858_s1, %s1721_s15  ;;  %s1723_s20 = sshll.u32 %s2882_s24, 1 }
  0x1f   : > { %2045 = vmatpush3.bf16.msra.mxu0 %v2270_v11  ;;  %s423_s13 = sadd.s32 %s2217_s16, %s2487_s19  ;;  %v458_v41 = vld [vmem:[%s2611_s10] sm:$0xf]  ;;  %v2624_v42 = vld [vmem:[%s2611_s10 + $0x4] sm:$0xf]  ;;  %v460_v2 = vld [vmem:[%s2611_s10 + $0x8] sm:$0xf] }
  0x20   : > { %2065 = vmatpush3.bf16.msra.mxu1 %v2271_v12  ;;  %2046 = vmatprep.subr.bf16.mxu0 %v2381_v1  ;;  %s1722_s14 = sshll.u32 %s423_s13, 2  ;;  %v2633_v45 = vcombine.low %v458_v41, %v2624_v42  ;;  %v1832_v4 = vcombine.low %v460_v2, %v460_v2  ;;  %v2313_v11 = vld [vmem:[%s2860_s3 + $0x180] sm:$0xff]   ;;  %v1857_v12 = vcombine.low %v2624_v42, %v460_v2  ;;  %s1724_s21 = sshll.u32 %s2876_s25, 5 }
  0x21   : > { %2066 = vmatprep.subr.bf16.mxu1 %v2381_v1  ;;  %s425_s23 = scalar_lea.vmem %s2859_s2, %s1722_s14 }
  0x22   : > { %v461_v48 = vld [vmem:[%s425_s23] sm:$0xf]  ;;  %v2647_v49 = vld [vmem:[%s425_s23 + $0x4] sm:$0xf]  ;;  %v2659_v52 = vld [vmem:[%s425_s23 + $0x8] sm:$0xf]  ;;  %s433_s23 = sadd.s32 %s1724_s21, %s1723_s20 }
  0x23   : > { %2047 = vmatpush3.bf16.msra.mxu0 %v2272_v16  ;;  %v2654_v51 = vcombine.low %v461_v48, %v2647_v49  ;;  %v1907_v53 = vcombine.low %v2659_v52, %v2659_v52  ;;  %v933_v7 = vrot.slane %v2633_v45, 2  ;;  %v934_v8 = vrot.slane %v1832_v4, 2  ;;  %v2318_v16 = vld [vmem:[%s2860_s3 + $0x190] sm:$0xff]   ;;  %s1725_s8 = sshll.u32 %s433_s23, 3  ;;  %s1728_s24 = sshll.u32 %s433_s23, 2 }
  0x24   : > { %2067 = vmatpush3.bf16.msra.mxu1 %v2273_v19  ;;  %2048 = vmatprep.subr.bf16.mxu0 %v2381_v1  ;;  %v2321_v19 = vld [vmem:[%s2860_s3 + $0x1d8] sm:$0xff]   ;;  %s435_s22 = scalar_lea.vmem %s2862_s5, %s1725_s8  ;;  %s453_s14 = scalar_lea.vmem %s2864_s7, %s1725_s8 }
  0x25   : > { %2068 = vmatprep.subr.bf16.mxu1 %v2381_v1  ;;  %v1272_v54 = vrot.slane %v2654_v51, 2  ;;  %v1273_v57 = vrot.slane %v1907_v53, 2  ;;  %v935_v10 = vsel %vm505_vm1, %v933_v7, %v934_v8  ;;  %s444_s10 = scalar_lea.vmem %s2863_s6, %s1728_s24 }
  0x27   : > { %2049 = vmatpush3.bf16.msra.mxu0 %v2274_v20  ;;  %v2675_v58 = vsel %vm505_vm1, %v1272_v54, %v1273_v57  ;;  %v2322_v20 = vld [vmem:[%s2860_s3 + $0x1a0] sm:$0xff]  }
  0x28   : > { %2069 = vmatpush3.bf16.msra.mxu1 %v2275_v23  ;;  %2074 = vmatprep.subr.bf16.mxu0 %v2381_v1  ;;  %v2325_v23 = vld [vmem:[%s2860_s3 + $0x1e8] sm:$0xff]  }
  0x29   : > { %2094 = vmatprep.subr.bf16.mxu1 %v2381_v1 }
  0x2a   : > { %2051 = vmatmul.mubr.bf16.vlgmr.msra.gmra.mrb[0].mxu0 %v508_v24  ;;  %v2326_v24 = vld [vmem:[%s2860_s3 + $0x1b0] sm:$0xff]  }
  0x2b   : > { %2071 = vmatmul.mubr.bf16.vlgmr.msra.gmra.mrb[0].mxu1 %v1748_v17  ;;  %2075 = vmatpush3.bf16.msra.mxu0 %v2278_v25  ;;  %v2319_v17 = vld [vmem:[%s2860_s3 + $0x1d0] sm:$0xff]  }
  0x2c   : > { %2095 = vmatpush3.bf16.msra.mxu1 %v2279_v26  ;;  %2076 = vmatprep.subr.bf16.mxu0 %v2381_v1  ;;  %v2327_v25 = vld [vmem:[%s2860_s3 + $0x1f0] sm:$0xff]   ;;  %v2328_v26 = vld [vmem:[%s2860_s3 + $0x1b8] sm:$0xff]  }
  0x2d   : > { %2096 = vmatprep.subr.bf16.mxu1 %v2381_v1  ;;  %2090 = vmatprep.mubr.msk.bf16.mxu0 %vm2382_vm0, %v2381_v1 }
  0x2e   : > { %2110 = vmatprep.mubr.msk.bf16.mxu1 %vm2382_vm0, %v2381_v1 }
  0x2f   : > { %2077 = vmatpush3.bf16.msra.mxu0 %v2280_v27  ;;  %v2329_v27 = vld [vmem:[%s2860_s3 + $0x1f8] sm:$0xff]  }
  0x30   : > { %2097 = vmatpush3.bf16.msra.mxu1 %v2281_v28  ;;  %2078 = vmatprep.subr.bf16.mxu0 %v2381_v1  ;;  %v2331_v28 = vld [vmem:[%s2860_s3 + $0x200] sm:$0xff]  }
  0x31   : > { %2098 = vmatprep.subr.bf16.mxu1 %v2381_v1 }
  0x33   : > { %2079 = vmatpush3.bf16.msra.mxu0 %v2282_v29  ;;  %v2333_v29 = vld [vmem:[%s2860_s3 + $0x208] sm:$0xff]  }
  0x34   : > { %2099 = vmatpush3.bf16.msra.mxu1 %v2283_v30  ;;  %2080 = vmatprep.subr.bf16.mxu0 %v2381_v1  ;;  %v2334_v30 = vld [vmem:[%s2860_s3 + $0x210] sm:$0xff]  }
  0x35   : > { %2100 = vmatprep.subr.bf16.mxu1 %v2381_v1 }
  0x37   : > { %2081 = vmatpush3.bf16.msra.mxu0 %v2284_v31  ;;  %v2335_v31 = vld [vmem:[%s2860_s3 + $0x218] sm:$0xff]  }
  0x38   : > { %2101 = vmatpush3.bf16.msra.mxu1 %v2285_v32  ;;  %2082 = vmatprep.subr.bf16.mxu0 %v2381_v1  ;;  %v2336_v32 = vld [vmem:[%s2860_s3 + $0x220] sm:$0xff]  }
  0x39   : > { %2102 = vmatprep.subr.bf16.mxu1 %v2381_v1 }
  0x3b   : > { %2083 = vmatpush3.bf16.msra.mxu0 %v2286_v33  ;;  %v2337_v33 = vld [vmem:[%s2860_s3 + $0x228] sm:$0xff]  }
  0x3c   : > { %2103 = vmatpush3.bf16.msra.mxu1 %v2287_v34  ;;  %2084 = vmatprep.subr.bf16.mxu0 %v2381_v1  ;;  %v2338_v34 = vld [vmem:[%s2860_s3 + $0x230] sm:$0xff]  }
  0x3d   : > { %2104 = vmatprep.subr.bf16.mxu1 %v2381_v1 }
  0x3f   : > { %2085 = vmatpush3.bf16.msra.mxu0 %v2288_v35  ;;  %v2339_v35 = vld [vmem:[%s2860_s3 + $0x238] sm:$0xff]  }
  0x40   : > { %2105 = vmatpush3.bf16.msra.mxu1 %v2289_v36  ;;  %2086 = vmatprep.subr.bf16.mxu0 %v2381_v1  ;;  %v1932_v36 = vcombine.low %v2647_v49, %v2659_v52 }
  0x41   : > { %2106 = vmatprep.subr.bf16.mxu1 %v2381_v1 }
  0x43   : > { %2087 = vmatpush3.bf16.msra.mxu0 %v2290_v37 }
  0x44   : > { %2107 = vmatpush3.bf16.msra.mxu1 %v2291_v38  ;;  %2088 = vmatprep.subr.bf16.mxu0 %v2381_v1 }
  0x45   : > { %2108 = vmatprep.subr.bf16.mxu1 %v2381_v1 }
  0x47   : > { %2089 = vmatpush3.bf16.msra.mxu0 %v2292_v39 }
  0x48   : > { %2109 = vmatpush3.bf16.msra.mxu1 %v2293_v40  ;;  %2114 = vmatprep.subr.bf16.mxu0 %v2381_v1 }
  0x49   : > { %2134 = vmatprep.subr.bf16.mxu1 %v2381_v1 }
  0x4a   : > { %2091 = vmatmul.mubr.bf16.vlgmr.msra.gmra.mrb[4].mxu0 %v1782_v43 }
  0x4b   : > { %2115 = vmatpush3.bf16.msra.mxu0 %v2295_v44  ;;  %2111 = vmatmul.mubr.bf16.vlgmr.msra.gmra.mrb[4].mxu1 %v2633_v45 }
  0x4c   : > { %2135 = vmatpush3.bf16.msra.mxu1 %v2297_v46  ;;  %2116 = vmatprep.subr.bf16.mxu0 %v2381_v1 }
  0x4d   : > { %2136 = vmatprep.subr.bf16.mxu1 %v2381_v1  ;;  %2130 = vmatprep.mubr.msk.bf16.mxu0 %vm2382_vm0, %v2381_v1 }
  0x4e   : > { %2150 = vmatprep.mubr.msk.bf16.mxu1 %vm2382_vm0, %v2381_v1 }
  0x4f   : > { %2117 = vmatpush3.bf16.msra.mxu0 %v2298_v47 }
  0x50   : > { %2137 = vmatpush3.bf16.msra.mxu1 %v2299_v50  ;;  %2118 = vmatprep.subr.bf16.mxu0 %v2381_v1 }
  0x51   : > { %2138 = vmatprep.subr.bf16.mxu1 %v2381_v1 }
  0x53   : > { %2119 = vmatpush3.bf16.msra.mxu0 %v2300_v55 }
  0x54   : > { %2139 = vmatpush3.bf16.msra.mxu1 %v2301_v56  ;;  %2120 = vmatprep.subr.bf16.mxu0 %v2381_v1 }
  0x55   : > { %2140 = vmatprep.subr.bf16.mxu1 %v2381_v1 }
  0x57   : > { %2121 = vmatpush3.bf16.msra.mxu0 %v2302_v59 }
  0x58   : > { %2141 = vmatpush3.bf16.msra.mxu1 %v2303_v60  ;;  %2122 = vmatprep.subr.bf16.mxu0 %v2381_v1 }
  0x59   : > { %2142 = vmatprep.subr.bf16.mxu1 %v2381_v1 }
  0x5b   : > { %2123 = vmatpush3.bf16.msra.mxu0 %v2304_v61 }
  0x5c   : > { %2143 = vmatpush3.bf16.msra.mxu1 %v2305_v62  ;;  %2124 = vmatprep.subr.bf16.mxu0 %v2381_v1 }
  0x5d   : > { %2144 = vmatprep.subr.bf16.mxu1 %v2381_v1 }
  0x5f   : > { %2125 = vmatpush3.bf16.msra.mxu0 %v2306_v63 }
  0x60   : > { %2145 = vmatpush3.bf16.msra.mxu1 %v2307_v0  ;;  %2126 = vmatprep.subr.bf16.mxu0 %v2381_v1 }
  0x61   : > { %2146 = vmatprep.subr.bf16.mxu1 %v2381_v1 }
  0x63   : > { %2127 = vmatpush3.bf16.msra.mxu0 %v2308_v3 }
  0x64   : > { %2147 = vmatpush3.bf16.msra.mxu1 %v2309_v5  ;;  %2128 = vmatprep.subr.bf16.mxu0 %v2381_v1 }
  0x65   : > { %2148 = vmatprep.subr.bf16.mxu1 %v2381_v1 }
  0x67   : > { %2129 = vmatpush3.bf16.msra.mxu0 %v2310_v6 }
  0x68   : > { %2149 = vmatpush3.bf16.msra.mxu1 %v2311_v9  ;;  %2154 = vmatprep.subr.bf16.mxu0 %v2381_v1 }
  0x69   : > { %2174 = vmatprep.subr.bf16.mxu1 %v2381_v1 }
  0x6a   : > { %2131 = vmatmul.mubr.bf16.vlgmr.msra.gmra.mrb[8].mxu0 %v935_v10 }
  0x6b   : > { %2155 = vmatpush3.bf16.msra.mxu0 %v2313_v11  ;;  %2151 = vmatmul.mubr.bf16.vlgmr.msra.gmra.mrb[8].mxu1 %v1857_v12 }
  0x6c   : > { %2175 = vmatpush3.bf16.msra.mxu1 %v2315_v13  ;;  %2156 = vmatprep.subr.bf16.mxu0 %v2381_v1 }
  0x6d   : > { %2176 = vmatprep.subr.bf16.mxu1 %v2381_v1  ;;  %2170 = vmatprep.mubr.msk.bf16.mxu0 %vm2382_vm0, %v2381_v1 }
  0x6e   : > { %2190 = vmatprep.mubr.msk.bf16.mxu1 %vm2382_vm0, %v2381_v1 }
  0x6f   : > { %2157 = vmatpush3.bf16.msra.mxu0 %v2316_v14 }
  0x70   : > { %2177 = vmatpush3.bf16.msra.mxu1 %v2317_v15  ;;  %2158 = vmatprep.subr.bf16.mxu0 %v2381_v1 }
  0x71   : > { %2178 = vmatprep.subr.bf16.mxu1 %v2381_v1 }
  0x73   : > { %2159 = vmatpush3.bf16.msra.mxu0 %v2318_v16 }
  0x74   : > { %2179 = vmatpush3.bf16.msra.mxu1 %v2319_v17  ;;  %2160 = vmatprep.subr.bf16.mxu0 %v2381_v1 }
  0x75   : > { %2180 = vmatprep.subr.bf16.mxu1 %v2381_v1 }
  0x77   : > { %2161 = vmatpush3.bf16.msra.mxu0 %v2320_v18 }
  0x78   : > { %2181 = vmatpush3.bf16.msra.mxu1 %v2321_v19  ;;  %2162 = vmatprep.subr.bf16.mxu0 %v2381_v1 }
  0x79   : > { %2182 = vmatprep.subr.bf16.mxu1 %v2381_v1 }
  0x7b   : > { %2163 = vmatpush3.bf16.msra.mxu0 %v2322_v20  ;;  %v1941_v20 = vld [vmem:[%s2861_s4] ss:$0 sm:$0xff] }
  0x7c   : > { %2183 = vmatpush3.bf16.msra.mxu1 %v2323_v21  ;;  %2164 = vmatprep.subr.bf16.mxu0 %v2381_v1 }
  0x7d   : > { %2184 = vmatprep.subr.bf16.mxu1 %v2381_v1 }
  0x7f   : > { %2165 = vmatpush3.bf16.msra.mxu0 %v2324_v22 }
  0x80   : > { %2185 = vmatpush3.bf16.msra.mxu1 %v2325_v23  ;;  %2166 = vmatprep.subr.bf16.mxu0 %v2381_v1 }
  0x81   : > { %2186 = vmatprep.subr.bf16.mxu1 %v2381_v1 }
  0x83   : > { %2167 = vmatpush3.bf16.msra.mxu0 %v2326_v24 }
  0x84   : > { %2187 = vmatpush3.bf16.msra.mxu1 %v2327_v25  ;;  %2168 = vmatprep.subr.bf16.mxu0 %v2381_v1 }
  0x85   : > { %2188 = vmatprep.subr.bf16.mxu1 %v2381_v1 }
  0x87   : > { %2169 = vmatpush3.bf16.msra.mxu0 %v2328_v26 }
  0x88   : > { %2189 = vmatpush3.bf16.msra.mxu1 %v2329_v27  ;;  %2194 = vmatprep.subr.bf16.mxu0 %v2381_v1  ;;  %v1498_v27 = vld [vmem:[%s435_s22] sm:$0xff] }
  0x8a   : > { %2171 = vmatmul.mubr.bf16.vlgmr.msra.gmra.mrb[12].mxu0 %v2654_v51 }
  0x8b   : > { %2195 = vmatpush3.bf16.msra.mxu0 %v2331_v28  ;;  %2191 = vmatmul.mubr.bf16.vlgmr.msra.gmra.mrb[12].mxu1 %v2675_v58 }
  0x8c   : > { %2196 = vmatprep.subr.bf16.mxu0 %v2381_v1  ;;  %2210 = vmatprep.mubr.msk.bf16.mxu0 %vm2382_vm0, %v2381_v1 }
  0x8f   : > { %2197 = vmatpush3.bf16.msra.mxu0 %v2333_v29 }
  0x90   : > { %2198 = vmatprep.subr.bf16.mxu0 %v2381_v1 }
  0x93   : > { %2199 = vmatpush3.bf16.msra.mxu0 %v2334_v30  ;;  %v1499_v30 = vld [vmem:[%s435_s22 + $0x8] sm:$0xff] }
  0x94   : > { %2200 = vmatprep.subr.bf16.mxu0 %v2381_v1 }
  0x97   : > { %2201 = vmatpush3.bf16.msra.mxu0 %v2335_v31 }
  0x98   : > { %2202 = vmatprep.subr.bf16.mxu0 %v2381_v1 }
  0x9b   : > { %2203 = vmatpush3.bf16.msra.mxu0 %v2336_v32 }
  0x9c   : > { %2204 = vmatprep.subr.bf16.mxu0 %v2381_v1 }
  0x9f   : > { %2205 = vmatpush3.bf16.msra.mxu0 %v2337_v33 }
  0xa0   : > { %2206 = vmatprep.subr.bf16.mxu0 %v2381_v1 }
  0xa3   : > { %2207 = vmatpush3.bf16.msra.mxu0 %v2338_v34 }
  0xa4   : > { %2208 = vmatprep.subr.bf16.mxu0 %v2381_v1 }
  0xa7   : > { %2209 = vmatpush3.bf16.msra.mxu0 %v2339_v35 }
  0xaa   : > { %2211 = vmatmul.mubr.bf16.vlgmr.msra.gmra.mrb[16].mxu0 %v1932_v36 }
  0xfd   : > { %v592_v37 = vpop.f32.mrb[0].mxu0 }
  0xfe   : > { %v682_v38 = vpop.f32.mrb[0].mxu1  ;;  %v2052_v39 = vpop.f32.mrb[1].mxu0 }
  0xff   : > { %v683_v40 = vadd.f32 %v682_v38, %v592_v37  ;;  %v2072_v41 = vpop.f32.mrb[1].mxu1  ;;  %v595_v42 = vpop.f32.mrb[2].mxu0 }
 0x100   : > { %v685_v43 = vpop.f32.mrb[2].mxu1  ;;  %v2053_v44 = vpop.f32.mrb[3].mxu0 }
 0x101   : > { %v686_v45 = vadd.f32 %v685_v43, %v595_v42  ;;  %v2073_v46 = vpop.f32.mrb[3].mxu1 }
 0x11d   : > { %v790_v47 = vpop.f32.mrb[4].mxu0 }
 0x11e   : > { %v797_v48 = vadd.f32 %v790_v47, %v683_v40  ;;  %v2092_v50 = vpop.f32.mrb[5].mxu0  ;;  %v904_v51 = vpop.f32.mrb[4].mxu1 }
 0x11f   : > { %v793_v1 = vpop.f32.mrb[6].mxu0  ;;  %v2112_v53 = vpop.f32.mrb[5].mxu1 }
 0x120   : > { %v798_v54 = vadd.f32 %v793_v1, %v686_v45  ;;  %v911_v49 = vadd.f32 %v904_v51, %v797_v48  ;;  %v2093_v52 = vpop.f32.mrb[7].mxu0  ;;  %v907_v55 = vpop.f32.mrb[6].mxu1 }
 0x121   : > { %v2113_v56 = vpop.f32.mrb[7].mxu1 }
 0x122   : > { %v912_v57 = vadd.f32 %v907_v55, %v798_v54 }
 0x13d   : > { %v1019_v58 = vpop.f32.mrb[8].mxu0 }
 0x13e   : > { %v1026_v59 = vadd.f32 %v1019_v58, %v911_v49  ;;  %v2132_v60 = vpop.f32.mrb[9].mxu0  ;;  %v1129_v61 = vpop.f32.mrb[8].mxu1 }
 0x13f   : > { %v1022_v62 = vpop.f32.mrb[10].mxu0  ;;  %v2152_v63 = vpop.f32.mrb[9].mxu1 }
 0x140   : > { %v1027_v0 = vadd.f32 %v1022_v62, %v912_v57  ;;  %v1136_v2 = vadd.f32 %v1129_v61, %v1026_v59  ;;  %v2133_v3 = vpop.f32.mrb[11].mxu0  ;;  %v1132_v4 = vpop.f32.mrb[10].mxu1 }
 0x141   : > { %v2153_v5 = vpop.f32.mrb[11].mxu1 }
 0x142   : > { %v1137_v6 = vadd.f32 %v1132_v4, %v1027_v0 }
 0x15d   : > { %v1243_v7 = vpop.f32.mrb[12].mxu0 }
 0x15e   : > { %v1250_v8 = vadd.f32 %v1243_v7, %v1136_v2  ;;  %v2172_v9 = vpop.f32.mrb[13].mxu0  ;;  %v1358_v10 = vpop.f32.mrb[12].mxu1 }
 0x15f   : > { %v1246_v11 = vpop.f32.mrb[14].mxu0  ;;  %v2192_v12 = vpop.f32.mrb[13].mxu1 }
 0x160   : > { %v1251_v13 = vadd.f32 %v1246_v11, %v1137_v6  ;;  %v1365_v14 = vadd.f32 %v1358_v10, %v1250_v8  ;;  %v2173_v15 = vpop.f32.mrb[15].mxu0  ;;  %v1361_v16 = vpop.f32.mrb[14].mxu1 }
 0x161   : > { %v2193_v17 = vpop.f32.mrb[15].mxu1 }
 0x162   : > { %v1366_v18 = vadd.f32 %v1361_v16, %v1251_v13 }
 0x17d   : > { %v1468_v19 = vpop.f32.mrb[16].mxu0 }
 0x17e   : > { %v1475_v21 = vadd.f32 %v1468_v19, %v1365_v14  ;;  %v2212_v22 = vpop.f32.mrb[17].mxu0 }
 0x17f   : > { %v1471_v23 = vpop.f32.mrb[18].mxu0 }
 0x180   : > { %v1484_v24 = vadd.f32 %v1941_v20, %v1475_v21  ;;  %v1476_v25 = vadd.f32 %v1471_v23, %v1366_v18  ;;  %v2213_v26 = vpop.f32.mrb[19].mxu0 }
 0x182   : > { %v1486_v28 = vmax.f32 %v1484_v24, 0.0  ;;  %v1485_v29 = vadd.f32 %v1941_v20, %v1476_v25 }
 0x184   : > { %v1500_v31 = vadd.f32 %v1498_v27, %v1486_v28  ;;  %v1487_v32 = vmax.f32 %v1485_v29, 0.0 }
 0x186   : > { %v1951_v33 = vpack.c.bf16 %v1487_v32, %v1486_v28  ;;  %v1501_v34 = vadd.f32 %v1499_v30, %v1487_v32  ;;  %1502 = vst [vmem:[%s453_s14] sm:$0xff] %v1500_v31 }
 0x188   : > { %1952 = vst [vmem:[%s444_s10] sm:$0xff] %v1951_v33   ;;  %1503 = vst [vmem:[%s453_s14 + $0x8] sm:$0xff] %v1501_v34 }
 0x189 PF: > { %s18_s28 = sadd.s32 1, %s2379_s28   ;;  %s2865_s24 = smov %s2371_s26 }
 0x18a   : > { %p15_p10 = scmp.ge.s32.totalorder %s18_s28, 34   ;;  %s2866_s25 = smov %s2375_s27 }
 0x18b   : > { %s2867_s26 = smov %s2870_s29  ;;  %s2868_s27 = smov %s2874_s30 }
 0x18c   :  { %17 = sbr.rel (!%p15_p10) target bundleno = 3 (0x3), region = 103 }

// kernel: a_call__.9
= control target key start
LH: loop header
LB: loop body
LE: loop exit
PB: predicated region body
PF: predicated region fallthrough
CT: control target
= control target key end

     0   :  { %s2310_s21 = smov 0   ;;  %s2312_s22 = smov 0   ;;  %s2715_s0 = inlined_call_operand.vmem [shape: bf16[2,48,48,128], index: 0, kind: input, shape index: {}, may-alias: {0,1,2}]   ;;  %s2716_s1 = inlined_call_operand.vmem [shape: bf16[2,48,48,128], index: 1, kind: input, shape index: {}, may-alias: {0,1,2}]   ;;  %s2717_s2 = inlined_call_operand.vmem [shape: bf16[2,48,48,128], index: 2, kind: input, shape index: {}, may-alias: {0,1,2}]   ;;  %s2718_s3 = inlined_call_operand.vmem [shape: bf16[3,3,128,128], index: 3, kind: input, shape index: {}]   ;;  %s2719_s4 = inlined_call_operand.vmem [shape: f32[1,128], index: 4, kind: input, shape index: {}]   ;;  %s2720_s5 = inlined_call_operand.vmem [shape: f32[2,16,16,128], index: 5, kind: input, shape index: {}, may-alias: {5,6}]   ;;  %s2721_s6 = inlined_call_operand.vmem [shape: f32[2,16,16,128], index: 6, kind: output, shape index: {}, may-alias: {5,6}]  }
   0x1   :  { %s2314_s23 = smov 0   ;;  %s2316_s24 = smov 0  }
   0x2   :  { %s2318_s25 = smov 0  }
   0x3 LB: > { %s25_s26 = sadd.s32 1, %s2263_s23  ;;  %s28_s27 = sadd.s32 1, %s2267_s24  ;;  %s2271_s25 = sphi %s2318_s25, %s16_s25   ;;  %s2267_s24 = sphi %s2316_s24, %s2725_s24   ;;  %s2263_s23 = sphi %s2314_s23, %s2724_s23   ;;  %s2259_s22 = sphi %s2312_s22, %s2723_s22   ;;  %s2255_s21 = sphi %s2310_s21, %s2722_s21  }
   0x4   : > { %p26_p0 = scmp.ge.s32.totalorder %s25_s26, 16  ;;  %p1623_p1 = scmp.ge.s32.totalorder %s2271_s25, 1 }
   0x5   : > { %p288_p2 = scmp.lt.s32.totalorder %s2271_s25, 33 }
   0x6   : > { %s2727_s26 = smov (%p26_p0, %s25_s26), 0  ;;  %s2729_s27 = smov (!%p26_p0, %s28_s27), %s2267_s24 }
   0x7   : > { %p289_p3 = pnand %p1623_p1, %p288_p2  ;;  %p30_p4 = scmp.ge.s32.totalorder %s2729_s27, 2 }
   0x8   : > { %v2152_v0 = vld [vmem:[%s2718_s3 + $0x40] sm:$0xff] (!%p289_p3)   ;;  %v2273_v1 = vmov (!%p289_p3), 0.0   ;;  %v2154_v3 = vld [vmem:[%s2718_s3 + $0x48] sm:$0xff] (!%p289_p3)   ;;  %vm2274_vm0 = vmmov (!%p289_p3), 0   ;;  %p355_p5 = scmp.lt.s32.totalorder (!%p289_p3), %s2259_s22, 1  ;;  %p357_p6 = scmp.lt.s32.totalorder (!%p289_p3), %s2255_s21, 47 }
   0x9   : > { %s2731_s27 = smov (%p30_p4, %s2729_s27), 0  ;;  %292 = sbr.rel (%p289_p3) target bundleno = 393 (0x189), region = 44 }
   0xa   : > { %1926 = vmatprep.subr.bf16.mxu0 (!%p289_p3), %v2273_v1  ;;  %1946 = vmatprep.subr.bf16.mxu1 (!%p289_p3), %v2273_v1  ;;  %v2153_v2 = vld [vmem:[%s2718_s3] sm:$0xff] (!%p289_p3)   ;;  %v2155_v4 = vld [vmem:[%s2718_s3 + $0x8] sm:$0xff] (!%p289_p3)   ;;  %v2156_v5 = vld [vmem:[%s2718_s3 + $0x50] sm:$0xff] (!%p289_p3)   ;;  %s364_s10 = sadd.s32 (!%p289_p3), 16, %s2255_s21  ;;  %p388_p9 = scmp.lt.s32.totalorder (!%p289_p3), %s2255_s21, 15 }
   0xb   : > { %1927 = vmatpush3.bf16.msra.mxu0 (!%p289_p3), %v2152_v0  ;;  %1942 = vmatprep.mubr.msk.bf16.mxu0 (!%p289_p3), %vm2274_vm0, %v2273_v1  ;;  %v2157_v6 = vld [vmem:[%s2718_s3 + $0x10] sm:$0xff] (!%p289_p3)   ;;  %v2158_v7 = vld [vmem:[%s2718_s3 + $0x58] sm:$0xff] (!%p289_p3)   ;;  %v2160_v9 = vld [vmem:[%s2718_s3 + $0x60] sm:$0xff] (!%p289_p3)   ;;  %p367_p7 = scmp.lt.s32.totalorder (!%p289_p3), %s364_s10, 47 }
   0xc   : > { %1947 = vmatpush3.bf16.msra.mxu1 (!%p289_p3), %v2153_v2  ;;  %1928 = vmatprep.subr.bf16.mxu0 (!%p289_p3), %v2273_v1  ;;  %v2159_v8 = vld [vmem:[%s2718_s3 + $0x18] sm:$0xff] (!%p289_p3)   ;;  %v2161_v10 = vld [vmem:[%s2718_s3 + $0x20] sm:$0xff] (!%p289_p3)   ;;  %v2162_v11 = vld [vmem:[%s2718_s3 + $0x68] sm:$0xff] (!%p289_p3)  }
   0xd   : > { %1948 = vmatprep.subr.bf16.mxu1 (!%p289_p3), %v2273_v1  ;;  %1962 = vmatprep.mubr.msk.bf16.mxu1 (!%p289_p3), %vm2274_vm0, %v2273_v1  ;;  %v2163_v12 = vld [vmem:[%s2718_s3 + $0x28] sm:$0xff] (!%p289_p3)   ;;  %v2164_v13 = vld [vmem:[%s2718_s3 + $0x70] sm:$0xff] (!%p289_p3)   ;;  %v2166_v15 = vld [vmem:[%s2718_s3 + $0x78] sm:$0xff] (!%p289_p3)  }
   0xe   : > { %v2165_v14 = vld [vmem:[%s2718_s3 + $0x30] sm:$0xff] (!%p289_p3)   ;;  %v2167_v16 = vld [vmem:[%s2718_s3 + $0x38] sm:$0xff] (!%p289_p3)   ;;  %v2170_v19 = vld [vmem:[%s2718_s3 + $0x80] sm:$0xff] (!%p289_p3)  }
   0xf   : > { %1929 = vmatpush3.bf16.msra.mxu0 (!%p289_p3), %v2154_v3  ;;  %v2171_v20 = vld [vmem:[%s2718_s3 + $0xc0] sm:$0xff] (!%p289_p3)   ;;  %v2172_v21 = vld [vmem:[%s2718_s3 + $0x88] sm:$0xff] (!%p289_p3)   ;;  %v2174_v23 = vld [vmem:[%s2718_s3 + $0x90] sm:$0xff] (!%p289_p3)  }
  0x10   : > { %s2733_s22 = smov (!%p355_p5, %s2259_s22), 1  ;;  %1949 = vmatpush3.bf16.msra.mxu1 %v2155_v4  ;;  %1930 = vmatprep.subr.bf16.mxu0 %v2273_v1  ;;  %s2735_s10 = smov (!%p367_p7, %s364_s10), 47  ;;  %v2173_v22 = vld [vmem:[%s2718_s3 + $0xc8] sm:$0xff]   ;;  %v2175_v24 = vld [vmem:[%s2718_s3 + $0xd0] sm:$0xff]   ;;  %v2176_v25 = vld [vmem:[%s2718_s3 + $0x98] sm:$0xff]  }
  0x11   : > { %s358_s12 = scalar_select %p357_p6, %s2255_s21, 47  ;;  %1950 = vmatprep.subr.bf16.mxu1 %v2273_v1  ;;  %v2177_v26 = vld [vmem:[%s2718_s3 + $0xd8] sm:$0xff]   ;;  %v2178_v27 = vld [vmem:[%s2718_s3 + $0xa0] sm:$0xff]   ;;  %v2180_v29 = vld [vmem:[%s2718_s3 + $0xa8] sm:$0xff]  }
  0x12   : > { %s2374_s15 = smul.u32 288, %s2733_s22  ;;  %v2179_v28 = vld [vmem:[%s2718_s3 + $0xe0] sm:$0xff]   ;;  %v2181_v30 = vld [vmem:[%s2718_s3 + $0xe8] sm:$0xff]   ;;  %v2182_v31 = vld [vmem:[%s2718_s3 + $0xb0] sm:$0xff]  }
  0x13   : > { %s2106_s18 = smul.u32 6, %s358_s12  ;;  %1931 = vmatpush3.bf16.msra.mxu0 %v2156_v5  ;;  %v2183_v32 = vld [vmem:[%s2718_s3 + $0xf0] sm:$0xff]   ;;  %v2184_v33 = vld [vmem:[%s2718_s3 + $0xb8] sm:$0xff]   ;;  %v2187_v36 = vld [vmem:[%s2718_s3 + $0x100] sm:$0xff]  }
  0x14   : > { %1951 = vmatpush3.bf16.msra.mxu1 %v2157_v6  ;;  %1932 = vmatprep.subr.bf16.mxu0 %v2273_v1  ;;  %s2108_s8 = smul.u32 6, %s2735_s10  ;;  %v2185_v34 = vld [vmem:[%s2718_s3 + $0xf8] sm:$0xff]   ;;  %v2189_v38 = vld [vmem:[%s2718_s3 + $0x140] sm:$0xff]   ;;  %v2190_v39 = vld [vmem:[%s2718_s3 + $0x108] sm:$0xff]  }
  0x15   : > { %s361_s19 = sadd.s32 %s2374_s15, %s2106_s18  ;;  %1952 = vmatprep.subr.bf16.mxu1 %v2273_v1  ;;  %v2191_v40 = vld [vmem:[%s2718_s3 + $0x148] sm:$0xff]   ;;  %v2192_v41 = vld [vmem:[%s2718_s3 + $0x110] sm:$0xff]   ;;  %v2194_v43 = vld [vmem:[%s2718_s3 + $0x118] sm:$0xff]  }
  0x16   : > { %s1624_s7 = sshll.u32 %s361_s19, 2  ;;  %s371_s14 = sadd.s32 %s2108_s8, %s2374_s15  ;;  %v2193_v42 = vld [vmem:[%s2718_s3 + $0x150] sm:$0xff]   ;;  %v2195_v44 = vld [vmem:[%s2718_s3 + $0x158] sm:$0xff]   ;;  %v2196_v45 = vld [vmem:[%s2718_s3 + $0x120] sm:$0xff]  }
  0x17   : > { %1933 = vmatpush3.bf16.msra.mxu0 %v2158_v7  ;;  %s2401_s16 = scalar_lea.vmem %s2715_s0, %s1624_s7  ;;  %s1625_s20 = sshll.u32 %s371_s14, 2  ;;  %v2197_v46 = vld [vmem:[%s2718_s3 + $0x160] sm:$0xff]   ;;  %v2198_v47 = vld [vmem:[%s2718_s3 + $0x128] sm:$0xff]   ;;  %v2200_v49 = vld [vmem:[%s2718_s3 + $0x130] sm:$0xff]  }
  0x18   : > { %1953 = vmatpush3.bf16.msra.mxu1 %v2159_v8  ;;  %1934 = vmatprep.subr.bf16.mxu0 %v2273_v1  ;;  %v2168_v17 = vld [vmem:[%s2401_s16 + $0x8] sm:$0xff]   ;;  %v2169_v18 = vld [vmem:[%s2401_s16] sm:$0xff]   ;;  %s2449_s11 = scalar_lea.vmem %s2716_s1, %s1625_s20  ;;  %s375_s8 = sadd.s32 32, %s2255_s21  ;;  %v2186_v35 = vld [vmem:[%s2401_s16 + $0x10] sm:$0xff]  }
  0x19   : > { %1954 = vmatprep.subr.bf16.mxu1 %v2273_v1  ;;  %p378_p8 = scmp.lt.s32.totalorder %s375_s8, 47  ;;  %v2188_v37 = vld [vmem:[%s2449_s11] sm:$0xff]   ;;  %v2199_v48 = vld [vmem:[%s2718_s3 + $0x168] sm:$0xff]   ;;  %v2201_v50 = vld [vmem:[%s2718_s3 + $0x170] sm:$0xff]   ;;  %s2739_s21 = smov (!%p388_p9, %s2255_s21), 15 }
  0x1a   : > { %v2202_v51 = vld [vmem:[%s2718_s3 + $0x138] sm:$0xff]   ;;  %v2204_v53 = vld [vmem:[%s2449_s11 + $0x8] sm:$0xff]   ;;  %v2205_v54 = vld [vmem:[%s2718_s3 + $0x180] sm:$0xff]  }
  0x1b   : > { %1935 = vmatpush3.bf16.msra.mxu0 %v2160_v9  ;;  %s2737_s8 = smov (!%p378_p8, %s375_s8), 47  ;;  %v2203_v52 = vld [vmem:[%s2718_s3 + $0x178] sm:$0xff]   ;;  %v2206_v55 = vld [vmem:[%s2449_s11 + $0x10] sm:$0xff]   ;;  %v2207_v56 = vld [vmem:[%s2718_s3 + $0x1c0] sm:$0xff]  }
  0x1c   : > { %1955 = vmatpush3.bf16.msra.mxu1 %v2161_v10  ;;  %1936 = vmatprep.subr.bf16.mxu0 %v2273_v1  ;;  %s2109_s7 = smul.u32 6, %s2737_s8  ;;  %v2208_v57 = vld [vmem:[%s2718_s3 + $0x188] sm:$0xff]   ;;  %v2210_v59 = vld [vmem:[%s2718_s3 + $0x190] sm:$0xff]   ;;  %v2212_v61 = vld [vmem:[%s2718_s3 + $0x198] sm:$0xff]   ;;  %s1628_s8 = sshll.u32 %s2733_s22, 5 }
  0x1d   : > { %1956 = vmatprep.subr.bf16.mxu1 %v2273_v1  ;;  %v2209_v58 = vld [vmem:[%s2718_s3 + $0x1c8] sm:$0xff]   ;;  %v2211_v60 = vld [vmem:[%s2718_s3 + $0x1d0] sm:$0xff]   ;;  %v2213_v62 = vld [vmem:[%s2718_s3 + $0x1d8] sm:$0xff]  }
  0x1e   : > { %s382_s17 = sadd.s32 %s2109_s7, %s2374_s15  ;;  %v2214_v63 = vld [vmem:[%s2718_s3 + $0x1a0] sm:$0xff]   ;;  %v2216_v2 = vld [vmem:[%s2718_s3 + $0x1a8] sm:$0xff]   ;;  %v2218_v4 = vld [vmem:[%s2718_s3 + $0x1b0] sm:$0xff]  }
  0x1f   : > { %1937 = vmatpush3.bf16.msra.mxu0 %v2162_v11  ;;  %s1626_s10 = sshll.u32 %s382_s17, 2  ;;  %v2215_v0 = vld [vmem:[%s2718_s3 + $0x1e0] sm:$0xff]   ;;  %v2217_v3 = vld [vmem:[%s2718_s3 + $0x1e8] sm:$0xff]   ;;  %v2219_v5 = vld [vmem:[%s2718_s3 + $0x1f0] sm:$0xff]  }
  0x20   : > { %1957 = vmatpush3.bf16.msra.mxu1 %v2163_v12  ;;  %1938 = vmatprep.subr.bf16.mxu0 %v2273_v1  ;;  %s2531_s28 = scalar_lea.vmem %s2717_s2, %s1626_s10  ;;  %v2220_v6 = vld [vmem:[%s2718_s3 + $0x1b8] sm:$0xff]   ;;  %v2223_v9 = vld [vmem:[%s2718_s3 + $0x200] sm:$0xff]   ;;  %v2225_v11 = vld [vmem:[%s2718_s3 + $0x208] sm:$0xff]  }
  0x21   : > { %1958 = vmatprep.subr.bf16.mxu1 %v2273_v1  ;;  %v2221_v7 = vld [vmem:[%s2718_s3 + $0x1f8] sm:$0xff]   ;;  %v2222_v8 = vld [vmem:[%s2531_s28] sm:$0xff]   ;;  %v2224_v10 = vld [vmem:[%s2531_s28 + $0x8] sm:$0xff]  }
  0x22   : > { %v2226_v12 = vld [vmem:[%s2718_s3 + $0x210] sm:$0xff]  }
  0x23   : > { %1939 = vmatpush3.bf16.msra.mxu0 %v2164_v13  ;;  %v2227_v13 = vld [vmem:[%s2718_s3 + $0x218] sm:$0xff]  }
  0x24   : > { %1959 = vmatpush3.bf16.msra.mxu1 %v2165_v14  ;;  %1940 = vmatprep.subr.bf16.mxu0 %v2273_v1  ;;  %v2228_v14 = vld [vmem:[%s2718_s3 + $0x220] sm:$0xff]  }
  0x25   : > { %1960 = vmatprep.subr.bf16.mxu1 %v2273_v1 }
  0x27   : > { %1941 = vmatpush3.bf16.msra.mxu0 %v2166_v15  ;;  %v2229_v15 = vld [vmem:[%s2718_s3 + $0x228] sm:$0xff]  }
  0x28   : > { %1961 = vmatpush3.bf16.msra.mxu1 %v2167_v16  ;;  %1966 = vmatprep.subr.bf16.mxu0 %v2273_v1  ;;  %v2230_v16 = vld [vmem:[%s2718_s3 + $0x230] sm:$0xff]  }
  0x29   : > { %1986 = vmatprep.subr.bf16.mxu1 %v2273_v1 }
  0x2a   : > { %1943 = vmatmul.mubr.bf16.vlgmr.msra.gmra.mrb[0].mxu0 %v2168_v17  ;;  %v2231_v17 = vld [vmem:[%s2718_s3 + $0x238] sm:$0xff]  }
  0x2b   : > { %1963 = vmatmul.mubr.bf16.vlgmr.msra.gmra.mrb[0].mxu1 %v2169_v18  ;;  %1967 = vmatpush3.bf16.msra.mxu0 %v2170_v19  ;;  %v2232_v18 = vld [vmem:[%s2531_s28 + $0x10] sm:$0xff]   ;;  %s1627_s28 = sshll.u32 %s2739_s21, 1 }
  0x2c   : > { %1987 = vmatpush3.bf16.msra.mxu1 %v2171_v20  ;;  %1968 = vmatprep.subr.bf16.mxu0 %v2273_v1  ;;  %s392_s10 = sadd.s32 %s1628_s8, %s1627_s28 }
  0x2d   : > { %1988 = vmatprep.subr.bf16.mxu1 %v2273_v1  ;;  %1982 = vmatprep.mubr.msk.bf16.mxu0 %vm2274_vm0, %v2273_v1  ;;  %s1629_s18 = sshll.u32 %s392_s10, 3 }
  0x2e   : > { %2002 = vmatprep.mubr.msk.bf16.mxu1 %vm2274_vm0, %v2273_v1  ;;  %s394_s29 = scalar_lea.vmem %s2720_s5, %s1629_s18  ;;  %s403_s30 = scalar_lea.vmem %s2721_s6, %s1629_s18 }
  0x2f   : > { %1969 = vmatpush3.bf16.msra.mxu0 %v2172_v21 }
  0x30   : > { %1989 = vmatpush3.bf16.msra.mxu1 %v2173_v22  ;;  %1970 = vmatprep.subr.bf16.mxu0 %v2273_v1 }
  0x31   : > { %1990 = vmatprep.subr.bf16.mxu1 %v2273_v1 }
  0x33   : > { %1971 = vmatpush3.bf16.msra.mxu0 %v2174_v23 }
  0x34   : > { %1991 = vmatpush3.bf16.msra.mxu1 %v2175_v24  ;;  %1972 = vmatprep.subr.bf16.mxu0 %v2273_v1 }
  0x35   : > { %1992 = vmatprep.subr.bf16.mxu1 %v2273_v1 }
  0x37   : > { %1973 = vmatpush3.bf16.msra.mxu0 %v2176_v25 }
  0x38   : > { %1993 = vmatpush3.bf16.msra.mxu1 %v2177_v26  ;;  %1974 = vmatprep.subr.bf16.mxu0 %v2273_v1 }
  0x39   : > { %1994 = vmatprep.subr.bf16.mxu1 %v2273_v1 }
  0x3b   : > { %1975 = vmatpush3.bf16.msra.mxu0 %v2178_v27 }
  0x3c   : > { %1995 = vmatpush3.bf16.msra.mxu1 %v2179_v28  ;;  %1976 = vmatprep.subr.bf16.mxu0 %v2273_v1 }
  0x3d   : > { %1996 = vmatprep.subr.bf16.mxu1 %v2273_v1 }
  0x3f   : > { %1977 = vmatpush3.bf16.msra.mxu0 %v2180_v29 }
  0x40   : > { %1997 = vmatpush3.bf16.msra.mxu1 %v2181_v30  ;;  %1978 = vmatprep.subr.bf16.mxu0 %v2273_v1 }
  0x41   : > { %1998 = vmatprep.subr.bf16.mxu1 %v2273_v1 }
  0x43   : > { %1979 = vmatpush3.bf16.msra.mxu0 %v2182_v31 }
  0x44   : > { %1999 = vmatpush3.bf16.msra.mxu1 %v2183_v32  ;;  %1980 = vmatprep.subr.bf16.mxu0 %v2273_v1 }
  0x45   : > { %2000 = vmatprep.subr.bf16.mxu1 %v2273_v1 }
  0x47   : > { %1981 = vmatpush3.bf16.msra.mxu0 %v2184_v33 }
  0x48   : > { %2001 = vmatpush3.bf16.msra.mxu1 %v2185_v34  ;;  %2006 = vmatprep.subr.bf16.mxu0 %v2273_v1 }
  0x49   : > { %2026 = vmatprep.subr.bf16.mxu1 %v2273_v1 }
  0x4a   : > { %1983 = vmatmul.mubr.bf16.vlgmr.msra.gmra.mrb[4].mxu0 %v2186_v35 }
  0x4b   : > { %2007 = vmatpush3.bf16.msra.mxu0 %v2187_v36  ;;  %2003 = vmatmul.mubr.bf16.vlgmr.msra.gmra.mrb[4].mxu1 %v2188_v37 }
  0x4c   : > { %2027 = vmatpush3.bf16.msra.mxu1 %v2189_v38  ;;  %2008 = vmatprep.subr.bf16.mxu0 %v2273_v1 }
  0x4d   : > { %2028 = vmatprep.subr.bf16.mxu1 %v2273_v1  ;;  %2022 = vmatprep.mubr.msk.bf16.mxu0 %vm2274_vm0, %v2273_v1 }
  0x4e   : > { %2042 = vmatprep.mubr.msk.bf16.mxu1 %vm2274_vm0, %v2273_v1 }
  0x4f   : > { %2009 = vmatpush3.bf16.msra.mxu0 %v2190_v39 }
  0x50   : > { %2029 = vmatpush3.bf16.msra.mxu1 %v2191_v40  ;;  %2010 = vmatprep.subr.bf16.mxu0 %v2273_v1 }
  0x51   : > { %2030 = vmatprep.subr.bf16.mxu1 %v2273_v1 }
  0x53   : > { %2011 = vmatpush3.bf16.msra.mxu0 %v2192_v41 }
  0x54   : > { %2031 = vmatpush3.bf16.msra.mxu1 %v2193_v42  ;;  %2012 = vmatprep.subr.bf16.mxu0 %v2273_v1 }
  0x55   : > { %2032 = vmatprep.subr.bf16.mxu1 %v2273_v1 }
  0x57   : > { %2013 = vmatpush3.bf16.msra.mxu0 %v2194_v43 }
  0x58   : > { %2033 = vmatpush3.bf16.msra.mxu1 %v2195_v44  ;;  %2014 = vmatprep.subr.bf16.mxu0 %v2273_v1 }
  0x59   : > { %2034 = vmatprep.subr.bf16.mxu1 %v2273_v1 }
  0x5b   : > { %2015 = vmatpush3.bf16.msra.mxu0 %v2196_v45 }
  0x5c   : > { %2035 = vmatpush3.bf16.msra.mxu1 %v2197_v46  ;;  %2016 = vmatprep.subr.bf16.mxu0 %v2273_v1 }
  0x5d   : > { %2036 = vmatprep.subr.bf16.mxu1 %v2273_v1 }
  0x5f   : > { %2017 = vmatpush3.bf16.msra.mxu0 %v2198_v47 }
  0x60   : > { %2037 = vmatpush3.bf16.msra.mxu1 %v2199_v48  ;;  %2018 = vmatprep.subr.bf16.mxu0 %v2273_v1 }
  0x61   : > { %2038 = vmatprep.subr.bf16.mxu1 %v2273_v1 }
  0x63   : > { %2019 = vmatpush3.bf16.msra.mxu0 %v2200_v49 }
  0x64   : > { %2039 = vmatpush3.bf16.msra.mxu1 %v2201_v50  ;;  %2020 = vmatprep.subr.bf16.mxu0 %v2273_v1 }
  0x65   : > { %2040 = vmatprep.subr.bf16.mxu1 %v2273_v1 }
  0x67   : > { %2021 = vmatpush3.bf16.msra.mxu0 %v2202_v51 }
  0x68   : > { %2041 = vmatpush3.bf16.msra.mxu1 %v2203_v52  ;;  %2046 = vmatprep.subr.bf16.mxu0 %v2273_v1 }
  0x69   : > { %2066 = vmatprep.subr.bf16.mxu1 %v2273_v1 }
  0x6a   : > { %2023 = vmatmul.mubr.bf16.vlgmr.msra.gmra.mrb[8].mxu0 %v2204_v53 }
  0x6b   : > { %2047 = vmatpush3.bf16.msra.mxu0 %v2205_v54  ;;  %2043 = vmatmul.mubr.bf16.vlgmr.msra.gmra.mrb[8].mxu1 %v2206_v55 }
  0x6c   : > { %2067 = vmatpush3.bf16.msra.mxu1 %v2207_v56  ;;  %2048 = vmatprep.subr.bf16.mxu0 %v2273_v1 }
  0x6d   : > { %2068 = vmatprep.subr.bf16.mxu1 %v2273_v1  ;;  %2062 = vmatprep.mubr.msk.bf16.mxu0 %vm2274_vm0, %v2273_v1 }
  0x6e   : > { %2082 = vmatprep.mubr.msk.bf16.mxu1 %vm2274_vm0, %v2273_v1 }
  0x6f   : > { %2049 = vmatpush3.bf16.msra.mxu0 %v2208_v57 }
  0x70   : > { %2069 = vmatpush3.bf16.msra.mxu1 %v2209_v58  ;;  %2050 = vmatprep.subr.bf16.mxu0 %v2273_v1 }
  0x71   : > { %2070 = vmatprep.subr.bf16.mxu1 %v2273_v1 }
  0x73   : > { %2051 = vmatpush3.bf16.msra.mxu0 %v2210_v59 }
  0x74   : > { %2071 = vmatpush3.bf16.msra.mxu1 %v2211_v60  ;;  %2052 = vmatprep.subr.bf16.mxu0 %v2273_v1 }
  0x75   : > { %2072 = vmatprep.subr.bf16.mxu1 %v2273_v1 }
  0x77   : > { %2053 = vmatpush3.bf16.msra.mxu0 %v2212_v61 }
  0x78   : > { %2073 = vmatpush3.bf16.msra.mxu1 %v2213_v62  ;;  %2054 = vmatprep.subr.bf16.mxu0 %v2273_v1 }
  0x79   : > { %2074 = vmatprep.subr.bf16.mxu1 %v2273_v1 }
  0x7b   : > { %2055 = vmatpush3.bf16.msra.mxu0 %v2214_v63 }
  0x7c   : > { %2075 = vmatpush3.bf16.msra.mxu1 %v2215_v0  ;;  %2056 = vmatprep.subr.bf16.mxu0 %v2273_v1 }
  0x7d   : > { %2076 = vmatprep.subr.bf16.mxu1 %v2273_v1 }
  0x7f   : > { %2057 = vmatpush3.bf16.msra.mxu0 %v2216_v2  ;;  %v1842_v2 = vld [vmem:[%s2719_s4] ss:$0 sm:$0xff] }
  0x80   : > { %2077 = vmatpush3.bf16.msra.mxu1 %v2217_v3  ;;  %2058 = vmatprep.subr.bf16.mxu0 %v2273_v1 }
  0x81   : > { %2078 = vmatprep.subr.bf16.mxu1 %v2273_v1 }
  0x83   : > { %2059 = vmatpush3.bf16.msra.mxu0 %v2218_v4 }
  0x84   : > { %2079 = vmatpush3.bf16.msra.mxu1 %v2219_v5  ;;  %2060 = vmatprep.subr.bf16.mxu0 %v2273_v1 }
  0x85   : > { %2080 = vmatprep.subr.bf16.mxu1 %v2273_v1 }
  0x87   : > { %2061 = vmatpush3.bf16.msra.mxu0 %v2220_v6 }
  0x88   : > { %2081 = vmatpush3.bf16.msra.mxu1 %v2221_v7  ;;  %2086 = vmatprep.subr.bf16.mxu0 %v2273_v1 }
  0x8a   : > { %2063 = vmatmul.mubr.bf16.vlgmr.msra.gmra.mrb[12].mxu0 %v2222_v8 }
  0x8b   : > { %2087 = vmatpush3.bf16.msra.mxu0 %v2223_v9  ;;  %2083 = vmatmul.mubr.bf16.vlgmr.msra.gmra.mrb[12].mxu1 %v2224_v10  ;;  %v1455_v9 = vld [vmem:[%s394_s29] sm:$0xff] }
  0x8c   : > { %2088 = vmatprep.subr.bf16.mxu0 %v2273_v1  ;;  %2102 = vmatprep.mubr.msk.bf16.mxu0 %vm2274_vm0, %v2273_v1 }
  0x8f   : > { %2089 = vmatpush3.bf16.msra.mxu0 %v2225_v11 }
  0x90   : > { %2090 = vmatprep.subr.bf16.mxu0 %v2273_v1 }
  0x93   : > { %2091 = vmatpush3.bf16.msra.mxu0 %v2226_v12  ;;  %v1456_v12 = vld [vmem:[%s394_s29 + $0x8] sm:$0xff] }
  0x94   : > { %2092 = vmatprep.subr.bf16.mxu0 %v2273_v1 }
  0x97   : > { %2093 = vmatpush3.bf16.msra.mxu0 %v2227_v13 }
  0x98   : > { %2094 = vmatprep.subr.bf16.mxu0 %v2273_v1 }
  0x9b   : > { %2095 = vmatpush3.bf16.msra.mxu0 %v2228_v14 }
  0x9c   : > { %2096 = vmatprep.subr.bf16.mxu0 %v2273_v1 }
  0x9f   : > { %2097 = vmatpush3.bf16.msra.mxu0 %v2229_v15 }
  0xa0   : > { %2098 = vmatprep.subr.bf16.mxu0 %v2273_v1 }
  0xa3   : > { %2099 = vmatpush3.bf16.msra.mxu0 %v2230_v16 }
  0xa4   : > { %2100 = vmatprep.subr.bf16.mxu0 %v2273_v1 }
  0xa7   : > { %2101 = vmatpush3.bf16.msra.mxu0 %v2231_v17 }
  0xaa   : > { %2103 = vmatmul.mubr.bf16.vlgmr.msra.gmra.mrb[16].mxu0 %v2232_v18 }
  0xfd   : > { %v544_v19 = vpop.f32.mrb[0].mxu0 }
  0xfe   : > { %v639_v20 = vpop.f32.mrb[0].mxu1  ;;  %v1944_v21 = vpop.f32.mrb[1].mxu0 }
  0xff   : > { %v640_v22 = vadd.f32 %v639_v20, %v544_v19  ;;  %v1964_v23 = vpop.f32.mrb[1].mxu1  ;;  %v547_v24 = vpop.f32.mrb[2].mxu0 }
 0x100   : > { %v642_v25 = vpop.f32.mrb[2].mxu1  ;;  %v1945_v26 = vpop.f32.mrb[3].mxu0 }
 0x101   : > { %v643_v27 = vadd.f32 %v642_v25, %v547_v24  ;;  %v1965_v28 = vpop.f32.mrb[3].mxu1 }
 0x11d   : > { %v751_v29 = vpop.f32.mrb[4].mxu0 }
 0x11e   : > { %v758_v30 = vadd.f32 %v751_v29, %v640_v22  ;;  %v1984_v31 = vpop.f32.mrb[5].mxu0  ;;  %v865_v32 = vpop.f32.mrb[4].mxu1 }
 0x11f   : > { %v754_v33 = vpop.f32.mrb[6].mxu0  ;;  %v2004_v34 = vpop.f32.mrb[5].mxu1 }
 0x120   : > { %v759_v1 = vadd.f32 %v754_v33, %v643_v27  ;;  %v872_v35 = vadd.f32 %v865_v32, %v758_v30  ;;  %v1985_v36 = vpop.f32.mrb[7].mxu0  ;;  %v868_v37 = vpop.f32.mrb[6].mxu1 }
 0x121   : > { %v2005_v38 = vpop.f32.mrb[7].mxu1 }
 0x122   : > { %v873_v39 = vadd.f32 %v868_v37, %v759_v1 }
 0x13d   : > { %v979_v40 = vpop.f32.mrb[8].mxu0 }
 0x13e   : > { %v986_v41 = vadd.f32 %v979_v40, %v872_v35  ;;  %v2024_v42 = vpop.f32.mrb[9].mxu0  ;;  %v1093_v43 = vpop.f32.mrb[8].mxu1 }
 0x13f   : > { %v982_v44 = vpop.f32.mrb[10].mxu0  ;;  %v2044_v45 = vpop.f32.mrb[9].mxu1 }
 0x140   : > { %v987_v46 = vadd.f32 %v982_v44, %v873_v39  ;;  %v1100_v47 = vadd.f32 %v1093_v43, %v986_v41  ;;  %v2025_v48 = vpop.f32.mrb[11].mxu0  ;;  %v1096_v49 = vpop.f32.mrb[10].mxu1 }
 0x141   : > { %v2045_v50 = vpop.f32.mrb[11].mxu1 }
 0x142   : > { %v1101_v51 = vadd.f32 %v1096_v49, %v987_v46 }
 0x15d   : > { %v1207_v52 = vpop.f32.mrb[12].mxu0 }
 0x15e   : > { %v1214_v53 = vadd.f32 %v1207_v52, %v1100_v47  ;;  %v2064_v54 = vpop.f32.mrb[13].mxu0  ;;  %v1321_v55 = vpop.f32.mrb[12].mxu1 }
 0x15f   : > { %v1210_v56 = vpop.f32.mrb[14].mxu0  ;;  %v2084_v57 = vpop.f32.mrb[13].mxu1 }
 0x160   : > { %v1215_v58 = vadd.f32 %v1210_v56, %v1101_v51  ;;  %v1328_v59 = vadd.f32 %v1321_v55, %v1214_v53  ;;  %v2065_v60 = vpop.f32.mrb[15].mxu0  ;;  %v1324_v61 = vpop.f32.mrb[14].mxu1 }
 0x161   : > { %v2085_v62 = vpop.f32.mrb[15].mxu1 }
 0x162   : > { %v1329_v63 = vadd.f32 %v1324_v61, %v1215_v58 }
 0x17d   : > { %v1435_v0 = vpop.f32.mrb[16].mxu0 }
 0x17e   : > { %v1442_v3 = vadd.f32 %v1435_v0, %v1328_v59  ;;  %v2104_v4 = vpop.f32.mrb[17].mxu0 }
 0x17f   : > { %v1438_v5 = vpop.f32.mrb[18].mxu0 }
 0x180   : > { %v1451_v6 = vadd.f32 %v1842_v2, %v1442_v3  ;;  %v1443_v7 = vadd.f32 %v1438_v5, %v1329_v63  ;;  %v2105_v8 = vpop.f32.mrb[19].mxu0 }
 0x182   : > { %v1453_v10 = vmax.f32 %v1451_v6, 0.0  ;;  %v1452_v11 = vadd.f32 %v1842_v2, %v1443_v7 }
 0x184   : > { %v1457_v13 = vadd.f32 %v1455_v9, %v1453_v10  ;;  %v1454_v14 = vmax.f32 %v1452_v11, 0.0 }
 0x186   : > { %v1458_v15 = vadd.f32 %v1456_v12, %v1454_v14  ;;  %1459 = vst [vmem:[%s403_s30] sm:$0xff] %v1457_v13 }
 0x188   : > { %1460 = vst [vmem:[%s403_s30 + $0x8] sm:$0xff] %v1458_v15 }
 0x189 PF: > { %s16_s25 = sadd.s32 1, %s2271_s25   ;;  %s2722_s21 = smov %s2263_s23 }
 0x18a   : > { %p13_p10 = scmp.ge.s32.totalorder %s16_s25, 34   ;;  %s2723_s22 = smov %s2267_s24 }
 0x18b   : > { %s2724_s23 = smov %s2727_s26  ;;  %s2725_s24 = smov %s2731_s27 }
 0x18c   :  { %15 = sbr.rel (!%p13_p10) target bundleno = 3 (0x3), region = 91 }

</bundles_post_ra>
